<compile_context>
chip_gen: v5e
topology: v5e:2x2
jax: 0.10.0
libtpu: 0.0.40
codegen_flags: <defaults>
</compile_context>

<pallas_src>
import numpy as np

import jax
import jax.numpy as jnp
from jax import lax
from jax.experimental import pallas as pl
from jax.experimental.pallas import tpu as pltpu


LANES = 128          # lane-dense padded channel width
NEG_SLOPE = 0.2      # LeakyReLU slope
BN_EPS = 1e-5


def _round_up(v, m):
    return -(-v // m) * m


def _bilinear_up_1d(n_in):
    """(2*n_in, n_in) operator of nn.Upsample(scale_factor=2, mode='bilinear',
    align_corners=False) along one axis (PyTorch half-pixel convention).
    All coefficients (0.25 / 0.75 / 1.0) are exactly representable in bf16."""
    n_out = 2 * n_in
    i = np.arange(n_out, dtype=np.float64)
    src = np.maximum((i + 0.5) / 2.0 - 0.5, 0.0)
    i0 = np.floor(src).astype(np.int64)
    frac = (src - i0).astype(np.float32)
    i1 = np.minimum(i0 + 1, n_in - 1)
    i0 = np.clip(i0, 0, n_in - 1)
    u = np.zeros((n_out, n_in), np.float32)
    u[np.arange(n_out), i0] += 1.0 - frac
    u[np.arange(n_out), i1] += frac
    return u


# ------------------------ UnetSkipConnectionBlock forward ---------------------

def unet_innermost_forward(x_nchw, params):
    """Innermost UnetSkipConnectionBlock: returns cat([x, model(x)], dim=1) in NCHW."""
    x = x_nchw.astype(jnp.float32)
    n, cin, H, W = x.shape
    inner_nc = params["w_down"].shape[0]
    outer_nc = params["w_up"].shape[0]
    assert H % 2 == 0 and W % 2 == 0
    ho, wo = H // 2, W // 2
    cp = _round_up(inner_nc, LANES)      # padded hidden channels (conv1 out / conv2 in)
    cpo = _round_up(outer_nc, LANES)     # padded output channels (lane-dense out store)
    k1 = 16 * cin
    k1p = _round_up(k1, LANES)           # down-conv contraction (tap-packed)
    m1 = n * ho * wo
    m2 = n * H * W
    hpp = H + 2                          # upsampled map + conv zero-pad rows (outer dim)

    # --- layout plumbing in the XLA wrapper (no compute hoisted) ---
    # NCHW -> NHWC, zero-pad(1), 4x4/stride-2 patch extraction = tap packing for conv1.
    x_nhwc = jnp.transpose(x, (0, 2, 3, 1))
    xp = jnp.pad(x_nhwc, ((0, 0), (1, 1), (1, 1), (0, 0)))
    cols = []
    for kh in range(4):
        for kw in range(4):
            cols.append(xp[:, kh:kh + 2 * ho - 1:2, kw:kw + 2 * wo - 1:2, :])
    xcol = jnp.concatenate(cols, axis=-1).reshape(m1, k1)
    xcol = jnp.pad(xcol, ((0, 0), (0, k1p - k1)))                 # f32, lane-dense

    # down-conv weight (O, I, 4, 4) -> (16*I, O), rows ordered (kh, kw, I); pad; bf16
    w1 = jnp.transpose(params["w_down"], (2, 3, 1, 0)).reshape(k1, inner_nc)
    w1 = jnp.pad(w1, ((0, k1p - k1), (0, cp - inner_nc))).astype(jnp.bfloat16)

    # up-conv weight (O, I, 3, 3) -> (9*cp, cpo), row blocks ordered (dh, dw, I-padded); bf16
    w2 = jnp.transpose(params["w_up"], (2, 3, 1, 0))              # (3, 3, I, O)
    w2 = jnp.pad(w2, ((0, 0), (0, 0), (0, cp - inner_nc), (0, cpo - outer_nc)))
    w2 = w2.reshape(9 * cp, cpo).astype(jnp.bfloat16)

    # (bilinear 2x along W + conv zero-pad) operator, pre-shifted for the 3 conv W-taps.
    # Tiny (3, W, wo) — linear in the spatial extent, applied per sample inside the kernel.
    uwp_full = np.zeros((W + 2, wo), np.float32)
    uwp_full[1:W + 1, :] = _bilinear_up_1d(wo)
    uwp3 = jnp.asarray(np.stack([uwp_full[dw:dw + W] for dw in range(3)], axis=0),
                       dtype=jnp.bfloat16)

    # BN affine params; padded lanes MUST stay gamma=1 / beta=0 (padded columns are all
    # zero -> var=0 -> rsqrt(eps)*0*1 + 0 = 0, sliced off below).
    gamma = jnp.pad(params["gamma"].astype(jnp.float32), (0, cpo - outer_nc),
                    constant_values=1.0).reshape(1, cpo)
    beta = jnp.pad(params["beta"].astype(jnp.float32), (0, cpo - outer_nc)).reshape(1, cpo)

    flops = 2 * (m1 * k1p * cp                       # down conv (tap-packed)
                 + 3 * (n * hpp) * W * wo * cp       # separable W upsample (+pad/taps)
                 + m2 * (9 * cp) * cpo)              # 3x3 up conv (tap-packed, K = 9*cp)
    bytes_accessed = (4 * (m1 * k1p + 2 * cpo + m2 * cpo)
                      + 2 * (k1p * cp + 3 * W * wo + 9 * cp * cpo))

    def kernel(xcol_ref, w1_ref, uwp3_ref, w2_ref, gamma_ref, beta_ref, out_ref):
        # ---- LeakyReLU(0.2) + Conv4x4/s2 as ONE tap-packed matmul (lane-dense operand) ----
        xa = xcol_ref[...]
        xa = jnp.where(xa >= 0.0, xa, NEG_SLOPE * xa)
        acc1 = jnp.dot(xa.astype(jnp.bfloat16), w1_ref[...],
                       preferred_element_type=jnp.float32)
        h = jnp.maximum(acc1, 0.0)                                    # uprelu (ReLU)
        # round h to bf16 once (it is only consumed as an MXU A-operand downstream)
        hb = h.astype(jnp.bfloat16).astype(jnp.float32).reshape(n, ho, wo, cp)

        # ---- bilinear 2x along H: 2-tap shift-and-add on the VPU; the clamped-neighbour
        #      shifts and the even/odd interleave only touch outer (vreg-granular) dims ----
        top = jnp.concatenate([hb[:, :1], hb[:, :-1]], axis=1)        # clamp at row 0
        bot = jnp.concatenate([hb[:, 1:], hb[:, -1:]], axis=1)        # clamp at last row
        even = 0.75 * hb + 0.25 * top
        odd = 0.75 * hb + 0.25 * bot
        th = jnp.stack([even, odd], axis=2).reshape(n, H, wo, cp)     # interleave rows
        zrow = jnp.zeros((n, 1, wo, cp), jnp.float32)
        thp = jnp.concatenate([zrow, th, zrow], axis=1)               # fold conv H-pad(1)
        rhs = thp.reshape(n * hpp, wo, cp).astype(jnp.bfloat16)       # (n*hpp, wo, cp)

        # ---- bilinear 2x along W: tiny per-axis operator on the MXU; the 3x3 conv's
        #      W zero-pad and its three W-taps are folded into pre-shifted operator rows,
        #      so no shifted-window (sublane-relayout) reads are ever needed ----
        hw_list = []
        for dw in range(3):
            lhs = jnp.broadcast_to(uwp3_ref[dw][None], (n * hpp, W, wo))
            hw = jnp.einsum('bks,bsc->bkc', lhs, rhs,
                            preferred_element_type=jnp.float32)       # (n*hpp, W, cp) f32
            hw_list.append(hw.reshape(n, hpp, W, cp).astype(jnp.bfloat16))

        # ---- Conv3x3/s1: all 9 taps packed into the contraction dim -> ONE matmul,
        #      K = 9*cp (>= 256, full MXU depth on v6e/v7x); H-taps are free outer slices ----
        pieces = [hw_list[dw][:, dh:dh + H, :, :].reshape(m2, cp)
                  for dh in range(3) for dw in range(3)]
        a2 = jnp.concatenate(pieces, axis=-1)                         # (m2, 9*cp) bf16
        acc2 = jnp.dot(a2, w2_ref[...], preferred_element_type=jnp.float32)

        # ---- BatchNorm2d (training-mode batch statistics), fused.  Only acc2 stays live;
        #      stats + normalize feed the single lane-dense output store.  NOTE: correct
        #      only because grid=(1,) sees all n*H*W rows (see striping TODO above). ----
        mean = jnp.sum(acc2, axis=0, keepdims=True) * (1.0 / m2)
        xc = acc2 - mean
        var = jnp.sum(xc * xc, axis=0, keepdims=True) * (1.0 / m2)    # biased var (PyTorch BN)
        inv = lax.rsqrt(var + BN_EPS)
        out_ref[...] = xc * (inv * gamma_ref[...]) + beta_ref[...]

    out = pl.pallas_call(
        kernel,
        out_shape=jax.ShapeDtypeStruct((m2, cpo), jnp.float32),
        grid=(1,),   # fully fused; everything is VMEM-resident at this size
        in_specs=[
            pl.BlockSpec(xcol.shape, lambda i: (0, 0)),
            pl.BlockSpec(w1.shape, lambda i: (0, 0)),
            pl.BlockSpec(uwp3.shape, lambda i: (0, 0, 0)),
            pl.BlockSpec(w2.shape, lambda i: (0, 0)),
            pl.BlockSpec((1, cpo), lambda i: (0, 0)),
            pl.BlockSpec((1, cpo), lambda i: (0, 0)),
        ],
        out_specs=pl.BlockSpec((m2, cpo), lambda i: (0, 0)),
        compiler_params=pltpu.CompilerParams(
            dimension_semantics=("arbitrary",)),
        cost_estimate=pl.CostEstimate(flops=int(flops), transcendentals=int(cpo),
                                      bytes_accessed=int(bytes_accessed)),
    )(xcol, w1, uwp3, w2, gamma, beta)

    y = out.reshape(n, H, W, cpo)[:, :, :, :outer_nc]
    y = jnp.transpose(y, (0, 3, 1, 2))
    return jnp.concatenate([x, y], axis=1)


# ------------------------------ reference (pure JAX) --------------------------

def _round_bf16(a):
    return a.astype(jnp.bfloat16).astype(jnp.float32)


def _up2x_axis(a, axis):
    """Bilinear 2x along one axis, align_corners=False (PyTorch half-pixel convention)."""
    size = a.shape[axis]
    left = jnp.concatenate([lax.slice_in_dim(a, 0, 1, axis=axis),
                            lax.slice_in_dim(a, 0, size - 1, axis=axis)], axis=axis)
    right = jnp.concatenate([lax.slice_in_dim(a, 1, size, axis=axis),
                             lax.slice_in_dim(a, size - 1, size, axis=axis)], axis=axis)
    even = 0.75 * a + 0.25 * left
    odd = 0.75 * a + 0.25 * right
    st = jnp.stack([even, odd], axis=axis + 1)
    new_shape = list(a.shape)
    new_shape[axis] *= 2
    return st.reshape(new_shape)


def reference_forward(x_nchw, params):
    """Pure-JAX reference.  The MXU operands (conv inputs, the W-upsample input) are rounded
    to bf16 at the same points as in the kernel so the comparison isolates indexing /
    algorithm errors from expected bf16 rounding."""
    def conv(x, w, stride, pad):
        return lax.conv_general_dilated(
            _round_bf16(x), _round_bf16(w),
            window_strides=(stride, stride), padding=[(pad, pad), (pad, pad)],
            dimension_numbers=("NCHW", "OIHW", "NCHW"),
            preferred_element_type=jnp.float32)

    x = x_nchw.astype(jnp.float32)
    h = jnp.where(x >= 0.0, x, NEG_SLOPE * x)                     # LeakyReLU(0.2)
    h = conv(h, params["w_down"], 2, 1)                           # Conv 4x4 / s2 / p1
    h = jnp.maximum(h, 0.0)                                       # ReLU
    h = _round_bf16(h)                                            # kernel rounds h once
    hN = jnp.transpose(h, (0, 2, 3, 1))
    hN = _up2x_axis(hN, 1)                                        # bilinear 2x along H (f32)
    hN = _round_bf16(hN)                                          # kernel's W-matmul operand
    hN = _up2x_axis(hN, 2)                                        # bilinear 2x along W
    h = jnp.transpose(hN, (0, 3, 1, 2))
    y = conv(h, params["w_up"], 1, 1)                             # Conv 3x3 / s1 / p1
    mean = jnp.mean(y, axis=(0, 2, 3), keepdims=True)             # training-mode BatchNorm2d
    var = jnp.mean((y - mean) ** 2, axis=(0, 2, 3), keepdims=True)
    y = (y - mean) * lax.rsqrt(var + BN_EPS)
    y = y * params["gamma"].reshape(1, -1, 1, 1) + params["beta"].reshape(1, -1, 1, 1)
    return jnp.concatenate([x, y], axis=1)


# ------------------------------------- main -----------------------------------

if __name__ == "__main__":
    key = jax.random.PRNGKey(0)
    k_x, k_w1, k_w2 = jax.random.split(key, 3)

    N, outer_nc, inner_nc, H, W = 2, 4, 8, 16, 16
    input_nc = outer_nc  # input_nc=None in the module -> outer_nc

    x = jax.random.normal(k_x, (N, input_nc, H, W), dtype=jnp.float32)

    params = {
        # PyTorch conv weight layouts (O, I, kh, kw); N(0, 0.02) init, no bias (BatchNorm case)
        "w_down": 0.02 * jax.random.normal(k_w1, (inner_nc, input_nc, 4, 4), dtype=jnp.float32),
        "w_up": 0.02 * jax.random.normal(k_w2, (outer_nc, inner_nc, 3, 3), dtype=jnp.float32),
        # BatchNorm2d default init
        "gamma": jnp.ones((outer_nc,), jnp.float32),
        "beta": jnp.zeros((outer_nc,), jnp.float32),
    }

    out = jax.block_until_ready(unet_innermost_forward(x, params))
    ref = jax.block_until_ready(reference_forward(x, params))

    assert out.shape == (N, 2 * outer_nc, H, W), out.shape
    assert bool(jnp.all(jnp.isfinite(out)))
    max_err = float(jnp.max(jnp.abs(out - ref)))
    assert bool(jnp.allclose(out, ref, rtol=5e-3, atol=5e-3)), max_err

    print("KERNEL_OK")
</pallas_src>

<mosaic_0001>
module attributes {stable_mosaic.version = 11 : i64} {
  func.func @kernel(%arg0: i32, %arg1: memref<128x128xf32, #tpu.memory_space<vmem>>, %arg2: memref<128x128xbf16, #tpu.memory_space<vmem>>, %arg3: memref<3x16x8xbf16, #tpu.memory_space<vmem>>, %arg4: memref<1152x128xbf16, #tpu.memory_space<vmem>>, %arg5: memref<1x128xf32, #tpu.memory_space<vmem>>, %arg6: memref<1x128xf32, #tpu.memory_space<vmem>>, %arg7: memref<512x128xf32, #tpu.memory_space<vmem>>) attributes {dimension_semantics = [#tpu.dimension_semantics<arbitrary>], iteration_bounds = array<i64: 1>, scalar_prefetch = 0 : i64, scratch_operands = 0 : i64, tpu.core_type = #tpu.core_type<tc>, window_params = [{pipeline_mode = #tpu.pipeline_mode<synchronous>, transform_indices = @transform_0, window_bounds = array<i64: 128, 128>}, {pipeline_mode = #tpu.pipeline_mode<synchronous>, transform_indices = @transform_1, window_bounds = array<i64: 128, 128>}, {pipeline_mode = #tpu.pipeline_mode<synchronous>, transform_indices = @transform_2, window_bounds = array<i64: 3, 16, 8>}, {pipeline_mode = #tpu.pipeline_mode<synchronous>, transform_indices = @transform_3, window_bounds = array<i64: 1152, 128>}, {pipeline_mode = #tpu.pipeline_mode<synchronous>, transform_indices = @transform_4, window_bounds = array<i64: 1, 128>}, {pipeline_mode = #tpu.pipeline_mode<synchronous>, transform_indices = @transform_5, window_bounds = array<i64: 1, 128>}, {pipeline_mode = #tpu.pipeline_mode<synchronous>, transform_indices = @transform_6, window_bounds = array<i64: 512, 128>}]} {
    %c0 = arith.constant 0 : index
    %c0_0 = arith.constant 0 : index
    %0 = vector.load %arg1[%c0, %c0_0] : memref<128x128xf32, #tpu.memory_space<vmem>>, vector<128x128xf32>
    %cst = arith.constant 0.000000e+00 : f32
    %1 = vector.broadcast %cst : f32 to vector<128x128xf32>
    %2 = arith.cmpf oge, %0, %1 : vector<128x128xf32>
    %cst_1 = arith.constant 2.000000e-01 : f32
    %3 = vector.broadcast %cst_1 : f32 to vector<128x128xf32>
    %4 = arith.mulf %3, %0 : vector<128x128xf32>
    %5 = arith.select %2, %0, %4 : vector<128x128xi1>, vector<128x128xf32>
    %6 = arith.truncf %5 : vector<128x128xf32> to vector<128x128xbf16>
    %c0_2 = arith.constant 0 : index
    %c0_3 = arith.constant 0 : index
    %7 = vector.load %arg2[%c0_2, %c0_3] : memref<128x128xbf16, #tpu.memory_space<vmem>>, vector<128x128xbf16>
    %cst_4 = arith.constant dense<0.000000e+00> : vector<128x128xf32>
    %8 = tpu.matmul %6, %7, %cst_4 {dimension_numbers = #tpu.dot_dimension_numbers<[1], [0], [0], [1], [0, 0, 1, 1], [], []>} : vector<128x128xbf16>, vector<128x128xbf16>, vector<128x128xf32> -> vector<128x128xf32>
    %cst_5 = arith.constant 0.000000e+00 : f32
    %9 = vector.broadcast %cst_5 : f32 to vector<128x128xf32>
    %10 = arith.maximumf %8, %9 : vector<128x128xf32>
    %11 = arith.truncf %10 : vector<128x128xf32> to vector<128x128xbf16>
    %12 = arith.extf %11 : vector<128x128xbf16> to vector<128x128xf32>
    %13 = vector.shape_cast %12 : vector<128x128xf32> to vector<2x8x8x128xf32>
    %14 = vector.extract_strided_slice %13 {offsets = [0, 0, 0, 0], sizes = [2, 1, 8, 128], strides = [1, 1, 1, 1]} : vector<2x8x8x128xf32> to vector<2x1x8x128xf32>
    %15 = vector.extract_strided_slice %13 {offsets = [0, 0, 0, 0], sizes = [2, 7, 8, 128], strides = [1, 1, 1, 1]} : vector<2x8x8x128xf32> to vector<2x7x8x128xf32>
    %16 = tpu.concatenate %14, %15 in 1 : vector<2x1x8x128xf32>, vector<2x7x8x128xf32> -> vector<2x8x8x128xf32>
    %17 = vector.extract_strided_slice %13 {offsets = [0, 1, 0, 0], sizes = [2, 7, 8, 128], strides = [1, 1, 1, 1]} : vector<2x8x8x128xf32> to vector<2x7x8x128xf32>
    %18 = vector.extract_strided_slice %13 {offsets = [0, 7, 0, 0], sizes = [2, 1, 8, 128], strides = [1, 1, 1, 1]} : vector<2x8x8x128xf32> to vector<2x1x8x128xf32>
    %19 = tpu.concatenate %17, %18 in 1 : vector<2x7x8x128xf32>, vector<2x1x8x128xf32> -> vector<2x8x8x128xf32>
    %cst_6 = arith.constant 7.500000e-01 : f32
    %20 = vector.broadcast %cst_6 : f32 to vector<2x8x8x128xf32>
    %21 = arith.mulf %20, %13 : vector<2x8x8x128xf32>
    %cst_7 = arith.constant 2.500000e-01 : f32
    %22 = vector.broadcast %cst_7 : f32 to vector<2x8x8x128xf32>
    %23 = arith.mulf %22, %16 : vector<2x8x8x128xf32>
    %24 = arith.addf %21, %23 : vector<2x8x8x128xf32>
    %cst_8 = arith.constant 7.500000e-01 : f32
    %25 = vector.broadcast %cst_8 : f32 to vector<2x8x8x128xf32>
    %26 = arith.mulf %25, %13 : vector<2x8x8x128xf32>
    %cst_9 = arith.constant 2.500000e-01 : f32
    %27 = vector.broadcast %cst_9 : f32 to vector<2x8x8x128xf32>
    %28 = arith.mulf %27, %19 : vector<2x8x8x128xf32>
    %29 = arith.addf %26, %28 : vector<2x8x8x128xf32>
    %30 = vector.shape_cast %24 : vector<2x8x8x128xf32> to vector<2x8x1x8x128xf32>
    %31 = vector.shape_cast %29 : vector<2x8x8x128xf32> to vector<2x8x1x8x128xf32>
    %32 = tpu.concatenate %30, %31 in 2 : vector<2x8x1x8x128xf32>, vector<2x8x1x8x128xf32> -> vector<2x8x2x8x128xf32>
    %33 = vector.shape_cast %32 : vector<2x8x2x8x128xf32> to vector<2x16x8x128xf32>
    %cst_10 = arith.constant 0.000000e+00 : f32
    %34 = vector.broadcast %cst_10 : f32 to vector<2x1x8x128xf32>
    %35 = tpu.concatenate %34, %33, %34 in 1 : vector<2x1x8x128xf32>, vector<2x16x8x128xf32>, vector<2x1x8x128xf32> -> vector<2x18x8x128xf32>
    %36 = vector.shape_cast %35 : vector<2x18x8x128xf32> to vector<36x8x128xf32>
    %37 = arith.truncf %36 : vector<36x8x128xf32> to vector<36x8x128xbf16>
    %c0_11 = arith.constant 0 : index
    %c0_12 = arith.constant 0 : index
    %c0_13 = arith.constant 0 : index
    %38 = vector.load %arg3[%c0_11, %c0_12, %c0_13] : memref<3x16x8xbf16, #tpu.memory_space<vmem>>, vector<1x16x8xbf16>
    %39 = vector.shape_cast %38 : vector<1x16x8xbf16> to vector<16x8xbf16>
    %40 = vector.shape_cast %39 : vector<16x8xbf16> to vector<1x16x8xbf16>
    %41 = vector.shape_cast %40 : vector<1x16x8xbf16> to vector<1x16x8xbf16>
    %42 = vector.broadcast %41 : vector<1x16x8xbf16> to vector<36x16x8xbf16>
    "tpu.trace_start"() <{level = 10 : i32, message = "bks,bsc->bkc"}> : () -> ()
    %cst_14 = arith.constant dense<0.000000e+00> : vector<36x16x128xf32>
    %43 = tpu.matmul %42, %37, %cst_14 {dimension_numbers = #tpu.dot_dimension_numbers<[2], [1], [1], [2], [0, 0, 0, 1, 1, 2], [0], [0]>} : vector<36x16x8xbf16>, vector<36x8x128xbf16>, vector<36x16x128xf32> -> vector<36x16x128xf32>
    "tpu.trace_stop"() : () -> ()
    %44 = vector.shape_cast %43 : vector<36x16x128xf32> to vector<2x18x16x128xf32>
    %45 = arith.truncf %44 : vector<2x18x16x128xf32> to vector<2x18x16x128xbf16>
    %c1 = arith.constant 1 : index
    %c0_15 = arith.constant 0 : index
    %c0_16 = arith.constant 0 : index
    %46 = vector.load %arg3[%c1, %c0_15, %c0_16] : memref<3x16x8xbf16, #tpu.memory_space<vmem>>, vector<1x16x8xbf16>
    %47 = vector.shape_cast %46 : vector<1x16x8xbf16> to vector<16x8xbf16>
    %48 = vector.shape_cast %47 : vector<16x8xbf16> to vector<1x16x8xbf16>
    %49 = vector.shape_cast %48 : vector<1x16x8xbf16> to vector<1x16x8xbf16>
    %50 = vector.broadcast %49 : vector<1x16x8xbf16> to vector<36x16x8xbf16>
    "tpu.trace_start"() <{level = 10 : i32, message = "bks,bsc->bkc"}> : () -> ()
    %cst_17 = arith.constant dense<0.000000e+00> : vector<36x16x128xf32>
    %51 = tpu.matmul %50, %37, %cst_17 {dimension_numbers = #tpu.dot_dimension_numbers<[2], [1], [1], [2], [0, 0, 0, 1, 1, 2], [0], [0]>} : vector<36x16x8xbf16>, vector<36x8x128xbf16>, vector<36x16x128xf32> -> vector<36x16x128xf32>
    "tpu.trace_stop"() : () -> ()
    %52 = vector.shape_cast %51 : vector<36x16x128xf32> to vector<2x18x16x128xf32>
    %53 = arith.truncf %52 : vector<2x18x16x128xf32> to vector<2x18x16x128xbf16>
    %c2 = arith.constant 2 : index
    %c0_18 = arith.constant 0 : index
    %c0_19 = arith.constant 0 : index
    %54 = vector.load %arg3[%c2, %c0_18, %c0_19] : memref<3x16x8xbf16, #tpu.memory_space<vmem>>, vector<1x16x8xbf16>
    %55 = vector.shape_cast %54 : vector<1x16x8xbf16> to vector<16x8xbf16>
    %56 = vector.shape_cast %55 : vector<16x8xbf16> to vector<1x16x8xbf16>
    %57 = vector.shape_cast %56 : vector<1x16x8xbf16> to vector<1x16x8xbf16>
    %58 = vector.broadcast %57 : vector<1x16x8xbf16> to vector<36x16x8xbf16>
    "tpu.trace_start"() <{level = 10 : i32, message = "bks,bsc->bkc"}> : () -> ()
    %cst_20 = arith.constant dense<0.000000e+00> : vector<36x16x128xf32>
    %59 = tpu.matmul %58, %37, %cst_20 {dimension_numbers = #tpu.dot_dimension_numbers<[2], [1], [1], [2], [0, 0, 0, 1, 1, 2], [0], [0]>} : vector<36x16x8xbf16>, vector<36x8x128xbf16>, vector<36x16x128xf32> -> vector<36x16x128xf32>
    "tpu.trace_stop"() : () -> ()
    %60 = vector.shape_cast %59 : vector<36x16x128xf32> to vector<2x18x16x128xf32>
    %61 = arith.truncf %60 : vector<2x18x16x128xf32> to vector<2x18x16x128xbf16>
    %62 = vector.extract_strided_slice %45 {offsets = [0, 0, 0, 0], sizes = [2, 16, 16, 128], strides = [1, 1, 1, 1]} : vector<2x18x16x128xbf16> to vector<2x16x16x128xbf16>
    %63 = vector.shape_cast %62 : vector<2x16x16x128xbf16> to vector<512x128xbf16>
    %64 = vector.extract_strided_slice %53 {offsets = [0, 0, 0, 0], sizes = [2, 16, 16, 128], strides = [1, 1, 1, 1]} : vector<2x18x16x128xbf16> to vector<2x16x16x128xbf16>
    %65 = vector.shape_cast %64 : vector<2x16x16x128xbf16> to vector<512x128xbf16>
    %66 = vector.extract_strided_slice %61 {offsets = [0, 0, 0, 0], sizes = [2, 16, 16, 128], strides = [1, 1, 1, 1]} : vector<2x18x16x128xbf16> to vector<2x16x16x128xbf16>
    %67 = vector.shape_cast %66 : vector<2x16x16x128xbf16> to vector<512x128xbf16>
    %68 = vector.extract_strided_slice %45 {offsets = [0, 1, 0, 0], sizes = [2, 16, 16, 128], strides = [1, 1, 1, 1]} : vector<2x18x16x128xbf16> to vector<2x16x16x128xbf16>
    %69 = vector.shape_cast %68 : vector<2x16x16x128xbf16> to vector<512x128xbf16>
    %70 = vector.extract_strided_slice %53 {offsets = [0, 1, 0, 0], sizes = [2, 16, 16, 128], strides = [1, 1, 1, 1]} : vector<2x18x16x128xbf16> to vector<2x16x16x128xbf16>
    %71 = vector.shape_cast %70 : vector<2x16x16x128xbf16> to vector<512x128xbf16>
    %72 = vector.extract_strided_slice %61 {offsets = [0, 1, 0, 0], sizes = [2, 16, 16, 128], strides = [1, 1, 1, 1]} : vector<2x18x16x128xbf16> to vector<2x16x16x128xbf16>
    %73 = vector.shape_cast %72 : vector<2x16x16x128xbf16> to vector<512x128xbf16>
    %74 = vector.extract_strided_slice %45 {offsets = [0, 2, 0, 0], sizes = [2, 16, 16, 128], strides = [1, 1, 1, 1]} : vector<2x18x16x128xbf16> to vector<2x16x16x128xbf16>
    %75 = vector.shape_cast %74 : vector<2x16x16x128xbf16> to vector<512x128xbf16>
    %76 = vector.extract_strided_slice %53 {offsets = [0, 2, 0, 0], sizes = [2, 16, 16, 128], strides = [1, 1, 1, 1]} : vector<2x18x16x128xbf16> to vector<2x16x16x128xbf16>
    %77 = vector.shape_cast %76 : vector<2x16x16x128xbf16> to vector<512x128xbf16>
    %78 = vector.extract_strided_slice %61 {offsets = [0, 2, 0, 0], sizes = [2, 16, 16, 128], strides = [1, 1, 1, 1]} : vector<2x18x16x128xbf16> to vector<2x16x16x128xbf16>
    %79 = vector.shape_cast %78 : vector<2x16x16x128xbf16> to vector<512x128xbf16>
    %80 = tpu.concatenate %63, %65, %67, %69, %71, %73, %75, %77, %79 in 1 : vector<512x128xbf16>, vector<512x128xbf16>, vector<512x128xbf16>, vector<512x128xbf16>, vector<512x128xbf16>, vector<512x128xbf16>, vector<512x128xbf16>, vector<512x128xbf16>, vector<512x128xbf16> -> vector<512x1152xbf16>
    %c0_21 = arith.constant 0 : index
    %c0_22 = arith.constant 0 : index
    %81 = vector.load %arg4[%c0_21, %c0_22] : memref<1152x128xbf16, #tpu.memory_space<vmem>>, vector<1152x128xbf16>
    %cst_23 = arith.constant dense<0.000000e+00> : vector<512x128xf32>
    %82 = tpu.matmul %80, %81, %cst_23 {dimension_numbers = #tpu.dot_dimension_numbers<[1], [0], [0], [1], [0, 0, 1, 1], [], []>} : vector<512x1152xbf16>, vector<1152x128xbf16>, vector<512x128xf32> -> vector<512x128xf32>
    %cst_24 = arith.constant dense<0.000000e+00> : vector<128xf32>
    %83 = vector.multi_reduction <add>, %82, %cst_24 [0] : vector<512x128xf32> to vector<128xf32>
    %84 = vector.shape_cast %83 : vector<128xf32> to vector<1x128xf32>
    %cst_25 = arith.constant 0.001953125 : f32
    %85 = vector.broadcast %cst_25 : f32 to vector<1x128xf32>
    %86 = arith.mulf %84, %85 : vector<1x128xf32>
    %87 = vector.broadcast %86 : vector<1x128xf32> to vector<512x128xf32>
    %88 = arith.subf %82, %87 : vector<512x128xf32>
    %89 = arith.mulf %88, %88 : vector<512x128xf32>
    %cst_26 = arith.constant dense<0.000000e+00> : vector<128xf32>
    %90 = vector.multi_reduction <add>, %89, %cst_26 [0] : vector<512x128xf32> to vector<128xf32>
    %91 = vector.shape_cast %90 : vector<128xf32> to vector<1x128xf32>
    %cst_27 = arith.constant 0.001953125 : f32
    %92 = vector.broadcast %cst_27 : f32 to vector<1x128xf32>
    %93 = arith.mulf %91, %92 : vector<1x128xf32>
    %cst_28 = arith.constant 9.99999974E-6 : f32
    %94 = vector.broadcast %cst_28 : f32 to vector<1x128xf32>
    %95 = arith.addf %93, %94 : vector<1x128xf32>
    %96 = math.rsqrt %95 : vector<1x128xf32>
    %c0_29 = arith.constant 0 : index
    %c0_30 = arith.constant 0 : index
    %97 = vector.load %arg5[%c0_29, %c0_30] : memref<1x128xf32, #tpu.memory_space<vmem>>, vector<1x128xf32>
    %98 = arith.mulf %96, %97 : vector<1x128xf32>
    %99 = vector.broadcast %98 : vector<1x128xf32> to vector<512x128xf32>
    %100 = arith.mulf %88, %99 : vector<512x128xf32>
    %c0_31 = arith.constant 0 : index
    %c0_32 = arith.constant 0 : index
    %101 = vector.load %arg6[%c0_31, %c0_32] : memref<1x128xf32, #tpu.memory_space<vmem>>, vector<1x128xf32>
    %102 = vector.broadcast %101 : vector<1x128xf32> to vector<512x128xf32>
    %103 = arith.addf %100, %102 : vector<512x128xf32>
    %c0_33 = arith.constant 0 : index
    %c0_34 = arith.constant 0 : index
    %104 = vector.load %arg7[%c0_33, %c0_34] : memref<512x128xf32, #tpu.memory_space<vmem>>, vector<512x128xf32>
    tpu.vector_store %arg7[%c0_33, %c0_34], %103 {strides = array<i32>} : memref<512x128xf32, #tpu.memory_space<vmem>>, vector<512x128xf32>,
    return
  }
  func.func @transform_0(%arg0: i32) -> (i32, i32) {
    %c0_i32 = arith.constant 0 : i32
    %c0_i32_0 = arith.constant 0 : i32
    %c0_i32_1 = arith.constant 0 : i32
    return %c0_i32, %c0_i32_0 : i32, i32
  }
  func.func @transform_1(%arg0: i32) -> (i32, i32) {
    %c0_i32 = arith.constant 0 : i32
    %c0_i32_0 = arith.constant 0 : i32
    %c0_i32_1 = arith.constant 0 : i32
    return %c0_i32, %c0_i32_0 : i32, i32
  }
  func.func @transform_2(%arg0: i32) -> (i32, i32, i32) {
    %c0_i32 = arith.constant 0 : i32
    %c0_i32_0 = arith.constant 0 : i32
    %c0_i32_1 = arith.constant 0 : i32
    %c0_i32_2 = arith.constant 0 : i32
    return %c0_i32, %c0_i32_0, %c0_i32_1 : i32, i32, i32
  }
  func.func @transform_3(%arg0: i32) -> (i32, i32) {
    %c0_i32 = arith.constant 0 : i32
    %c0_i32_0 = arith.constant 0 : i32
    %c0_i32_1 = arith.constant 0 : i32
    return %c0_i32, %c0_i32_0 : i32, i32
  }
  func.func @transform_4(%arg0: i32) -> (i32, i32) {
    %c0_i32 = arith.constant 0 : i32
    %c0_i32_0 = arith.constant 0 : i32
    %c0_i32_1 = arith.constant 0 : i32
    return %c0_i32, %c0_i32_0 : i32, i32
  }
  func.func @transform_5(%arg0: i32) -> (i32, i32) {
    %c0_i32 = arith.constant 0 : i32
    %c0_i32_0 = arith.constant 0 : i32
    %c0_i32_1 = arith.constant 0 : i32
    return %c0_i32, %c0_i32_0 : i32, i32
  }
  func.func @transform_6(%arg0: i32) -> (i32, i32) {
    %c0_i32 = arith.constant 0 : i32
    %c0_i32_0 = arith.constant 0 : i32
    %c0_i32_1 = arith.constant 0 : i32
    return %c0_i32, %c0_i32_0 : i32, i32
  }
}

</mosaic_0001>

<bundles_post_ra>
// kernel: tpu_custom_call.1
= control target key start
LH: loop header
LB: loop body
LE: loop exit
PB: predicated region body
PF: predicated region fallthrough
CT: control target
= control target key end

     0   :  { %11 = vsyncpa [#allocation3], 0  ;;  %s8624_s0 = inlined_call_operand.hbm [shape: f32[128,128], index: 0, kind: input, shape index: {}]   ;;  %s8625_s1 = inlined_call_operand.hbm [shape: bf16[128,128], index: 1, kind: input, shape index: {}]   ;;  %s8626_s2 = inlined_call_operand.vmem [shape: bf16[3,16,8], index: 2, kind: input, shape index: {}]   ;;  %s8627_s3 = inlined_call_operand.hbm [shape: bf16[1152,128], index: 3, kind: input, shape index: {}]   ;;  %s8628_s4 = inlined_call_operand.vmem [shape: f32[1,128], index: 4, kind: input, shape index: {}]   ;;  %s8629_s5 = inlined_call_operand.vmem [shape: f32[1,128], index: 5, kind: input, shape index: {}]   ;;  %s8630_s6 = inlined_call_operand.hbm [shape: f32[512,128], index: 6, kind: output, shape index: {}]  }
   0x1   :  { %12 = vsyncpa [#allocation6], 0  ;;  %s31_s23 = sshll.u32 %s8625_s1, 4  ;;  %s32_s23 = int_to_ptr.hbm [resolvable:$true] %s31_s23 }
   0x2   :  { %13 = vsyncpa [#allocation4], 0  ;;  %s5964_s24 = smov [#allocation5]   ;;  %s18_s28 = sshll.u32 %s8624_s0, 4  ;;  %s19_s28 = int_to_ptr.hbm [resolvable:$true] %s18_s28 }
   0x3   :  { %s33_s25 = sshll.u32 %s5964_s24, 4  ;;  %s5965_s29 = smov 64   ;;  %s34_s25 = int_to_ptr.vmem [resolvable:$true] %s33_s25 }
   0x4   :  { %s5966_s30 = smov 4   ;;  %s5967_s7 = smov [#allocation2]  }
   0x5   :  { %39 = dma.hbm_to_vmem [thread:$0]  %s32_s23, 1024, %s34_s25, [#allocation6], %s5965_s29, %s5965_s29, %s5966_s30  }
   0x6   :  { %s20_s8 = sshll.u32 %s5967_s7, 4  ;;  %s5968_s9 = smov 128   ;;  %s21_s8 = int_to_ptr.vmem [resolvable:$true] %s20_s8 }
   0x7   :  { %s5969_s10 = smov 8   ;;  %s46_s12 = sshll.u32 %s8627_s3, 4  ;;  %s47_s12 = int_to_ptr.hbm [resolvable:$true] %s46_s12 }
   0x8   :  { %26 = dma.hbm_to_vmem [thread:$0]  %s19_s28, 2048, %s21_s8, [#allocation3], %s5968_s9, %s5968_s9, %s5969_s10  }
   0x9   :  { %s5970_s13 = smov [#allocation7]  }
   0xa   :  { %s48_s0 = sshll.u32 %s5970_s13, 4  ;;  %s49_s0 = int_to_ptr.vmem [resolvable:$true] %s48_s0 }
   0xb   :  { %54 = dma.hbm_to_vmem [thread:$0]  %s47_s12, 9216, %s49_s0, [#allocation6], %s5965_s29, %s5965_s29, %s5966_s30  }
   0xc   :  { %5958 = dma.done.wait [#allocation3], 2048  }
   0xd   :  { %5959 = vsyncadd [#allocation3], 4294965248 }
   0xe   :  { %5960 = dma.done.wait [#allocation6], 10240  }
   0xf   :  { %5961 = vsyncadd [#allocation6], 4294957056  ;;  %v5750_v0 = vld [vmem:[#allocation5 + $0x38] sm:$0xff]  ;;  %v5749_v1 = vld [vmem:[#allocation5 + $0x30] sm:$0xff]  ;;  %v8631_v63 = vmov 0.0|0.0   ;;  %s5294_s24 = sshll.u32 %s8630_s6, 4  ;;  %s5295_s24 = int_to_ptr.hbm [resolvable:$true] %s5294_s24 }
  0x10   :  { %208 = vmatpush.bf16.msra.mxu0 %v5750_v0  ;;  %v5748_v2 = vld [vmem:[#allocation5 + $0x28] sm:$0xff]  ;;  %v5747_v3 = vld [vmem:[#allocation5 + $0x20] sm:$0xff]  ;;  %v5746_v4 = vld [vmem:[#allocation5 + $0x18] sm:$0xff] }
  0x11   :  { %v5745_v5 = vld [vmem:[#allocation5 + $0x10] sm:$0xff]  ;;  %v72_v6 = vld [vmem:[#allocation2] sm:$0xff]  ;;  %v73_v7 = vld [vmem:[#allocation2 + $0x8] sm:$0xff] }
  0x12   :  { %v5744_v8 = vld [vmem:[#allocation5 + $0x8] sm:$0xff]  ;;  %v104_v9 = vmul.f32 0.2, %v72_v6  ;;  %v105_v10 = vmul.f32 0.2, %v73_v7  ;;  %vm88_vm0 = vcmp.ge.f32.partialorder %v72_v6, 0.0 }
  0x13   :  { %vm89_vm1 = vcmp.ge.f32.partialorder %v73_v7, 0.0  ;;  %v5743_v11 = vld [vmem:[#allocation5] sm:$0xff]  ;;  %v74_v15 = vld [vmem:[#allocation2 + $0x10] sm:$0xff]  ;;  %v75_v16 = vld [vmem:[#allocation2 + $0x18] sm:$0xff] }
  0x14   :  { %209 = vmatpush.bf16.msra.mxu0 %v5749_v1  ;;  %v120_v12 = vsel %vm88_vm0, %v72_v6, %v104_v9  ;;  %v121_v13 = vsel %vm89_vm1, %v73_v7, %v105_v10  ;;  %v106_v17 = vmul.f32 0.2, %v74_v15  ;;  %v107_v18 = vmul.f32 0.2, %v75_v16  ;;  %v76_v22 = vld [vmem:[#allocation2 + $0x20] sm:$0xff]  ;;  %v77_v23 = vld [vmem:[#allocation2 + $0x28] sm:$0xff] }
  0x15   :  { %v136_v14 = vpack.c.bf16 %v121_v13, %v120_v12  ;;  %vm90_vm2 = vcmp.ge.f32.partialorder %v74_v15, 0.0  ;;  %vm91_vm3 = vcmp.ge.f32.partialorder %v75_v16, 0.0  ;;  %v108_v24 = vmul.f32 0.2, %v76_v22  ;;  %v78_v29 = vld [vmem:[#allocation2 + $0x30] sm:$0xff]  ;;  %v79_v30 = vld [vmem:[#allocation2 + $0x38] sm:$0xff] }
  0x16   :  { %v122_v19 = vsel %vm90_vm2, %v74_v15, %v106_v17  ;;  %v123_v20 = vsel %vm91_vm3, %v75_v16, %v107_v18  ;;  %v109_v25 = vmul.f32 0.2, %v77_v23  ;;  %vm92_vm4 = vcmp.ge.f32.partialorder %v76_v22, 0.0  ;;  %v80_v36 = vld [vmem:[#allocation2 + $0x40] sm:$0xff]  ;;  %v81_v37 = vld [vmem:[#allocation2 + $0x48] sm:$0xff]  ;;  %v82_v43 = vld [vmem:[#allocation2 + $0x50] sm:$0xff] }
  0x17   :  { %v137_v21 = vpack.c.bf16 %v123_v20, %v122_v19  ;;  %vm93_vm5 = vcmp.ge.f32.partialorder %v77_v23, 0.0  ;;  %v124_v26 = vsel %vm92_vm4, %v76_v22, %v108_v24  ;;  %v110_v31 = vmul.f32 0.2, %v78_v29  ;;  %v83_v44 = vld [vmem:[#allocation2 + $0x58] sm:$0xff]  ;;  %v84_v50 = vld [vmem:[#allocation2 + $0x60] sm:$0xff]  ;;  %v85_v51 = vld [vmem:[#allocation2 + $0x68] sm:$0xff] }
  0x18   :  { %210 = vmatpush.bf16.msra.mxu0 %v5748_v2  ;;  %v125_v27 = vsel %vm93_vm5, %v77_v23, %v109_v25  ;;  %v111_v32 = vmul.f32 0.2, %v79_v30  ;;  %vm94_vm6 = vcmp.ge.f32.partialorder %v78_v29, 0.0  ;;  %vm95_vm7 = vcmp.ge.f32.partialorder %v79_v30, 0.0  ;;  %v86_v57 = vld [vmem:[#allocation2 + $0x70] sm:$0xff]  ;;  %v87_v58 = vld [vmem:[#allocation2 + $0x78] sm:$0xff] }
  0x19   :  { %v138_v28 = vpack.c.bf16 %v125_v27, %v124_v26  ;;  %v126_v33 = vsel %vm94_vm6, %v78_v29, %v110_v31  ;;  %v112_v38 = vmul.f32 0.2, %v80_v36  ;;  %v113_v39 = vmul.f32 0.2, %v81_v37  ;;  %v6024_v1 = vld [vmem:[%s8626_s2] sm:$0xff] }
  0x1a   :  { %v127_v34 = vsel %vm95_vm7, %v79_v30, %v111_v32  ;;  %vm96_vm8 = vcmp.ge.f32.partialorder %v80_v36, 0.0  ;;  %vm97_vm9 = vcmp.ge.f32.partialorder %v81_v37, 0.0  ;;  %v114_v45 = vmul.f32 0.2, %v82_v43 }
  0x1b   :  { %v139_v35 = vpack.c.bf16 %v127_v34, %v126_v33  ;;  %v128_v40 = vsel %vm96_vm8, %v80_v36, %v112_v38  ;;  %v129_v41 = vsel %vm97_vm9, %v81_v37, %v113_v39  ;;  %v115_v46 = vmul.f32 0.2, %v83_v44 }
  0x1c   :  { %211 = vmatpush.bf16.msra.mxu0 %v5747_v3  ;;  %v140_v42 = vpack.c.bf16 %v129_v41, %v128_v40  ;;  %vm98_vm10 = vcmp.ge.f32.partialorder %v82_v43, 0.0  ;;  %vm99_vm11 = vcmp.ge.f32.partialorder %v83_v44, 0.0  ;;  %v116_v52 = vmul.f32 0.2, %v84_v50 }
  0x1d   :  { %v130_v47 = vsel %vm98_vm10, %v82_v43, %v114_v45  ;;  %v131_v48 = vsel %vm99_vm11, %v83_v44, %v115_v46  ;;  %v117_v53 = vmul.f32 0.2, %v85_v51  ;;  %vm100_vm12 = vcmp.ge.f32.partialorder %v84_v50, 0.0 }
  0x1e   :  { %v141_v49 = vpack.c.bf16 %v131_v48, %v130_v47  ;;  %vm101_vm13 = vcmp.ge.f32.partialorder %v85_v51, 0.0  ;;  %v132_v54 = vsel %vm100_vm12, %v84_v50, %v116_v52  ;;  %v118_v59 = vmul.f32 0.2, %v86_v57 }
  0x1f   :  { %v133_v55 = vsel %vm101_vm13, %v85_v51, %v117_v53  ;;  %v119_v60 = vmul.f32 0.2, %v87_v58  ;;  %vm102_vm14 = vcmp.ge.f32.partialorder %v86_v57, 0.0  ;;  %vm103_vm15 = vcmp.ge.f32.partialorder %v87_v58, 0.0 }
  0x20   :  { %212 = vmatpush.bf16.msra.mxu0 %v5746_v4  ;;  %v142_v56 = vpack.c.bf16 %v133_v55, %v132_v54  ;;  %v134_v61 = vsel %vm102_vm14, %v86_v57, %v118_v59  ;;  %vm409_vm0 = vcmask 64512   ;;  %vm413_vm1 = vcmask 1043456  }
  0x21   :  { %v135_v62 = vsel %vm103_vm15, %v87_v58, %v119_v60 }
  0x22   :  { %v143_v0 = vpack.c.bf16 %v135_v62, %v134_v61 }
  0x24   :  { %213 = vmatpush.bf16.msra.mxu0 %v5745_v5 }
  0x28   :  { %214 = vmatpush.bf16.msra.mxu0 %v5744_v8 }
  0x2c   :  { %215 = vmatpush.bf16.msra.mxu0 %v5743_v11 }
  0x2f   :  { %216 = vmatmul.bf16.vlgmr.msra.gmra.mxu0 %v136_v14 }
  0x30   :  { %424 = vmatpush.bf16.msrb.mxu0 %v8631_v63 }
  0x3f   :  { %221 = vmatmul.bf16.gmra.mxu0 %v137_v21 }
  0x4f   :  { %226 = vmatmul.bf16.gmra.mxu0 %v138_v28 }
  0x5f   :  { %231 = vmatmul.bf16.gmra.mxu0 %v139_v35 }
  0x6f   :  { %236 = vmatmul.bf16.gmra.mxu0 %v140_v42 }
  0x7f   :  { %241 = vmatmul.bf16.gmra.mxu0 %v141_v49 }
  0x8f   :  { %246 = vmatmul.bf16.gmra.mxu0 %v142_v56 }
  0x9f   :  { %251 = vmatmul.bf16.gmra.mxu0 %v143_v0 }
  0xac   :  { %v217_v2 = vpop.f32.mrf.mxu0 }
  0xad   :  { %v257_v3 = vmax.f32 %v217_v2, 0.0 }
  0xaf   :  { %v273_v4 = vpack.c.bf16 %v257_v3, %v257_v3  ;;  %5344 = vmatmul.msk.bf16.vlgmr.msrb.gmra.mxu0 %vm409_vm0, %v6024_v1 }
  0xb1   :  { %v289_v5 = vunpack.c.l.bf16 %v273_v4 }
  0xb3   :  { %v305_v6 = vmul.f32 0.75, %v289_v5  ;;  %v321_v7 = vmul.f32 0.25, %v289_v5 }
  0xb4   :  { %v219_v8 = vpop.f32.mrf.mxu0 }
  0xb5   :  { %v335_v9 = vadd.f32 %v321_v7, %v305_v6  ;;  %v258_v10 = vmax.f32 %v219_v8, 0.0 }
  0xb7   :  { %v274_v11 = vpack.c.bf16 %v258_v10, %v258_v10  ;;  %v370_v12 = vpack.c.bf16 %v335_v9, %v335_v9 }
  0xb9   :  { %v290_v13 = vunpack.c.l.bf16 %v274_v11  ;;  %v6029_v14 = vsel %vm413_vm1, %v370_v12, 0 }
  0xba   :  { %441 = vmatpush.bf16.msra.mxu0 %v6029_v14 }
  0xbb   :  { %v306_v15 = vmul.f32 0.75, %v290_v13  ;;  %v322_v16 = vmul.f32 0.25, %v290_v13 }
  0xbc   :  { %v222_v17 = vpop.f32.mrf.mxu0 }
  0xbd   :  { %v259_v18 = vmax.f32 %v222_v17, 0.0  ;;  %v353_v19 = vadd.f32 %v322_v16, %v305_v6  ;;  %v336_v20 = vadd.f32 %v321_v7, %v306_v15 }
  0xbf   :  { %v275_v21 = vpack.c.bf16 %v259_v18, %v259_v18  ;;  %v371_v22 = vpack.c.bf16 %v353_v19, %v353_v19  ;;  %v372_v23 = vpack.c.bf16 %v336_v20, %v336_v20  ;;  %5345 = vmatmul.msk.bf16.vlgmr.msra.gmra.mxu0 %vm409_vm0, %v6024_v1 }
  0xc1   :  { %v291_v24 = vunpack.c.l.bf16 %v275_v21  ;;  %v6035_v25 = vsel %vm413_vm1, %v371_v22, 0  ;;  %v6038_v26 = vsel %vm413_vm1, %v372_v23, 0 }
  0xc2   :  { %458 = vmatpush.bf16.msrb.mxu0 %v6035_v25  ;;  %475 = vmatpush.bf16.msra.mxu1 %v6038_v26 }
  0xc3   :  { %v307_v27 = vmul.f32 0.75, %v291_v24  ;;  %v323_v28 = vmul.f32 0.25, %v291_v24 }
  0xc4   :  { %v224_v29 = vpop.f32.mrf.mxu0 }
  0xc5   :  { %v260_v30 = vmax.f32 %v224_v29, 0.0  ;;  %5347 = vmatmul.msk.bf16.vlgmr.msra.gmra.mxu1 %vm409_vm0, %v6024_v1  ;;  %v354_v31 = vadd.f32 %v323_v28, %v306_v15  ;;  %v337_v32 = vadd.f32 %v322_v16, %v307_v27 }
  0xc7   :  { %v276_v33 = vpack.c.bf16 %v260_v30, %v260_v30  ;;  %v373_v34 = vpack.c.bf16 %v354_v31, %v354_v31  ;;  %v374_v35 = vpack.c.bf16 %v337_v32, %v337_v32 }
  0xc9   :  { %v292_v36 = vunpack.c.l.bf16 %v276_v33  ;;  %v6045_v37 = vsel %vm413_vm1, %v373_v34, 0  ;;  %v6048_v38 = vsel %vm413_vm1, %v374_v35, 0 }
  0xca   :  { %492 = vmatpush.bf16.msra.mxu2 %v6045_v37  ;;  %509 = vmatpush.bf16.msra.mxu3 %v6048_v38 }
  0xcb   :  { %v308_v39 = vmul.f32 0.75, %v292_v36  ;;  %v324_v40 = vmul.f32 0.25, %v292_v36 }
  0xcc   :  { %v227_v41 = vpop.f32.mrf.mxu0 }
  0xcd   :  { %v261_v42 = vmax.f32 %v227_v41, 0.0  ;;  %5348 = vmatmul.msk.bf16.vlgmr.msra.gmra.mxu2 %vm409_vm0, %v6024_v1  ;;  %5349 = vmatmul.msk.bf16.vlgmr.msra.gmra.mxu3 %vm409_vm0, %v6024_v1  ;;  %v355_v43 = vadd.f32 %v324_v40, %v307_v27  ;;  %v338_v44 = vadd.f32 %v323_v28, %v308_v39 }
  0xcf   :  { %v277_v45 = vpack.c.bf16 %v261_v42, %v261_v42  ;;  %v375_v46 = vpack.c.bf16 %v355_v43, %v355_v43  ;;  %v376_v47 = vpack.c.bf16 %v338_v44, %v338_v44  ;;  %5346 = vmatmul.msk.bf16.vlgmr.msrb.gmra.mxu0 %vm409_vm0, %v6024_v1 }
  0xd1   :  { %v293_v48 = vunpack.c.l.bf16 %v277_v45  ;;  %v6059_v49 = vsel %vm413_vm1, %v375_v46, 0  ;;  %v6062_v50 = vsel %vm413_vm1, %v376_v47, 0 }
  0xd2   :  { %526 = vmatpush.bf16.msrb.mxu1 %v6059_v49  ;;  %543 = vmatpush.bf16.msrb.mxu2 %v6062_v50 }
  0xd3   :  { %v309_v51 = vmul.f32 0.75, %v293_v48  ;;  %v325_v52 = vmul.f32 0.25, %v293_v48 }
  0xd4   :  { %v229_v53 = vpop.f32.mrf.mxu0 }
  0xd5   :  { %v339_v54 = vadd.f32 %v324_v40, %v309_v51  ;;  %v262_v55 = vmax.f32 %v229_v53, 0.0  ;;  %5350 = vmatmul.msk.bf16.vlgmr.msrb.gmra.mxu1 %vm409_vm0, %v6024_v1  ;;  %v356_v56 = vadd.f32 %v325_v52, %v308_v39 }
  0xd7   :  { %v278_v57 = vpack.c.bf16 %v262_v55, %v262_v55  ;;  %v377_v58 = vpack.c.bf16 %v356_v56, %v356_v56  ;;  %v378_v59 = vpack.c.bf16 %v339_v54, %v339_v54 }
  0xd9   :  { %v294_v60 = vunpack.c.l.bf16 %v278_v57  ;;  %v6069_v61 = vsel %vm413_vm1, %v377_v58, 0  ;;  %v6072_v62 = vsel %vm413_vm1, %v378_v59, 0 }
  0xda   :  { %560 = vmatpush.bf16.msrb.mxu3 %v6069_v61  ;;  %577 = vmatpush.bf16.msra.mxu1 %v6072_v62 }
  0xdb   :  { %v310_v0 = vmul.f32 0.75, %v294_v60  ;;  %v326_v2 = vmul.f32 0.25, %v294_v60 }
  0xdc   :  { %v232_v3 = vpop.f32.mrf.mxu0 }
  0xdd   :  { %v263_v4 = vmax.f32 %v232_v3, 0.0  ;;  %5351 = vmatmul.msk.bf16.vlgmr.msrb.gmra.mxu2 %vm409_vm0, %v6024_v1  ;;  %5352 = vmatmul.msk.bf16.vlgmr.msrb.gmra.mxu3 %vm409_vm0, %v6024_v1  ;;  %v357_v5 = vadd.f32 %v326_v2, %v309_v51  ;;  %v340_v6 = vadd.f32 %v325_v52, %v310_v0 }
  0xdf   :  { %v279_v7 = vpack.c.bf16 %v263_v4, %v263_v4  ;;  %v379_v8 = vpack.c.bf16 %v357_v5, %v357_v5  ;;  %v380_v9 = vpack.c.bf16 %v340_v6, %v340_v6 }
  0xe1   :  { %v295_v10 = vunpack.c.l.bf16 %v279_v7  ;;  %v6081_v11 = vsel %vm413_vm1, %v379_v8, 0  ;;  %v6084_v12 = vsel %vm413_vm1, %v380_v9, 0 }
  0xe2   :  { %594 = vmatpush.bf16.msra.mxu2 %v6081_v11  ;;  %611 = vmatpush.bf16.msra.mxu3 %v6084_v12 }
  0xe3   :  { %v311_v13 = vmul.f32 0.75, %v295_v10  ;;  %v327_v15 = vmul.f32 0.25, %v295_v10 }
  0xe4   :  { %v234_v16 = vpop.f32.mrf.mxu0 }
  0xe5   :  { %v341_v17 = vadd.f32 %v326_v2, %v311_v13  ;;  %v358_v18 = vadd.f32 %v327_v15, %v310_v0  ;;  %v264_v19 = vmax.f32 %v234_v16, 0.0  ;;  %5353 = vmatmul.msk.bf16.vlgmr.msra.gmra.mxu1 %vm409_vm0, %v6024_v1 }
  0xe7   :  { %v280_v20 = vpack.c.bf16 %v264_v19, %v264_v19  ;;  %v381_v21 = vpack.c.bf16 %v358_v18, %v358_v18  ;;  %v382_v22 = vpack.c.bf16 %v341_v17, %v341_v17 }
  0xe9   :  { %v296_v23 = vunpack.c.l.bf16 %v280_v20  ;;  %v6091_v24 = vsel %vm413_vm1, %v381_v21, 0  ;;  %v6094_v27 = vsel %vm413_vm1, %v382_v22, 0 }
  0xea   :  { %628 = vmatpush.bf16.msrb.mxu1 %v6091_v24  ;;  %645 = vmatpush.bf16.msrb.mxu2 %v6094_v27 }
  0xeb   :  { %v312_v28 = vmul.f32 0.75, %v296_v23  ;;  %v351_v29 = vmul.f32 0.25, %v296_v23 }
  0xec   :  { %v237_v30 = vpop.f32.mrf.mxu0 }
  0xed   :  { %v265_v31 = vmax.f32 %v237_v30, 0.0  ;;  %5354 = vmatmul.msk.bf16.vlgmr.msra.gmra.mxu2 %vm409_vm0, %v6024_v1  ;;  %5355 = vmatmul.msk.bf16.vlgmr.msra.gmra.mxu3 %vm409_vm0, %v6024_v1  ;;  %v359_v32 = vadd.f32 %v351_v29, %v311_v13  ;;  %v342_v33 = vadd.f32 %v327_v15, %v312_v28  ;;  %v360_v34 = vadd.f32 %v351_v29, %v312_v28 }
  0xef   :  { %v281_v35 = vpack.c.bf16 %v265_v31, %v265_v31  ;;  %v383_v36 = vpack.c.bf16 %v359_v32, %v359_v32  ;;  %v384_v39 = vpack.c.bf16 %v342_v33, %v342_v33  ;;  %v385_v40 = vpack.c.bf16 %v360_v34, %v360_v34 }
  0xf1   :  { %v297_v41 = vunpack.c.l.bf16 %v281_v35  ;;  %v6103_v42 = vsel %vm413_vm1, %v383_v36, 0  ;;  %v6106_v43 = vsel %vm413_vm1, %v384_v39, 0  ;;  %v6109_v44 = vsel %vm413_vm1, %v385_v40, 0 }
  0xf2   :  { %662 = vmatpush.bf16.msrb.mxu3 %v6103_v42  ;;  %679 = vmatpush.bf16.msra.mxu1 %v6106_v43 }
  0xf3   :  { %v313_v45 = vmul.f32 0.75, %v297_v41  ;;  %v328_v46 = vmul.f32 0.25, %v297_v41  ;;  %696 = vmatpush.bf16.msra.mxu2 %v6109_v44 }
  0xf4   :  { %v239_v47 = vpop.f32.mrf.mxu0 }
  0xf5   :  { %v343_v48 = vadd.f32 %v328_v46, %v313_v45  ;;  %v266_v51 = vmax.f32 %v239_v47, 0.0  ;;  %5356 = vmatmul.msk.bf16.vlgmr.msrb.gmra.mxu1 %vm409_vm0, %v6024_v1 }
  0xf7   :  { %v282_v52 = vpack.c.bf16 %v266_v51, %v266_v51  ;;  %v386_v53 = vpack.c.bf16 %v343_v48, %v343_v48 }
  0xf9   :  { %v298_v54 = vunpack.c.l.bf16 %v282_v52  ;;  %v6117_v55 = vsel %vm413_vm1, %v386_v53, 0 }
  0xfa   :  { %713 = vmatpush.bf16.msra.mxu3 %v6117_v55 }
  0xfb   :  { %v314_v56 = vmul.f32 0.75, %v298_v54  ;;  %v329_v57 = vmul.f32 0.25, %v298_v54 }
  0xfc   :  { %v242_v58 = vpop.f32.mrf.mxu0 }
  0xfd   :  { %v267_v59 = vmax.f32 %v242_v58, 0.0  ;;  %5357 = vmatmul.msk.bf16.vlgmr.msrb.gmra.mxu2 %vm409_vm0, %v6024_v1  ;;  %5358 = vmatmul.msk.bf16.vlgmr.msrb.gmra.mxu3 %vm409_vm0, %v6024_v1  ;;  %v361_v60 = vadd.f32 %v329_v57, %v313_v45  ;;  %v344_v0 = vadd.f32 %v328_v46, %v314_v56 }
  0xff   :  { %v283_v2 = vpack.c.bf16 %v267_v59, %v267_v59  ;;  %v387_v3 = vpack.c.bf16 %v361_v60, %v361_v60  ;;  %v388_v4 = vpack.c.bf16 %v344_v0, %v344_v0 }
 0x101   :  { %v299_v5 = vunpack.c.l.bf16 %v283_v2  ;;  %v6125_v6 = vsel %vm413_vm1, %v387_v3, 0  ;;  %v6128_v7 = vsel %vm413_vm1, %v388_v4, 0 }
 0x102   :  { %730 = vmatpush.bf16.msrb.mxu1 %v6125_v6  ;;  %747 = vmatpush.bf16.msrb.mxu2 %v6128_v7 }
 0x103   :  { %v315_v8 = vmul.f32 0.75, %v299_v5  ;;  %v330_v9 = vmul.f32 0.25, %v299_v5 }
 0x104   :  { %v244_v10 = vpop.f32.mrf.mxu0 }
 0x105   :  { %v345_v13 = vadd.f32 %v329_v57, %v315_v8  ;;  %v362_v15 = vadd.f32 %v330_v9, %v314_v56  ;;  %v268_v16 = vmax.f32 %v244_v10, 0.0  ;;  %5359 = vmatmul.msk.bf16.vlgmr.msra.gmra.mxu1 %vm409_vm0, %v6024_v1 }
 0x107   :  { %v284_v17 = vpack.c.bf16 %v268_v16, %v268_v16  ;;  %v389_v18 = vpack.c.bf16 %v362_v15, %v362_v15  ;;  %v390_v19 = vpack.c.bf16 %v345_v13, %v345_v13 }
 0x109   :  { %v300_v20 = vunpack.c.l.bf16 %v284_v17  ;;  %v6135_v21 = vsel %vm413_vm1, %v389_v18, 0  ;;  %v6138_v22 = vsel %vm413_vm1, %v390_v19, 0 }
 0x10a   :  { %764 = vmatpush.bf16.msrb.mxu3 %v6135_v21  ;;  %781 = vmatpush.bf16.msra.mxu1 %v6138_v22 }
 0x10b   :  { %v316_v23 = vmul.f32 0.75, %v300_v20  ;;  %v331_v28 = vmul.f32 0.25, %v300_v20 }
 0x10c   :  { %v247_v29 = vpop.f32.mrf.mxu0 }
 0x10d   :  { %v269_v30 = vmax.f32 %v247_v29, 0.0  ;;  %5360 = vmatmul.msk.bf16.vlgmr.msra.gmra.mxu2 %vm409_vm0, %v6024_v1  ;;  %5361 = vmatmul.msk.bf16.vlgmr.msra.gmra.mxu3 %vm409_vm0, %v6024_v1  ;;  %v363_v31 = vadd.f32 %v331_v28, %v315_v8  ;;  %v346_v32 = vadd.f32 %v330_v9, %v316_v23 }
 0x10f   :  { %v285_v33 = vpack.c.bf16 %v269_v30, %v269_v30  ;;  %v391_v34 = vpack.c.bf16 %v363_v31, %v363_v31  ;;  %v392_v35 = vpack.c.bf16 %v346_v32, %v346_v32 }
 0x111   :  { %v301_v36 = vunpack.c.l.bf16 %v285_v33  ;;  %v6147_v39 = vsel %vm413_vm1, %v391_v34, 0  ;;  %v6150_v40 = vsel %vm413_vm1, %v392_v35, 0 }
 0x112   :  { %798 = vmatpush.bf16.msra.mxu2 %v6147_v39  ;;  %815 = vmatpush.bf16.msra.mxu3 %v6150_v40 }
 0x113   :  { %v317_v41 = vmul.f32 0.75, %v301_v36  ;;  %v332_v45 = vmul.f32 0.25, %v301_v36 }
 0x114   :  { %v249_v46 = vpop.f32.mrf.mxu0 }
 0x115   :  { %v347_v47 = vadd.f32 %v331_v28, %v317_v41  ;;  %v364_v48 = vadd.f32 %v332_v45, %v316_v23  ;;  %v270_v51 = vmax.f32 %v249_v46, 0.0  ;;  %5362 = vmatmul.msk.bf16.vlgmr.msrb.gmra.mxu1 %vm409_vm0, %v6024_v1 }
 0x117   :  { %v286_v52 = vpack.c.bf16 %v270_v51, %v270_v51  ;;  %v393_v53 = vpack.c.bf16 %v364_v48, %v364_v48  ;;  %v394_v54 = vpack.c.bf16 %v347_v47, %v347_v47 }
 0x119   :  { %v302_v56 = vunpack.c.l.bf16 %v286_v52  ;;  %v6157_v57 = vsel %vm413_vm1, %v393_v53, 0  ;;  %v6161_v60 = vsel %vm413_vm1, %v394_v54, 0  ;;  %v6216_v54 = vld [vmem:[%s8626_s2 + $0x8] sm:$0xff] }
 0x11a   :  { %832 = vmatpush.bf16.msrb.mxu1 %v6157_v57 }
 0x11b   :  { %v318_v58 = vmul.f32 0.75, %v302_v56  ;;  %v333_v59 = vmul.f32 0.25, %v302_v56 }
 0x11c   :  { %v252_v0 = vpop.f32.mrf.mxu0 }
 0x11d   :  { %v271_v2 = vmax.f32 %v252_v0, 0.0  ;;  %5363 = vmatmul.msk.bf16.vlgmr.msrb.gmra.mxu2 %vm409_vm0, %v6024_v1  ;;  %5364 = vmatmul.msk.bf16.vlgmr.msrb.gmra.mxu3 %vm409_vm0, %v6024_v1  ;;  %v365_v3 = vadd.f32 %v333_v59, %v317_v41  ;;  %v348_v4 = vadd.f32 %v332_v45, %v318_v58 }
 0x11e   :  { %849 = vmatpush.bf16.msrb.mxu2 %v6161_v60 }
 0x11f   :  { %v287_v5 = vpack.c.bf16 %v271_v2, %v271_v2  ;;  %v395_v8 = vpack.c.bf16 %v365_v3, %v365_v3  ;;  %v396_v9 = vpack.c.bf16 %v348_v4, %v348_v4 }
 0x121   :  { %v303_v10 = vunpack.c.l.bf16 %v287_v5  ;;  %v6169_v13 = vsel %vm413_vm1, %v395_v8, 0  ;;  %v6173_v17 = vsel %vm413_vm1, %v396_v9, 0 }
 0x122   :  { %866 = vmatpush.bf16.msrb.mxu3 %v6169_v13 }
 0x123   :  { %v319_v15 = vmul.f32 0.75, %v303_v10  ;;  %v334_v16 = vmul.f32 0.25, %v303_v10 }
 0x124   :  { %v254_v18 = vpop.f32.mrf.mxu0 }
 0x125   :  { %v349_v19 = vadd.f32 %v333_v59, %v319_v15  ;;  %v366_v20 = vadd.f32 %v334_v16, %v318_v58  ;;  %v272_v23 = vmax.f32 %v254_v18, 0.0  ;;  %5365 = vmatmul.msk.bf16.vlgmr.msra.gmra.mxu1 %vm409_vm0, %v6024_v1 }
 0x126   :  { %883 = vmatpush.bf16.msra.mxu1 %v6173_v17 }
 0x127   :  { %v288_v28 = vpack.c.bf16 %v272_v23, %v272_v23  ;;  %v397_v29 = vpack.c.bf16 %v366_v20, %v366_v20  ;;  %v398_v30 = vpack.c.bf16 %v349_v19, %v349_v19 }
 0x129   :  { %v304_v31 = vunpack.c.l.bf16 %v288_v28  ;;  %v6179_v34 = vsel %vm413_vm1, %v397_v29, 0  ;;  %v6182_v35 = vsel %vm413_vm1, %v398_v30, 0 }
 0x12b   :  { %v320_v32 = vmul.f32 0.75, %v304_v31  ;;  %v352_v33 = vmul.f32 0.25, %v304_v31 }
 0x12d   :  { %5366 = vmatmul.msk.bf16.vlgmr.msra.gmra.mxu2 %vm409_vm0, %v6024_v1  ;;  %5367 = vmatmul.msk.bf16.vlgmr.msra.gmra.mxu3 %vm409_vm0, %v6024_v1  ;;  %v367_v36 = vadd.f32 %v352_v33, %v319_v15  ;;  %v350_v41 = vadd.f32 %v334_v16, %v320_v32  ;;  %v368_v51 = vadd.f32 %v352_v33, %v320_v32 }
 0x12e   :  { %900 = vmatpush.bf16.msra.mxu2 %v6179_v34  ;;  %917 = vmatpush.bf16.msra.mxu3 %v6182_v35 }
 0x12f   :  { %v399_v45 = vpack.c.bf16 %v367_v36, %v367_v36  ;;  %v400_v46 = vpack.c.bf16 %v350_v41, %v350_v41  ;;  %v401_v52 = vpack.c.bf16 %v368_v51, %v368_v51 }
 0x131   :  { %v6191_v47 = vsel %vm413_vm1, %v399_v45, 0  ;;  %v6196_v48 = vsel %vm413_vm1, %v400_v46, 0  ;;  %v6205_v53 = vsel %vm413_vm1, %v401_v52, 0 }
 0x132   :  { %934 = vmatpush.bf16.msra.mxu0 %v6191_v47 }
 0x135   :  { %5368 = vmatmul.msk.bf16.vlgmr.msrb.gmra.mxu1 %vm409_vm0, %v6024_v1  ;;  %5374 = vmatmul.msk.bf16.vlgmr.msra.gmra.mxu0 %vm409_vm0, %v6024_v1 }
 0x136   :  { %1073 = vmatpush.bf16.msrb.mxu0 %v6029_v14  ;;  %951 = vmatpush.bf16.msrb.mxu1 %v6196_v48 }
 0x13a   :  { %1129 = vmatpush.bf16.msra.mxu0 %v6048_v38 }
 0x13d   :  { %5369 = vmatmul.msk.bf16.vlgmr.msrb.gmra.mxu2 %vm409_vm0, %v6024_v1  ;;  %5370 = vmatmul.msk.bf16.vlgmr.msrb.gmra.mxu3 %vm409_vm0, %v6024_v1 }
 0x13e   :  { %968 = vmatpush.bf16.msrb.mxu2 %v6205_v53  ;;  %1059 = vmatpush.bf16.msrb.mxu3 %v8631_v63 }
 0x142   :  { %v477_v56 = vpop.f32.mrf.mxu1 }
 0x143   :  { %v981_v58 = vpack.c.bf16 %v477_v56, %v477_v56 }
 0x145   :  { %5371 = vmatmul.msk.bf16.vlgmr.msra.gmra.mxu1 %vm409_vm0, %v6024_v1  ;;  %5384 = vmatmul.msk.bf16.vlgmr.msrb.gmra.mxu0 %vm409_vm0, %v6216_v54  ;;  %v2187_v0 = vunpack.c.l.b16 %v981_v58 }
 0x146   :  { %1087 = vmatpush.bf16.msra.mxu1 %v6035_v25  ;;  %1185 = vmatpush.bf16.msrb.mxu0 %v6072_v62 }
 0x14a   :  { %v479_v59 = vpop.f32.mrf.mxu1 }
 0x14b   :  { %v982_v2 = vpack.c.bf16 %v479_v59, %v479_v59 }
 0x14d   :  { %v2188_v3 = vunpack.c.l.b16 %v982_v2  ;;  %5372 = vmatmul.msk.bf16.vlgmr.msra.gmra.mxu2 %vm409_vm0, %v6024_v1  ;;  %5373 = vmatmul.msk.bf16.vlgmr.msra.gmra.mxu3 %vm409_vm0, %v6024_v1 }
 0x14e   :  { %1101 = vmatpush.bf16.msra.mxu2 %v6038_v26  ;;  %1115 = vmatpush.bf16.msra.mxu3 %v6045_v37 }
 0x14f   :  { %v6230_v4 = vpack.c.b16 %v2188_v3, %v2187_v0 }
 0x150   :  { %v494_v5 = vpop.f32.mrf.mxu2  ;;  %v511_v8 = vpop.f32.mrf.mxu3 }
 0x151   :  { %8811 = vst [vmem:[#allocation12_spill] sm:$0xff] %v6230_v4  ;;  %v983_v10 = vpack.c.bf16 %v494_v5, %v494_v5  ;;  %v985_v15 = vpack.c.bf16 %v511_v8, %v511_v8 }
 0x152   :  { %v528_v9 = vpop.f32.mrf.mxu1 }
 0x153   :  { %v987_v16 = vpack.c.bf16 %v528_v9, %v528_v9  ;;  %v2189_v28 = vunpack.c.l.b16 %v983_v10  ;;  %v2191_v29 = vunpack.c.l.b16 %v985_v15 }
 0x155   :  { %5375 = vmatmul.msk.bf16.vlgmr.msrb.gmra.mxu1 %vm409_vm0, %v6024_v1  ;;  %5388 = vmatmul.msk.bf16.vlgmr.msra.gmra.mxu0 %vm409_vm0, %v6216_v54  ;;  %v2193_v31 = vunpack.c.l.b16 %v987_v16 }
 0x156   :  { %1143 = vmatpush.bf16.msrb.mxu1 %v6059_v49  ;;  %1241 = vmatpush.bf16.msra.mxu0 %v6094_v27 }
 0x158   :  { %v496_v18 = vpop.f32.mrf.mxu2  ;;  %v513_v19 = vpop.f32.mrf.mxu3 }
 0x159   :  { %v984_v20 = vpack.c.bf16 %v496_v18, %v496_v18  ;;  %v986_v23 = vpack.c.bf16 %v513_v19, %v513_v19 }
 0x15a   :  { %v530_v30 = vpop.f32.mrf.mxu1 }
 0x15b   :  { %v2190_v32 = vunpack.c.l.b16 %v984_v20  ;;  %v2192_v33 = vunpack.c.l.b16 %v986_v23  ;;  %v988_v36 = vpack.c.bf16 %v530_v30, %v530_v30 }
 0x15d   :  { %v6238_v41 = vpack.c.b16 %v2192_v33, %v2191_v29  ;;  %v2194_v45 = vunpack.c.l.b16 %v988_v36  ;;  %5376 = vmatmul.msk.bf16.vlgmr.msrb.gmra.mxu2 %vm409_vm0, %v6024_v1  ;;  %5383 = vmatmul.msk.bf16.vlgmr.msrb.gmra.mxu3 %vm409_vm0, %v6216_v54  ;;  %v6244_v46 = vpack.c.b16 %v2190_v32, %v2189_v28  ;;  %v6272_v36 = vpop.f32.mrf.mxu0 }
 0x15e   :  { %1157 = vmatpush.bf16.msrb.mxu2 %v6062_v50  ;;  %1171 = vmatpush.bf16.msrb.mxu3 %v6069_v61 }
 0x15f   :  { %8812 = vst [vmem:[#allocation13_spill] sm:$0xff] %v6238_v41  ;;  %v6248_v51 = vpack.c.b16 %v2194_v45, %v2193_v31 }
 0x160   :  { %8813 = vst [vmem:[#allocation14_spill] sm:$0xff] %v6244_v46  ;;  %v545_v52 = vpop.f32.mrf.mxu2  ;;  %v562_v56 = vpop.f32.mrf.mxu3 }
 0x161   :  { %8814 = vst [vmem:[#allocation15_spill] sm:$0xff] %v6248_v51  ;;  %v989_v1 = vpack.c.bf16 %v545_v52, %v545_v52  ;;  %v991_v59 = vpack.c.bf16 %v562_v56, %v562_v56 }
 0x162   :  { %v579_v58 = vpop.f32.mrf.mxu1 }
 0x163   :  { %v993_v0 = vpack.c.bf16 %v579_v58, %v579_v58  ;;  %v2195_v9 = vunpack.c.l.b16 %v989_v1  ;;  %v2197_v10 = vunpack.c.l.b16 %v991_v59 }
 0x165   :  { %5385 = vmatmul.msk.bf16.vlgmr.msra.gmra.mxu1 %vm409_vm0, %v6216_v54  ;;  %5392 = vmatmul.msk.bf16.vlgmr.msrb.gmra.mxu0 %vm409_vm0, %v6216_v54  ;;  %v2199_v16 = vunpack.c.l.b16 %v993_v0 }
 0x166   :  { %1199 = vmatpush.bf16.msra.mxu1 %v6081_v11  ;;  %1297 = vmatpush.bf16.msrb.mxu0 %v6117_v55 }
 0x168   :  { %v547_v2 = vpop.f32.mrf.mxu2  ;;  %v564_v3 = vpop.f32.mrf.mxu3 }
 0x169   :  { %v990_v5 = vpack.c.bf16 %v547_v2, %v547_v2  ;;  %v992_v8 = vpack.c.bf16 %v564_v3, %v564_v3 }
 0x16a   :  { %v581_v15 = vpop.f32.mrf.mxu1 }
 0x16b   :  { %v2196_v18 = vunpack.c.l.b16 %v990_v5  ;;  %v2198_v19 = vunpack.c.l.b16 %v992_v8  ;;  %v994_v20 = vpack.c.bf16 %v581_v15, %v581_v15 }
 0x16d   :  { %v2200_v23 = vunpack.c.l.b16 %v994_v20  ;;  %5386 = vmatmul.msk.bf16.vlgmr.msra.gmra.mxu2 %vm409_vm0, %v6216_v54  ;;  %5387 = vmatmul.msk.bf16.vlgmr.msra.gmra.mxu3 %vm409_vm0, %v6216_v54  ;;  %v6260_v28 = vpack.c.b16 %v2196_v18, %v2195_v9  ;;  %v6262_v29 = vpack.c.b16 %v2198_v19, %v2197_v10  ;;  %v6286_v20 = vpop.f32.mrf.mxu0 }
 0x16e   :  { %1213 = vmatpush.bf16.msra.mxu2 %v6084_v12  ;;  %1227 = vmatpush.bf16.msra.mxu3 %v6091_v24 }
 0x16f   :  { %8815 = vst [vmem:[#allocation16_spill] sm:$0xff] %v6260_v28  ;;  %v6266_v30 = vpack.c.b16 %v2200_v23, %v2199_v16 }
 0x170   :  { %8816 = vst [vmem:[#allocation17_spill] sm:$0xff] %v6262_v29  ;;  %v596_v31 = vpop.f32.mrf.mxu2  ;;  %v613_v32 = vpop.f32.mrf.mxu3 }
 0x171   :  { %8817 = vst [vmem:[#allocation18_spill] sm:$0xff] %v6266_v30  ;;  %v995_v45 = vpack.c.bf16 %v596_v31, %v596_v31  ;;  %v997_v52 = vpack.c.bf16 %v613_v32, %v613_v32 }
 0x172   :  { %v630_v33 = vpop.f32.mrf.mxu1 }
 0x173   :  { %v999_v56 = vpack.c.bf16 %v630_v33, %v630_v33  ;;  %v2201_v2 = vunpack.c.l.b16 %v995_v45  ;;  %v2203_v3 = vunpack.c.l.b16 %v997_v52 }
 0x175   :  { %5389 = vmatmul.msk.bf16.vlgmr.msrb.gmra.mxu1 %vm409_vm0, %v6216_v54  ;;  %5396 = vmatmul.msk.bf16.vlgmr.msra.gmra.mxu0 %vm409_vm0, %v6216_v54  ;;  %v2205_v8 = vunpack.c.l.b16 %v999_v56 }
 0x176   :  { %1255 = vmatpush.bf16.msrb.mxu1 %v6103_v42  ;;  %1353 = vmatpush.bf16.msra.mxu0 %v6138_v22 }
 0x178   :  { %v598_v58 = vpop.f32.mrf.mxu2  ;;  %v615_v1 = vpop.f32.mrf.mxu3 }
 0x179   :  { %v996_v59 = vpack.c.bf16 %v598_v58, %v598_v58  ;;  %v998_v0 = vpack.c.bf16 %v615_v1, %v615_v1 }
 0x17a   :  { %v632_v5 = vpop.f32.mrf.mxu1 }
 0x17b   :  { %v2202_v9 = vunpack.c.l.b16 %v996_v59  ;;  %v2204_v10 = vunpack.c.l.b16 %v998_v0  ;;  %v1000_v15 = vpack.c.bf16 %v632_v5, %v632_v5 }
 0x17d   :  { %v2206_v16 = vunpack.c.l.b16 %v1000_v15  ;;  %5390 = vmatmul.msk.bf16.vlgmr.msrb.gmra.mxu2 %vm409_vm0, %v6216_v54  ;;  %5391 = vmatmul.msk.bf16.vlgmr.msrb.gmra.mxu3 %vm409_vm0, %v6216_v54  ;;  %v6280_v18 = vpack.c.b16 %v2202_v9, %v2201_v2  ;;  %v6282_v19 = vpack.c.b16 %v2204_v10, %v2203_v3  ;;  %v6296_v2 = vpop.f32.mrf.mxu0 }
 0x17e   :  { %1269 = vmatpush.bf16.msrb.mxu2 %v6106_v43  ;;  %1283 = vmatpush.bf16.msrb.mxu3 %v6109_v44 }
 0x17f   :  { %8818 = vst [vmem:[#allocation19_spill] sm:$0xff] %v6280_v18  ;;  %v6288_v23 = vpack.c.b16 %v2206_v16, %v2205_v8 }
 0x180   :  { %8819 = vst [vmem:[#allocation20_spill] sm:$0xff] %v6282_v19  ;;  %v647_v31 = vpop.f32.mrf.mxu2  ;;  %v664_v32 = vpop.f32.mrf.mxu3 }
 0x181   :  { %8820 = vst [vmem:[#allocation21_spill] sm:$0xff] %v6288_v23  ;;  %v1001_v45 = vpack.c.bf16 %v647_v31, %v647_v31  ;;  %v1003_v52 = vpack.c.bf16 %v664_v32, %v664_v32 }
 0x182   :  { %v681_v33 = vpop.f32.mrf.mxu1 }
 0x183   :  { %v1005_v56 = vpack.c.bf16 %v681_v33, %v681_v33  ;;  %v2207_v3 = vunpack.c.l.b16 %v1001_v45  ;;  %v2209_v5 = vunpack.c.l.b16 %v1003_v52 }
 0x185   :  { %5393 = vmatmul.msk.bf16.vlgmr.msra.gmra.mxu1 %vm409_vm0, %v6216_v54  ;;  %5400 = vmatmul.msk.bf16.vlgmr.msrb.gmra.mxu0 %vm409_vm0, %v6216_v54  ;;  %v2211_v9 = vunpack.c.l.b16 %v1005_v56 }
 0x186   :  { %1311 = vmatpush.bf16.msra.mxu1 %v6125_v6  ;;  %1409 = vmatpush.bf16.msrb.mxu0 %v6161_v60 }
 0x188   :  { %v649_v58 = vpop.f32.mrf.mxu2  ;;  %v666_v1 = vpop.f32.mrf.mxu3 }
 0x189   :  { %v1002_v59 = vpack.c.bf16 %v649_v58, %v649_v58  ;;  %v1004_v0 = vpack.c.bf16 %v666_v1, %v666_v1  ;;  %v6310_v1 = vpop.f32.mrf.mxu0 }
 0x18a   :  { %v683_v8 = vpop.f32.mrf.mxu1 }
 0x18b   :  { %v2208_v10 = vunpack.c.l.b16 %v1002_v59  ;;  %v2210_v15 = vunpack.c.l.b16 %v1004_v0  ;;  %v1006_v16 = vpack.c.bf16 %v683_v8, %v683_v8 }
 0x18d   :  { %v6298_v31 = vpack.c.b16 %v2210_v15, %v2209_v5  ;;  %v2212_v32 = vunpack.c.l.b16 %v1006_v16  ;;  %5394 = vmatmul.msk.bf16.vlgmr.msra.gmra.mxu2 %vm409_vm0, %v6216_v54  ;;  %5395 = vmatmul.msk.bf16.vlgmr.msra.gmra.mxu3 %vm409_vm0, %v6216_v54  ;;  %v6304_v33 = vpack.c.b16 %v2208_v10, %v2207_v3 }
 0x18e   :  { %1325 = vmatpush.bf16.msra.mxu2 %v6128_v7  ;;  %1339 = vmatpush.bf16.msra.mxu3 %v6135_v21 }
 0x18f   :  { %8821 = vst [vmem:[#allocation22_spill] sm:$0xff] %v6298_v31  ;;  %v6308_v45 = vpack.c.b16 %v2212_v32, %v2211_v9 }
 0x190   :  { %8822 = vst [vmem:[#allocation23_spill] sm:$0xff] %v6304_v33  ;;  %v698_v52 = vpop.f32.mrf.mxu2  ;;  %v715_v56 = vpop.f32.mrf.mxu3 }
 0x191   :  { %8823 = vst [vmem:[#allocation24_spill] sm:$0xff] %v6308_v45  ;;  %v1007_v59 = vpack.c.bf16 %v698_v52, %v698_v52  ;;  %v1009_v0 = vpack.c.bf16 %v715_v56, %v715_v56  ;;  %v6322_v52 = vpop.f32.mrf.mxu0 }
 0x192   :  { %v732_v58 = vpop.f32.mrf.mxu1 }
 0x193   :  { %v1011_v3 = vpack.c.bf16 %v732_v58, %v732_v58  ;;  %v2681_v15 = vunpack.c.l.b16 %v1007_v59  ;;  %v2213_v16 = vunpack.c.l.b16 %v1009_v0 }
 0x195   :  { %5397 = vmatmul.msk.bf16.vlgmr.msrb.gmra.mxu1 %vm409_vm0, %v6216_v54  ;;  %5404 = vmatmul.msk.bf16.vlgmr.msra.gmra.mxu0 %vm409_vm0, %v6216_v54  ;;  %v2215_v63 = vunpack.c.l.b16 %v1011_v3 }
 0x196   :  { %1367 = vmatpush.bf16.msrb.mxu1 %v6147_v39  ;;  %1465 = vmatpush.bf16.msra.mxu0 %v6182_v35 }
 0x198   :  { %v700_v5 = vpop.f32.mrf.mxu2  ;;  %v717_v8 = vpop.f32.mrf.mxu3 }
 0x199   :  { %v1008_v9 = vpack.c.bf16 %v700_v5, %v700_v5  ;;  %v1010_v10 = vpack.c.bf16 %v717_v8, %v717_v8 }
 0x19a   :  { %v734_v32 = vpop.f32.mrf.mxu1 }
 0x19b   :  { %v2682_v33 = vunpack.c.l.b16 %v1008_v9  ;;  %v2214_v23 = vunpack.c.l.b16 %v1010_v10  ;;  %v1012_v19 = vpack.c.bf16 %v734_v32, %v734_v32  ;;  %v6338_v9 = vpop.f32.mrf.mxu0 }
 0x19d   :  { %v2216_v18 = vunpack.c.l.b16 %v1012_v19  ;;  %5398 = vmatmul.msk.bf16.vlgmr.msrb.gmra.mxu2 %vm409_vm0, %v6216_v54  ;;  %5399 = vmatmul.msk.bf16.vlgmr.msrb.gmra.mxu3 %vm409_vm0, %v6216_v54  ;;  %v6324_v56 = vpack.c.b16 %v2214_v23, %v2213_v16  ;;  %v6326_v58 = vpack.c.b16 %v2682_v33, %v2681_v15  ;;  %v8827_v33 = vmov 0.0|0.0  }
 0x19e   :  { %1381 = vmatpush.bf16.msrb.mxu2 %v6150_v40  ;;  %1395 = vmatpush.bf16.msrb.mxu3 %v6157_v57 }
 0x19f   :  { %8824 = vst [vmem:[#allocation25_spill] sm:$0xff] %v6324_v56  ;;  %v6330_v59 = vpack.c.b16 %v2216_v18, %v2215_v63 }
 0x1a0   :  { %8825 = vst [vmem:[#allocation26_spill] sm:$0xff] %v6326_v58  ;;  %v749_v0 = vpop.f32.mrf.mxu2  ;;  %v766_v19 = vpop.f32.mrf.mxu3 }
 0x1a1   :  { %8826 = vst [vmem:[#allocation27_spill] sm:$0xff] %v6330_v59  ;;  %v1013_v5 = vpack.c.bf16 %v749_v0, %v749_v0  ;;  %v1015_v23 = vpack.c.bf16 %v766_v19, %v766_v19 }
 0x1a2   :  { %v783_v3 = vpop.f32.mrf.mxu1 }
 0x1a3   :  { %v1017_v8 = vpack.c.bf16 %v783_v3, %v783_v3  ;;  %v2217_v16 = vunpack.c.l.b16 %v1013_v5  ;;  %v2219_v32 = vunpack.c.l.b16 %v1015_v23 }
 0x1a5   :  { %5401 = vmatmul.msk.bf16.vlgmr.msra.gmra.mxu1 %vm409_vm0, %v6216_v54  ;;  %5408 = vmatmul.msk.bf16.vlgmr.msrb.gmra.mxu0 %vm409_vm0, %v6216_v54  ;;  %v2221_v59 = vunpack.c.l.b16 %v1017_v8 }
 0x1a6   :  { %1423 = vmatpush.bf16.msra.mxu1 %v6169_v13  ;;  %1598 = vmatpush.bf16.msrb.mxu0 %v8827_v33 }
 0x1a8   :  { %v751_v63 = vpop.f32.mrf.mxu2  ;;  %v768_v18 = vpop.f32.mrf.mxu3 }
 0x1a9   :  { %v1014_v10 = vpack.c.bf16 %v751_v63, %v751_v63  ;;  %v1016_v15 = vpack.c.bf16 %v768_v18, %v768_v18 }
 0x1aa   :  { %v785_v58 = vpop.f32.mrf.mxu1 }
 0x1ab   :  { %v2218_v30 = vunpack.c.l.b16 %v1014_v10  ;;  %v2220_v56 = vunpack.c.l.b16 %v1016_v15  ;;  %v1018_v29 = vpack.c.bf16 %v785_v58, %v785_v58 }
 0x1ad   :  { %v2222_v0 = vunpack.c.l.b16 %v1018_v29  ;;  %5402 = vmatmul.msk.bf16.vlgmr.msra.gmra.mxu2 %vm409_vm0, %v6216_v54  ;;  %5403 = vmatmul.msk.bf16.vlgmr.msra.gmra.mxu3 %vm409_vm0, %v6216_v54  ;;  %v6344_v19 = vpack.c.b16 %v2218_v30, %v2217_v16  ;;  %v6346_v3 = vpack.c.b16 %v2220_v56, %v2219_v32 }
 0x1ae   :  { %1437 = vmatpush.bf16.msra.mxu2 %v6173_v17  ;;  %1451 = vmatpush.bf16.msra.mxu3 %v6179_v34 }
 0x1af   :  { %8828 = vst [vmem:[#allocation28_spill] sm:$0xff] %v6344_v19  ;;  %v6350_v5 = vpack.c.b16 %v2222_v0, %v2221_v59 }
 0x1b0   :  { %8829 = vst [vmem:[#allocation29_spill] sm:$0xff] %v6346_v3  ;;  %v800_v23 = vpop.f32.mrf.mxu2  ;;  %v817_v33 = vpop.f32.mrf.mxu3 }
 0x1b1   :  { %8830 = vst [vmem:[#allocation30_spill] sm:$0xff] %v6350_v5  ;;  %v1019_v30 = vpack.c.bf16 %v800_v23, %v800_v23  ;;  %v1021_v56 = vpack.c.bf16 %v817_v33, %v817_v33 }
 0x1b2   :  { %v834_v58 = vpop.f32.mrf.mxu1  ;;  %v6352_v29 = vpop.f32.mrf.mxu0 }
 0x1b3   :  { %v1023_v8 = vpack.c.bf16 %v834_v58, %v834_v58  ;;  %v2223_v15 = vunpack.c.l.b16 %v1019_v30  ;;  %v2225_v16 = vunpack.c.l.b16 %v1021_v56 }
 0x1b5   :  { %5405 = vmatmul.msk.bf16.vlgmr.msrb.gmra.mxu1 %vm409_vm0, %v6216_v54  ;;  %5412 = vmatmul.msk.bf16.vlgmr.msra.gmra.mxu0 %vm409_vm0, %v6216_v54  ;;  %v2227_v5 = vunpack.c.l.b16 %v1023_v8 }
 0x1b6   :  { %1479 = vmatpush.bf16.msrb.mxu1 %v6191_v47  ;;  %1654 = vmatpush.bf16.msra.mxu0 %v6045_v37 }
 0x1b8   :  { %v802_v59 = vpop.f32.mrf.mxu2  ;;  %v819_v63 = vpop.f32.mrf.mxu3 }
 0x1b9   :  { %v1020_v18 = vpack.c.bf16 %v802_v59, %v802_v59  ;;  %v1022_v10 = vpack.c.bf16 %v819_v63, %v819_v63 }
 0x1ba   :  { %v836_v32 = vpop.f32.mrf.mxu1  ;;  %v6360_v0 = vpop.f32.mrf.mxu0 }
 0x1bb   :  { %v2224_v3 = vunpack.c.l.b16 %v1020_v18  ;;  %v2226_v19 = vunpack.c.l.b16 %v1022_v10  ;;  %v1024_v46 = vpack.c.bf16 %v836_v32, %v836_v32 }
 0x1bd   :  { %v6362_v23 = vpack.c.b16 %v2226_v19, %v2225_v16  ;;  %v2228_v33 = vunpack.c.l.b16 %v1024_v46  ;;  %5406 = vmatmul.msk.bf16.vlgmr.msrb.gmra.mxu2 %vm409_vm0, %v6216_v54  ;;  %5407 = vmatmul.msk.bf16.vlgmr.msrb.gmra.mxu3 %vm409_vm0, %v6216_v54  ;;  %v6368_v37 = vpack.c.b16 %v2224_v3, %v2223_v15  ;;  %v6377_v46 = vld [vmem:[%s8626_s2 + $0x10] sm:$0xff] }
 0x1be   :  { %1493 = vmatpush.bf16.msrb.mxu2 %v6196_v48  ;;  %1507 = vmatpush.bf16.msrb.mxu3 %v6205_v53 }
 0x1bf   :  { %8831 = vst [vmem:[#allocation31_spill] sm:$0xff] %v6362_v23  ;;  %v6372_v58 = vpack.c.b16 %v2228_v33, %v2227_v5 }
 0x1c0   :  { %8832 = vst [vmem:[#allocation32_spill] sm:$0xff] %v6368_v37  ;;  %v851_v30 = vpop.f32.mrf.mxu2  ;;  %v868_v56 = vpop.f32.mrf.mxu3 }
 0x1c1   :  { %8833 = vst [vmem:[#allocation33_spill] sm:$0xff] %v6372_v58  ;;  %v1025_v59 = vpack.c.bf16 %v851_v30, %v851_v30  ;;  %v1027_v3 = vpack.c.bf16 %v868_v56, %v868_v56 }
 0x1c2   :  { %v885_v19 = vpop.f32.mrf.mxu1  ;;  %v1075_v8 = vpop.f32.mrf.mxu0 }
 0x1c3   :  { %v1029_v63 = vpack.c.bf16 %v885_v19, %v885_v19  ;;  %v1516_v5 = vpack.c.bf16 %v1075_v8, %v1075_v8  ;;  %v2229_v32 = vunpack.c.l.b16 %v1025_v59  ;;  %v2231_v33 = vunpack.c.l.b16 %v1027_v3 }
 0x1c5   :  { %5409 = vmatmul.msk.bf16.vlgmr.msra.gmra.mxu1 %vm409_vm0, %v6216_v54  ;;  %5422 = vmatmul.msk.bf16.vlgmr.msrb.gmra.mxu0 %vm409_vm0, %v6377_v46  ;;  %v2233_v30 = vunpack.c.l.b16 %v1029_v63  ;;  %v2369_v37 = vunpack.c.l.b16 %v1516_v5 }
 0x1c6   :  { %1612 = vmatpush.bf16.msra.mxu1 %v6029_v14  ;;  %1710 = vmatpush.bf16.msrb.mxu0 %v6069_v61 }
 0x1c8   :  { %v853_v18 = vpop.f32.mrf.mxu2  ;;  %v870_v10 = vpop.f32.mrf.mxu3 }
 0x1c9   :  { %v1026_v15 = vpack.c.bf16 %v853_v18, %v853_v18  ;;  %v1028_v16 = vpack.c.bf16 %v870_v10, %v870_v10 }
 0x1ca   :  { %v887_v28 = vpop.f32.mrf.mxu1  ;;  %v1077_v4 = vpop.f32.mrf.mxu0 }
 0x1cb   :  { %v2230_v58 = vunpack.c.l.b16 %v1026_v15  ;;  %v2232_v45 = vunpack.c.l.b16 %v1028_v16  ;;  %v1030_v51 = vpack.c.bf16 %v887_v28, %v887_v28  ;;  %v1517_v56 = vpack.c.bf16 %v1077_v4, %v1077_v4 }
 0x1cd   :  { %v2234_v19 = vunpack.c.l.b16 %v1030_v51  ;;  %v2370_v8 = vunpack.c.l.b16 %v1517_v56  ;;  %5410 = vmatmul.msk.bf16.vlgmr.msra.gmra.mxu2 %vm409_vm0, %v6216_v54  ;;  %5411 = vmatmul.msk.bf16.vlgmr.msra.gmra.mxu3 %vm409_vm0, %v6216_v54  ;;  %v6389_v14 = vpack.c.b16 %v2230_v58, %v2229_v32  ;;  %v6391_v61 = vpack.c.b16 %v2232_v45, %v2231_v33 }
 0x1ce   :  { %1626 = vmatpush.bf16.msra.mxu2 %v6035_v25  ;;  %1640 = vmatpush.bf16.msra.mxu3 %v6038_v26 }
 0x1cf   :  { %8834 = vst [vmem:[#allocation34_spill] sm:$0xff] %v6389_v14  ;;  %v6395_v59 = vpack.c.b16 %v2370_v8, %v2369_v37  ;;  %v6397_v28 = vpack.c.b16 %v2234_v19, %v2233_v30 }
 0x1d0   :  { %8835 = vst [vmem:[#allocation35_spill] sm:$0xff] %v6391_v61  ;;  %v902_v4 = vpop.f32.mrf.mxu2  ;;  %v919_v51 = vpop.f32.mrf.mxu3 }
 0x1d1   :  { %8836 = vst [vmem:[#allocation36_spill] sm:$0xff] %v6397_v28  ;;  %v1031_v45 = vpack.c.bf16 %v902_v4, %v902_v4  ;;  %v1033_v58 = vpack.c.bf16 %v919_v51, %v919_v51 }
 0x1d2   :  { %v953_v3 = vpop.f32.mrf.mxu1  ;;  %v6399_v63 = vpop.f32.mrf.mxu0 }
 0x1d3   :  { %v1037_v25 = vpack.c.bf16 %v953_v3, %v953_v3  ;;  %v2235_v10 = vunpack.c.l.b16 %v1031_v45  ;;  %v2237_v15 = vunpack.c.l.b16 %v1033_v58 }
 0x1d5   :  { %5413 = vmatmul.msk.bf16.vlgmr.msrb.gmra.mxu1 %vm409_vm0, %v6216_v54  ;;  %5426 = vmatmul.msk.bf16.vlgmr.msra.gmra.mxu0 %vm409_vm0, %v6377_v46  ;;  %v2241_v33 = vunpack.c.l.b16 %v1037_v25 }
 0x1d6   :  { %1668 = vmatpush.bf16.msrb.mxu1 %v6048_v38  ;;  %1766 = vmatpush.bf16.msra.mxu0 %v6091_v24 }
 0x1d8   :  { %v904_v26 = vpop.f32.mrf.mxu2  ;;  %v921_v37 = vpop.f32.mrf.mxu3 }
 0x1d9   :  { %v1032_v5 = vpack.c.bf16 %v904_v26, %v904_v26  ;;  %v1034_v18 = vpack.c.bf16 %v921_v37, %v921_v37 }
 0x1da   :  { %v955_v16 = vpop.f32.mrf.mxu1  ;;  %v6407_v32 = vpop.f32.mrf.mxu0 }
 0x1db   :  { %v2236_v30 = vunpack.c.l.b16 %v1032_v5  ;;  %v2238_v56 = vunpack.c.l.b16 %v1034_v18  ;;  %v1038_v19 = vpack.c.bf16 %v955_v16, %v955_v16 }
 0x1dd   :  { %v2242_v8 = vunpack.c.l.b16 %v1038_v19  ;;  %5414 = vmatmul.msk.bf16.vlgmr.msrb.gmra.mxu2 %vm409_vm0, %v6216_v54  ;;  %5415 = vmatmul.msk.bf16.vlgmr.msrb.gmra.mxu3 %vm409_vm0, %v6216_v54  ;;  %v6413_v38 = vpack.c.b16 %v2236_v30, %v2235_v10  ;;  %v6415_v24 = vpack.c.b16 %v2238_v56, %v2237_v15 }
 0x1de   :  { %1682 = vmatpush.bf16.msrb.mxu2 %v6059_v49  ;;  %1696 = vmatpush.bf16.msrb.mxu3 %v6062_v50 }
 0x1df   :  { %8837 = vst [vmem:[#allocation37_spill] sm:$0xff] %v6413_v38  ;;  %v6419_v4 = vpack.c.b16 %v2242_v8, %v2241_v33 }
 0x1e0   :  { %8838 = vst [vmem:[#allocation38_spill] sm:$0xff] %v6415_v24  ;;  %v970_v51 = vpop.f32.mrf.mxu2  ;;  %v1061_v3 = vpop.f32.mrf.mxu3 }
 0x1e1   :  { %8839 = vst [vmem:[#allocation39_spill] sm:$0xff] %v6419_v4  ;;  %v1039_v54 = vpack.c.bf16 %v970_v51, %v970_v51  ;;  %v1514_v25 = vpack.c.bf16 %v1061_v3, %v1061_v3 }
 0x1e2   :  { %v1089_v45 = vpop.f32.mrf.mxu1  ;;  %v6421_v58 = vpop.f32.mrf.mxu0 }
 0x1e3   :  { %v1518_v49 = vpack.c.bf16 %v1089_v45, %v1089_v45  ;;  %v2683_v18 = vunpack.c.l.b16 %v1039_v54  ;;  %v2367_v10 = vunpack.c.l.b16 %v1514_v25  ;;  %v1035_v54 = vpack.c.bf16 %v6352_v29, %v6352_v29 }
 0x1e4   :  { %v1036_v25 = vpack.c.bf16 %v6360_v0, %v6360_v0 }
 0x1e5   :  { %5423 = vmatmul.msk.bf16.vlgmr.msra.gmra.mxu1 %vm409_vm0, %v6377_v46  ;;  %5430 = vmatmul.msk.bf16.vlgmr.msrb.gmra.mxu0 %vm409_vm0, %v6377_v46  ;;  %v2371_v33 = vunpack.c.l.b16 %v1518_v49 }
 0x1e6   :  { %1724 = vmatpush.bf16.msra.mxu1 %v6072_v62  ;;  %1822 = vmatpush.bf16.msrb.mxu0 %v6109_v44 }
 0x1e8   :  { %v972_v50 = vpop.f32.mrf.mxu2  ;;  %v1063_v26 = vpop.f32.mrf.mxu3 }
 0x1e9   :  { %v1040_v37 = vpack.c.bf16 %v972_v50, %v972_v50  ;;  %v1515_v5 = vpack.c.bf16 %v1063_v26, %v1063_v26 }
 0x1ea   :  { %v1091_v15 = vpop.f32.mrf.mxu1  ;;  %v6429_v16 = vpop.f32.mrf.mxu0 }
 0x1eb   :  { %v2684_v30 = vunpack.c.l.b16 %v1040_v37  ;;  %v2368_v56 = vunpack.c.l.b16 %v1515_v5  ;;  %v1519_v19 = vpack.c.bf16 %v1091_v15, %v1091_v15 }
 0x1ed   :  { %v6431_v8 = vpack.c.b16 %v2368_v56, %v2367_v10  ;;  %v2372_v51 = vunpack.c.l.b16 %v1519_v19  ;;  %5424 = vmatmul.msk.bf16.vlgmr.msra.gmra.mxu2 %vm409_vm0, %v6377_v46  ;;  %5425 = vmatmul.msk.bf16.vlgmr.msra.gmra.mxu3 %vm409_vm0, %v6377_v46  ;;  %v6437_v62 = vpack.c.b16 %v2684_v30, %v2683_v18 }
 0x1ee   :  { %1738 = vmatpush.bf16.msra.mxu2 %v6081_v11  ;;  %1752 = vmatpush.bf16.msra.mxu3 %v6084_v12  ;;  %v2239_v11 = vunpack.c.l.b16 %v1035_v54  ;;  %v2240_v12 = vunpack.c.l.b16 %v1036_v25 }
 0x1ef   :  { %8840 = vst [vmem:[#allocation40_spill] sm:$0xff] %v6437_v62  ;;  %v6441_v44 = vpack.c.b16 %v2372_v51, %v2371_v33 }
 0x1f0   :  { %v1103_v3 = vpop.f32.mrf.mxu2  ;;  %v1117_v45 = vpop.f32.mrf.mxu3  ;;  %v6457_v19 = vpack.c.b16 %v2240_v12, %v2239_v11 }
 0x1f1   :  { %8841 = vst [vmem:[#allocation41_spill] sm:$0xff] %v6441_v44  ;;  %v1520_v26 = vpack.c.bf16 %v1103_v3, %v1103_v3  ;;  %v1522_v37 = vpack.c.bf16 %v1117_v45, %v1117_v45 }
 0x1f2   :  { %v1145_v49 = vpop.f32.mrf.mxu1  ;;  %v6447_v50 = vpop.f32.mrf.mxu0  ;;  %8842 = vst [vmem:[#allocation42_spill] sm:$0xff] %v6457_v19 }
 0x1f3   :  { %v1526_v29 = vpack.c.bf16 %v1145_v49, %v1145_v49  ;;  %v2373_v15 = vunpack.c.l.b16 %v1520_v26  ;;  %v2375_v33 = vunpack.c.l.b16 %v1522_v37 }
 0x1f5   :  { %5427 = vmatmul.msk.bf16.vlgmr.msrb.gmra.mxu1 %vm409_vm0, %v6377_v46  ;;  %5434 = vmatmul.msk.bf16.vlgmr.msra.gmra.mxu0 %vm409_vm0, %v6377_v46  ;;  %v2379_v51 = vunpack.c.l.b16 %v1526_v29 }
 0x1f6   :  { %1780 = vmatpush.bf16.msrb.mxu1 %v6094_v27  ;;  %1878 = vmatpush.bf16.msra.mxu0 %v6135_v21 }
 0x1f8   :  { %v1105_v5 = vpop.f32.mrf.mxu2  ;;  %v1119_v0 = vpop.f32.mrf.mxu3 }
 0x1f9   :  { %v1521_v18 = vpack.c.bf16 %v1105_v5, %v1105_v5  ;;  %v1523_v10 = vpack.c.bf16 %v1119_v0, %v1119_v0 }
 0x1fa   :  { %v1147_v30 = vpop.f32.mrf.mxu1  ;;  %v6455_v56 = vpop.f32.mrf.mxu0 }
 0x1fb   :  { %v2374_v54 = vunpack.c.l.b16 %v1521_v18  ;;  %v2376_v3 = vunpack.c.l.b16 %v1523_v10  ;;  %v1527_v45 = vpack.c.bf16 %v1147_v30, %v1147_v30 }
 0x1fd   :  { %v2380_v25 = vunpack.c.l.b16 %v1527_v45  ;;  %5428 = vmatmul.msk.bf16.vlgmr.msrb.gmra.mxu2 %vm409_vm0, %v6377_v46  ;;  %5429 = vmatmul.msk.bf16.vlgmr.msrb.gmra.mxu3 %vm409_vm0, %v6377_v46  ;;  %v6463_v27 = vpack.c.b16 %v2374_v54, %v2373_v15  ;;  %v6465_v21 = vpack.c.b16 %v2376_v3, %v2375_v33 }
 0x1fe   :  { %1794 = vmatpush.bf16.msrb.mxu2 %v6103_v42  ;;  %1808 = vmatpush.bf16.msrb.mxu3 %v6106_v43 }
 0x1ff   :  { %8843 = vst [vmem:[#allocation43_spill] sm:$0xff] %v6463_v27  ;;  %v6469_v49 = vpack.c.b16 %v2380_v25, %v2379_v51 }
 0x200   :  { %8844 = vst [vmem:[#allocation44_spill] sm:$0xff] %v6465_v21  ;;  %v1159_v11 = vpop.f32.mrf.mxu2  ;;  %v1173_v12 = vpop.f32.mrf.mxu3 }
 0x201   :  { %8845 = vst [vmem:[#allocation45_spill] sm:$0xff] %v6469_v49  ;;  %v1528_v29 = vpack.c.bf16 %v1159_v11, %v1159_v11  ;;  %v1530_v5 = vpack.c.bf16 %v1173_v12, %v1173_v12 }
 0x202   :  { %v1201_v26 = vpop.f32.mrf.mxu1  ;;  %v6471_v37 = vpop.f32.mrf.mxu0 }
 0x203   :  { %v1534_v42 = vpack.c.bf16 %v1201_v26, %v1201_v26  ;;  %v2381_v15 = vunpack.c.l.b16 %v1528_v29  ;;  %v2383_v33 = vunpack.c.l.b16 %v1530_v5  ;;  %v1524_v5 = vpack.c.bf16 %v6399_v63, %v6399_v63 }
 0x205   :  { %5431 = vmatmul.msk.bf16.vlgmr.msra.gmra.mxu1 %vm409_vm0, %v6377_v46  ;;  %5438 = vmatmul.msk.bf16.vlgmr.msrb.gmra.mxu0 %vm409_vm0, %v6377_v46  ;;  %v2387_v54 = vunpack.c.l.b16 %v1534_v42  ;;  %v1525_v42 = vpack.c.bf16 %v6407_v32, %v6407_v32 }
 0x206   :  { %1836 = vmatpush.bf16.msra.mxu1 %v6117_v55  ;;  %1934 = vmatpush.bf16.msrb.mxu0 %v6157_v57 }
 0x208   :  { %v1161_v43 = vpop.f32.mrf.mxu2  ;;  %v1175_v0 = vpop.f32.mrf.mxu3 }
 0x209   :  { %v1529_v18 = vpack.c.bf16 %v1161_v43, %v1161_v43  ;;  %v1531_v10 = vpack.c.bf16 %v1175_v0, %v1175_v0 }
 0x20a   :  { %v1203_v30 = vpop.f32.mrf.mxu1  ;;  %v6479_v51 = vpop.f32.mrf.mxu0 }
 0x20b   :  { %v2382_v3 = vunpack.c.l.b16 %v1529_v18  ;;  %v2384_v45 = vunpack.c.l.b16 %v1531_v10  ;;  %v1535_v25 = vpack.c.bf16 %v1203_v30, %v1203_v30 }
 0x20d   :  { %v2388_v11 = vunpack.c.l.b16 %v1535_v25  ;;  %5432 = vmatmul.msk.bf16.vlgmr.msra.gmra.mxu2 %vm409_vm0, %v6377_v46  ;;  %5433 = vmatmul.msk.bf16.vlgmr.msra.gmra.mxu3 %vm409_vm0, %v6377_v46  ;;  %v6485_v55 = vpack.c.b16 %v2382_v3, %v2381_v15  ;;  %v6487_v57 = vpack.c.b16 %v2384_v45, %v2383_v33 }
 0x20e   :  { %1850 = vmatpush.bf16.msra.mxu2 %v6125_v6  ;;  %1864 = vmatpush.bf16.msra.mxu3 %v6128_v7  ;;  %v2377_v6 = vunpack.c.l.b16 %v1524_v5  ;;  %v2378_v7 = vunpack.c.l.b16 %v1525_v42 }
 0x20f   :  { %8846 = vst [vmem:[#allocation46_spill] sm:$0xff] %v6485_v55  ;;  %v6491_v12 = vpack.c.b16 %v2388_v11, %v2387_v54 }
 0x210   :  { %8847 = vst [vmem:[#allocation47_spill] sm:$0xff] %v6487_v57  ;;  %v1215_v26 = vpop.f32.mrf.mxu2  ;;  %v1229_v29 = vpop.f32.mrf.mxu3  ;;  %v6507_v11 = vpack.c.b16 %v2378_v7, %v2377_v6 }
 0x211   :  { %v1536_v18 = vpack.c.bf16 %v1215_v26, %v1215_v26  ;;  %v1538_v10 = vpack.c.bf16 %v1229_v29, %v1229_v29 }
 0x212   :  { %v1257_v43 = vpop.f32.mrf.mxu1  ;;  %v6497_v0 = vpop.f32.mrf.mxu0  ;;  %8848 = vst [vmem:[#allocation48_spill] sm:$0xff] %v6507_v11 }
 0x213   :  { %v1542_v63 = vpack.c.bf16 %v1257_v43, %v1257_v43  ;;  %v2389_v54 = vunpack.c.l.b16 %v1536_v18  ;;  %v2391_v3 = vunpack.c.l.b16 %v1538_v10  ;;  %v1532_v18 = vpack.c.bf16 %v6421_v58, %v6421_v58 }
 0x214   :  { %v1533_v10 = vpack.c.bf16 %v6429_v16, %v6429_v16 }
 0x215   :  { %5435 = vmatmul.msk.bf16.vlgmr.msrb.gmra.mxu1 %vm409_vm0, %v6377_v46  ;;  %5442 = vmatmul.msk.bf16.vlgmr.msra.gmra.mxu0 %vm409_vm0, %v6377_v46  ;;  %v2395_v5 = vunpack.c.l.b16 %v1542_v63 }
 0x216   :  { %1892 = vmatpush.bf16.msrb.mxu1 %v6138_v22  ;;  %1990 = vmatpush.bf16.msra.mxu0 %v6179_v34 }
 0x218   :  { %v1217_v15 = vpop.f32.mrf.mxu2  ;;  %v1231_v32 = vpop.f32.mrf.mxu3 }
 0x219   :  { %v1537_v33 = vpack.c.bf16 %v1217_v15, %v1217_v15  ;;  %v1539_v30 = vpack.c.bf16 %v1231_v32, %v1231_v32 }
 0x21a   :  { %v1259_v45 = vpop.f32.mrf.mxu1  ;;  %v6505_v25 = vpop.f32.mrf.mxu0 }
 0x21b   :  { %v2390_v42 = vunpack.c.l.b16 %v1537_v33  ;;  %v2392_v26 = vunpack.c.l.b16 %v1539_v30  ;;  %v1543_v29 = vpack.c.bf16 %v1259_v45, %v1259_v45 }
 0x21d   :  { %v2396_v62 = vunpack.c.l.b16 %v1543_v29  ;;  %5436 = vmatmul.msk.bf16.vlgmr.msrb.gmra.mxu2 %vm409_vm0, %v6377_v46  ;;  %5437 = vmatmul.msk.bf16.vlgmr.msrb.gmra.mxu3 %vm409_vm0, %v6377_v46  ;;  %v6513_v22 = vpack.c.b16 %v2390_v42, %v2389_v54  ;;  %v6515_v34 = vpack.c.b16 %v2392_v26, %v2391_v3 }
 0x21e   :  { %1906 = vmatpush.bf16.msrb.mxu2 %v6147_v39  ;;  %1920 = vmatpush.bf16.msrb.mxu3 %v6150_v40  ;;  %v2385_v39 = vunpack.c.l.b16 %v1532_v18  ;;  %v2386_v40 = vunpack.c.l.b16 %v1533_v10 }
 0x21f   :  { %8849 = vst [vmem:[#allocation49_spill] sm:$0xff] %v6513_v22  ;;  %v6519_v43 = vpack.c.b16 %v2396_v62, %v2395_v5 }
 0x220   :  { %8850 = vst [vmem:[#allocation50_spill] sm:$0xff] %v6515_v34  ;;  %v1271_v6 = vpop.f32.mrf.mxu2  ;;  %v1285_v7 = vpop.f32.mrf.mxu3  ;;  %v6535_v26 = vpack.c.b16 %v2386_v40, %v2385_v39  ;;  %v5790_v34 = vld [vmem:[#allocation7 + $0x120] sm:$0xff] }
 0x221   :  { %8851 = vst [vmem:[#allocation51_spill] sm:$0xff] %v6519_v43  ;;  %v1544_v62 = vpack.c.bf16 %v1271_v6, %v1271_v6  ;;  %v1546_v32 = vpack.c.bf16 %v1285_v7, %v1285_v7 }
 0x222   :  { %v1313_v63 = vpop.f32.mrf.mxu1  ;;  %v6525_v15 = vpop.f32.mrf.mxu0 }
 0x223   :  { %v1550_v58 = vpack.c.bf16 %v1313_v63, %v1313_v63  ;;  %v2397_v3 = vunpack.c.l.b16 %v1544_v62  ;;  %v2693_v45 = vunpack.c.l.b16 %v1546_v32  ;;  %v1540_v62 = vpack.c.bf16 %v6447_v50, %v6447_v50  ;;  %v6563_v50 = vld [vmem:[#allocation7 + $0x30] sm:$0xff] }
 0x224   :  { %v1541_v32 = vpack.c.bf16 %v6455_v56, %v6455_v56 }
 0x225   :  { %5439 = vmatmul.msk.bf16.vlgmr.msra.gmra.mxu1 %vm409_vm0, %v6377_v46  ;;  %5446 = vmatmul.msk.bf16.vlgmr.msrb.gmra.mxu0 %vm409_vm0, %v6377_v46  ;;  %v2401_v29 = vunpack.c.l.b16 %v1550_v58 }
 0x226   :  { %1948 = vmatpush.bf16.msra.mxu1 %v6161_v60  ;;  %2046 = vmatpush.bf16.msrb.mxu0 %v6205_v53 }
 0x228   :  { %v1273_v33 = vpop.f32.mrf.mxu2  ;;  %v1287_v16 = vpop.f32.mrf.mxu3 }
 0x229   :  { %v1545_v30 = vpack.c.bf16 %v1273_v33, %v1273_v33  ;;  %v1547_v54 = vpack.c.bf16 %v1287_v16, %v1287_v16  ;;  %v6555_v16 = vld [vmem:[#allocation7 + $0x38] sm:$0xff] }
 0x22a   :  { %v1315_v5 = vpop.f32.mrf.mxu1  ;;  %v6533_v42 = vpop.f32.mrf.mxu0 }
 0x22b   :  { %v2398_v18 = vunpack.c.l.b16 %v1545_v30  ;;  %v2694_v6 = vunpack.c.l.b16 %v1547_v54  ;;  %v1551_v7 = vpack.c.bf16 %v1315_v5, %v1315_v5 }
 0x22d   :  { %v2402_v10 = vunpack.c.l.b16 %v1551_v7  ;;  %5440 = vmatmul.msk.bf16.vlgmr.msra.gmra.mxu2 %vm409_vm0, %v6377_v46  ;;  %5441 = vmatmul.msk.bf16.vlgmr.msra.gmra.mxu3 %vm409_vm0, %v6377_v46  ;;  %v6541_v60 = vpack.c.b16 %v2398_v18, %v2397_v3  ;;  %v6543_v53 = vpack.c.b16 %v2694_v6, %v2693_v45 }
 0x22e   :  { %1962 = vmatpush.bf16.msra.mxu2 %v6169_v13  ;;  %1976 = vmatpush.bf16.msra.mxu3 %v6173_v17  ;;  %v2393_v13 = vunpack.c.l.b16 %v1540_v62  ;;  %v2394_v17 = vunpack.c.l.b16 %v1541_v32 }
 0x22f   :  { %8852 = vst [vmem:[#allocation52_spill] sm:$0xff] %v6541_v60  ;;  %v6547_v63 = vpack.c.b16 %v2402_v10, %v2401_v29 }
 0x230   :  { %8853 = vst [vmem:[#allocation53_spill] sm:$0xff] %v6543_v53  ;;  %v1327_v39 = vpop.f32.mrf.mxu2  ;;  %v1341_v40 = vpop.f32.mrf.mxu3 }
 0x231   :  { %8854 = vst [vmem:[#allocation54_spill] sm:$0xff] %v6547_v63  ;;  %v1552_v30 = vpack.c.bf16 %v1327_v39, %v1327_v39  ;;  %v1554_v54 = vpack.c.bf16 %v1341_v40, %v1341_v40  ;;  %v6568_v39 = vpack.c.b16 %v2394_v17, %v2393_v13  ;;  %v6570_v63 = vld [vmem:[#allocation7 + $0x28] sm:$0xff]  ;;  %v6583_v13 = vld [vmem:[#allocation7 + $0x20] sm:$0xff] }
 0x232   :  { %v1369_v58 = vpop.f32.mrf.mxu1  ;;  %v6553_v33 = vpop.f32.mrf.mxu0 }
 0x233   :  { %v1558_v56 = vpack.c.bf16 %v1369_v58, %v1369_v58  ;;  %v2403_v18 = vunpack.c.l.b16 %v1552_v30  ;;  %v2405_v6 = vunpack.c.l.b16 %v1554_v54  ;;  %8855 = vst [vmem:[#allocation55_spill] sm:$0xff] %v6568_v39  ;;  %v6606_v39 = vld [vmem:[#allocation7 + $0x8] sm:$0xff] }
 0x235   :  { %5443 = vmatmul.msk.bf16.vlgmr.msrb.gmra.mxu1 %vm409_vm0, %v6377_v46  ;;  %5450 = vmatmul.msk.bf16.vlgmr.msra.gmra.mxu0 %vm409_vm0, %v6377_v46  ;;  %v2409_v40 = vunpack.c.l.b16 %v1558_v56 }
 0x236   :  { %2004 = vmatpush.bf16.msrb.mxu1 %v6182_v35  ;;  %3289 = vmatpush.bf16.msra.mxu0 %v6555_v16 }
 0x238   :  { %v1329_v3 = vpop.f32.mrf.mxu2  ;;  %v1343_v45 = vpop.f32.mrf.mxu3 }
 0x239   :  { %v1553_v5 = vpack.c.bf16 %v1329_v3, %v1329_v3  ;;  %v1555_v29 = vpack.c.bf16 %v1343_v45, %v1343_v45  ;;  %v1548_v45 = vpack.c.bf16 %v6471_v37, %v6471_v37 }
 0x23a   :  { %v1371_v7 = vpop.f32.mrf.mxu1  ;;  %v6565_v10 = vpop.f32.mrf.mxu0  ;;  %3290 = vmatpush.bf16.msra.mxu0 %v6563_v50 }
 0x23b   :  { %v2404_v35 = vunpack.c.l.b16 %v1553_v5  ;;  %v2406_v62 = vunpack.c.l.b16 %v1555_v29  ;;  %v1559_v32 = vpack.c.bf16 %v1371_v7, %v1371_v7  ;;  %v1549_v5 = vpack.c.bf16 %v6479_v51, %v6479_v51  ;;  %v6600_v51 = vld [vmem:[#allocation7 + $0x10] sm:$0xff] }
 0x23d   :  { %v2410_v58 = vunpack.c.l.b16 %v1559_v32  ;;  %5444 = vmatmul.msk.bf16.vlgmr.msrb.gmra.mxu2 %vm409_vm0, %v6377_v46  ;;  %5445 = vmatmul.msk.bf16.vlgmr.msrb.gmra.mxu3 %vm409_vm0, %v6377_v46  ;;  %v6576_v30 = vpack.c.b16 %v2404_v35, %v2403_v18  ;;  %v6578_v54 = vpack.c.b16 %v2406_v62, %v2405_v6  ;;  %v2400_v7 = vunpack.c.l.b16 %v1549_v5 }
 0x23e   :  { %2018 = vmatpush.bf16.msrb.mxu2 %v6191_v47  ;;  %2032 = vmatpush.bf16.msrb.mxu3 %v6196_v48  ;;  %v6592_v47 = vld [vmem:[#allocation7 + $0x18] sm:$0xff]  ;;  %v2399_v48 = vunpack.c.l.b16 %v1548_v45 }
 0x23f   :  { %8856 = vst [vmem:[#allocation56_spill] sm:$0xff] %v6576_v30  ;;  %3291 = vmatpush.bf16.msra.mxu0 %v6570_v63  ;;  %v6585_v17 = vpack.c.b16 %v2410_v58, %v2409_v40 }
 0x240   :  { %8857 = vst [vmem:[#allocation57_spill] sm:$0xff] %v6578_v54  ;;  %v1383_v56 = vpop.f32.mrf.mxu2  ;;  %v1397_v3 = vpop.f32.mrf.mxu3 }
 0x241   :  { %8858 = vst [vmem:[#allocation58_spill] sm:$0xff] %v6585_v17  ;;  %v1560_v6 = vpack.c.bf16 %v1383_v56, %v1383_v56  ;;  %v1562_v40 = vpack.c.bf16 %v1397_v3, %v1397_v3  ;;  %v6603_v3 = vpack.c.b16 %v2400_v7, %v2399_v48 }
 0x242   :  { %v1425_v29 = vpop.f32.mrf.mxu1  ;;  %v1600_v18 = vpop.f32.mrf.mxu0 }
 0x243   :  { %3292 = vmatpush.bf16.msra.mxu0 %v6583_v13  ;;  %v1566_v37 = vpack.c.bf16 %v1425_v29, %v1425_v29  ;;  %v2053_v35 = vpack.c.bf16 %v1600_v18, %v1600_v18  ;;  %v2411_v58 = vunpack.c.l.b16 %v1560_v6  ;;  %v2413_v17 = vunpack.c.l.b16 %v1562_v40  ;;  %8859 = vst [vmem:[#allocation59_spill] sm:$0xff] %v6603_v3 }
 0x244   :  { %v975_v6 = vpack.c.bf16 %v6272_v36, %v6272_v36  ;;  %v976_v40 = vpack.c.bf16 %v6286_v20, %v6286_v20  ;;  %v6626_v20 = vld [vmem:[#allocation7] sm:$0xff] }
 0x245   :  { %5447 = vmatmul.msk.bf16.vlgmr.msra.gmra.mxu1 %vm409_vm0, %v6377_v46  ;;  %5454 = vmatmul.msk.bf16.vlgmr.msrb.gmra.mxu0 %vm409_vm0, %v6377_v46  ;;  %v2417_v54 = vunpack.c.l.b16 %v1566_v37  ;;  %v2553_v30 = vunpack.c.l.b16 %v2053_v35 }
 0x246   :  { %5826 = vmatpush.bf16.msra.mxu1 %v6555_v16  ;;  %v2181_v48 = vunpack.c.l.b16 %v975_v6  ;;  %v2182_v7 = vunpack.c.l.b16 %v976_v40 }
 0x247   :  { %3293 = vmatpush.bf16.msra.mxu0 %v6592_v47 }
 0x248   :  { %v1385_v62 = vpop.f32.mrf.mxu2  ;;  %v1399_v32 = vpop.f32.mrf.mxu3 }
 0x249   :  { %v1561_v56 = vpack.c.bf16 %v1385_v62, %v1385_v62  ;;  %v1563_v45 = vpack.c.bf16 %v1399_v32, %v1399_v32 }
 0x24a   :  { %v1427_v53 = vpop.f32.mrf.mxu1  ;;  %v1602_v60 = vpop.f32.mrf.mxu0  ;;  %5829 = vmatpush.bf16.msra.mxu1 %v6563_v50 }
 0x24b   :  { %v2412_v5 = vunpack.c.l.b16 %v1561_v56  ;;  %v2414_v29 = vunpack.c.l.b16 %v1563_v45  ;;  %v1567_v18 = vpack.c.bf16 %v1427_v53, %v1427_v53  ;;  %v2054_v43 = vpack.c.bf16 %v1602_v60, %v1602_v60  ;;  %3294 = vmatpush.bf16.msra.mxu0 %v6600_v51 }
 0x24d   :  { %v2418_v37 = vunpack.c.l.b16 %v1567_v18  ;;  %v2554_v35 = vunpack.c.l.b16 %v2054_v43  ;;  %5448 = vmatmul.msk.bf16.vlgmr.msra.gmra.mxu2 %vm409_vm0, %v6377_v46  ;;  %5449 = vmatmul.msk.bf16.vlgmr.msra.gmra.mxu3 %vm409_vm0, %v6377_v46  ;;  %v6616_v53 = vpack.c.b16 %v2412_v5, %v2411_v58  ;;  %v6618_v60 = vpack.c.b16 %v2414_v29, %v2413_v17 }
 0x24e   :  { %5827 = vmatpush.bf16.msra.mxu2 %v6555_v16  ;;  %5828 = vmatpush.bf16.msra.mxu3 %v6555_v16  ;;  %v1556_v17 = vpack.c.bf16 %v6497_v0, %v6497_v0  ;;  %v1557_v16 = vpack.c.bf16 %v6505_v25, %v6505_v25 }
 0x24f   :  { %8860 = vst [vmem:[#allocation60_spill] sm:$0xff] %v6616_v53  ;;  %v6622_v36 = vpack.c.b16 %v2554_v35, %v2553_v30  ;;  %5832 = vmatpush.bf16.msra.mxu1 %v6570_v63  ;;  %3295 = vmatpush.bf16.msra.mxu0 %v6606_v39  ;;  %v6628_v43 = vpack.c.b16 %v2418_v37, %v2417_v54 }
 0x250   :  { %8861 = vst [vmem:[#allocation61_spill] sm:$0xff] %v6618_v60  ;;  %v1439_v62 = vpop.f32.mrf.mxu2  ;;  %v1453_v32 = vpop.f32.mrf.mxu3  ;;  %v6640_v54 = vpack.c.b16 %v2182_v7, %v2181_v48  ;;  %v2407_v0 = vunpack.c.l.b16 %v1556_v17  ;;  %v2408_v56 = vunpack.c.l.b16 %v1557_v16 }
 0x251   :  { %8862 = vst [vmem:[#allocation62_spill] sm:$0xff] %v6628_v43  ;;  %v1568_v45 = vpack.c.bf16 %v1439_v62, %v1439_v62  ;;  %v1570_v25 = vpack.c.bf16 %v1453_v32, %v1453_v32 }
 0x252   :  { %v1481_v30 = vpop.f32.mrf.mxu1  ;;  %v6634_v58 = vpop.f32.mrf.mxu0  ;;  %5830 = vmatpush.bf16.msra.mxu2 %v6563_v50  ;;  %5831 = vmatpush.bf16.msra.mxu3 %v6563_v50  ;;  %8863 = vst [vmem:[#allocation63_spill] sm:$0xff] %v6640_v54  ;;  %v6651_v7 = vpack.c.b16 %v2408_v56, %v2407_v0 }
 0x253   :  { %5835 = vmatpush.bf16.msra.mxu1 %v6583_v13  ;;  %3296 = vmatpush.bf16.msra.mxu0 %v6626_v20  ;;  %v1574_v5 = vpack.c.bf16 %v1481_v30, %v1481_v30  ;;  %v2419_v40 = vunpack.c.l.b16 %v1568_v45  ;;  %v2421_v37 = vunpack.c.l.b16 %v1570_v25  ;;  %v978_v30 = vpack.c.bf16 %v6310_v1, %v6310_v1 }
 0x254   :  { %8864 = vst [vmem:[#allocation64_spill] sm:$0xff] %v6651_v7 }
 0x255   :  { %5451 = vmatmul.msk.bf16.vlgmr.msrb.gmra.mxu1 %vm409_vm0, %v6377_v46  ;;  %v2425_v62 = vunpack.c.l.b16 %v1574_v5 }
 0x256   :  { %3297 = vmatmul.bf16.vlgmr.msra.gmra.mxu0 %v6640_v54  ;;  %5833 = vmatpush.bf16.msra.mxu2 %v6570_v63 }
 0x257   :  { %5834 = vmatpush.bf16.msra.mxu3 %v6570_v63  ;;  %5838 = vmatpush.bf16.msra.mxu1 %v6592_v47  ;;  %v977_v63 = vpack.c.bf16 %v6296_v2, %v6296_v2 }
 0x258   :  { %v1441_v50 = vpop.f32.mrf.mxu2  ;;  %v1455_v29 = vpop.f32.mrf.mxu3 }
 0x259   :  { %v1569_v18 = vpack.c.bf16 %v1441_v50, %v1441_v50  ;;  %v1571_v6 = vpack.c.bf16 %v1455_v29, %v1455_v29  ;;  %v2183_v1 = vunpack.c.l.b16 %v977_v63  ;;  %v1564_v50 = vpack.c.bf16 %v6525_v15, %v6525_v15 }
 0x25a   :  { %v1483_v35 = vpop.f32.mrf.mxu1  ;;  %v6648_v48 = vpop.f32.mrf.mxu0  ;;  %5836 = vmatpush.bf16.msra.mxu2 %v6583_v13 }
 0x25b   :  { %v2420_v32 = vunpack.c.l.b16 %v1569_v18  ;;  %v2422_v17 = vunpack.c.l.b16 %v1571_v6  ;;  %v1575_v16 = vpack.c.bf16 %v1483_v35, %v1483_v35  ;;  %5837 = vmatpush.bf16.msra.mxu3 %v6583_v13  ;;  %5841 = vmatpush.bf16.msra.mxu1 %v6600_v51  ;;  %v2184_v13 = vunpack.c.l.b16 %v978_v30  ;;  %v5793_v6 = vld [vmem:[#allocation7 + $0x138] sm:$0xff] }
 0x25d   :  { %v2426_v45 = vunpack.c.l.b16 %v1575_v16  ;;  %5452 = vmatmul.msk.bf16.vlgmr.msrb.gmra.mxu2 %vm409_vm0, %v6377_v46  ;;  %5453 = vmatmul.msk.bf16.vlgmr.msrb.gmra.mxu3 %vm409_vm0, %v6377_v46  ;;  %v6663_v0 = vpack.c.b16 %v2420_v32, %v2419_v40  ;;  %v6665_v56 = vpack.c.b16 %v2422_v17, %v2421_v37  ;;  %v1565_v46 = vpack.c.bf16 %v6533_v42, %v6533_v42  ;;  %v5785_v40 = vld [vmem:[#allocation7 + $0xf8] sm:$0xff] }
 0x25e   :  { %5839 = vmatpush.bf16.msra.mxu2 %v6592_v47  ;;  %v2415_v37 = vunpack.c.l.b16 %v1564_v50  ;;  %v5769_v17 = vld [vmem:[#allocation7 + $0x78] sm:$0xff]  ;;  %3796 = vmatpush.bf16.msrb.mxu0 %v5785_v40  ;;  %v980_v40 = vpack.c.bf16 %v6338_v9, %v6338_v9 }
 0x25f   :  { %8865 = vst [vmem:[#allocation65_spill] sm:$0xff] %v6663_v0  ;;  %5840 = vmatpush.bf16.msra.mxu3 %v6592_v47  ;;  %5844 = vmatpush.bf16.msra.mxu1 %v6606_v39  ;;  %v6670_v2 = vpack.c.b16 %v2426_v45, %v2425_v62  ;;  %v6681_v47 = vpack.c.b16 %v2184_v13, %v2183_v1  ;;  %v2416_v35 = vunpack.c.l.b16 %v1565_v46  ;;  %v5777_v16 = vld [vmem:[#allocation7 + $0xb8] sm:$0xff]  ;;  %v5784_v45 = vld [vmem:[#allocation7 + $0xf0] sm:$0xff]  ;;  %v5779_v0 = vld [vmem:[#allocation7 + $0xc8] sm:$0xff] }
 0x260   :  { %8866 = vst [vmem:[#allocation66_spill] sm:$0xff] %v6665_v56  ;;  %v1495_v25 = vpop.f32.mrf.mxu2  ;;  %v1509_v5 = vpop.f32.mrf.mxu3 }
 0x261   :  { %8867 = vst [vmem:[#allocation67_spill] sm:$0xff] %v6670_v2  ;;  %v1576_v62 = vpack.c.bf16 %v1495_v25, %v1495_v25  ;;  %v1578_v15 = vpack.c.bf16 %v1509_v5, %v1509_v5  ;;  %v6689_v50 = vpack.c.b16 %v2416_v35, %v2415_v37  ;;  %v5776_v37 = vld [vmem:[#allocation7 + $0xb0] sm:$0xff]  ;;  %v5783_v35 = vld [vmem:[#allocation7 + $0xe8] sm:$0xff] }
 0x262   :  { %v1614_v29 = vpop.f32.mrf.mxu1  ;;  %v6676_v18 = vpop.f32.mrf.mxu0  ;;  %5842 = vmatpush.bf16.msra.mxu2 %v6600_v51  ;;  %3797 = vmatpush.bf16.msrb.mxu0 %v5784_v45 }
 0x263   :  { %5843 = vmatpush.bf16.msra.mxu3 %v6600_v51  ;;  %5847 = vmatpush.bf16.msra.mxu1 %v6626_v20  ;;  %v2055_v42 = vpack.c.bf16 %v1614_v29, %v1614_v29  ;;  %v2427_v1 = vunpack.c.l.b16 %v1576_v62  ;;  %v2695_v13 = vunpack.c.l.b16 %v1578_v15  ;;  %8868 = vst [vmem:[#allocation68_spill] sm:$0xff] %v6689_v50  ;;  %v5768_v15 = vld [vmem:[#allocation7 + $0x70] sm:$0xff] }
 0x265   :  { %v2555_v46 = vunpack.c.l.b16 %v2055_v42 }
 0x266   :  { %3302 = vmatmul.bf16.gmra.mxu0 %v6681_v47  ;;  %3322 = vmatmul.bf16.vlgmr.msra.gmra.mxu1 %v6238_v41 }
 0x267   :  { %5845 = vmatpush.bf16.msra.mxu2 %v6606_v39  ;;  %5846 = vmatpush.bf16.msra.mxu3 %v6606_v39 }
 0x268   :  { %v1497_v51 = vpop.f32.mrf.mxu2  ;;  %v1511_v32 = vpop.f32.mrf.mxu3  ;;  %3965 = vmatpush.bf16.msrb.mxu1 %v5793_v6  ;;  %v979_v6 = vpack.c.bf16 %v6322_v52, %v6322_v52  ;;  %3798 = vmatpush.bf16.msrb.mxu0 %v5783_v35  ;;  %v5780_v35 = vld [vmem:[#allocation7 + $0xd0] sm:$0xff] }
 0x269   :  { %v1577_v63 = vpack.c.bf16 %v1497_v51, %v1497_v51  ;;  %v1579_v30 = vpack.c.bf16 %v1511_v32, %v1511_v32  ;;  %v2186_v32 = vunpack.c.l.b16 %v980_v40  ;;  %v5792_v40 = vld [vmem:[#allocation7 + $0x130] sm:$0xff] }
 0x26a   :  { %v1616_v25 = vpop.f32.mrf.mxu1  ;;  %v6687_v5 = vpop.f32.mrf.mxu0  ;;  %v2185_v52 = vunpack.c.l.b16 %v979_v6  ;;  %v8873_v6 = vld [vmem:[#allocation15_spill] sm:$0xff] }
 0x26b   :  { %v2428_v29 = vunpack.c.l.b16 %v1577_v63  ;;  %v2696_v2 = vunpack.c.l.b16 %v1579_v30  ;;  %v2056_v39 = vpack.c.bf16 %v1616_v25, %v1616_v25  ;;  %5848 = vmatpush.bf16.msra.mxu2 %v6626_v20  ;;  %5849 = vmatpush.bf16.msra.mxu3 %v6626_v20  ;;  %v1572_v63 = vpack.c.bf16 %v6553_v33, %v6553_v33 }
 0x26c   :  { %3966 = vmatpush.bf16.msrb.mxu1 %v5792_v40 }
 0x26d   :  { %v2556_v62 = vunpack.c.l.b16 %v2056_v39  ;;  %v6697_v42 = vpack.c.b16 %v2428_v29, %v2427_v1  ;;  %v6699_v51 = vpack.c.b16 %v2696_v2, %v2695_v13  ;;  %v1573_v2 = vpack.c.bf16 %v6565_v10, %v6565_v10  ;;  %v5781_v13 = vld [vmem:[#allocation7 + $0xd8] sm:$0xff] }
 0x26e   :  { %3367 = vmatmul.bf16.vlgmr.msra.gmra.mxu2 %v6298_v31  ;;  %3412 = vmatmul.bf16.vlgmr.msra.gmra.mxu3 %v6362_v23  ;;  %v6711_v1 = vpack.c.b16 %v2186_v32, %v2185_v52  ;;  %v2423_v25 = vunpack.c.l.b16 %v1572_v63 }
 0x26f   :  { %3458 = vmatpush.bf16.msrb.mxu2 %v5769_v17  ;;  %3627 = vmatpush.bf16.msrb.mxu3 %v5777_v16  ;;  %8869 = vst [vmem:[#allocation69_spill] sm:$0xff] %v6697_v42  ;;  %v6703_v20 = vpack.c.b16 %v2556_v62, %v2555_v46  ;;  %v5782_v16 = vld [vmem:[#allocation7 + $0xe0] sm:$0xff]  ;;  %v2424_v46 = vunpack.c.l.b16 %v1573_v2 }
 0x270   :  { %8870 = vst [vmem:[#allocation70_spill] sm:$0xff] %v6699_v51  ;;  %v1628_v9 = vpop.f32.mrf.mxu2  ;;  %v1642_v17 = vpop.f32.mrf.mxu3  ;;  %3799 = vmatpush.bf16.msrb.mxu0 %v5782_v16 }
 0x271   :  { %8871 = vst [vmem:[#allocation71_spill] sm:$0xff] %v6703_v20  ;;  %v2057_v29 = vpack.c.bf16 %v1628_v9, %v1628_v9  ;;  %v2059_v39 = vpack.c.bf16 %v1642_v17, %v1642_v17  ;;  %v6717_v9 = vpack.c.b16 %v2424_v46, %v2423_v25 }
 0x272   :  { %v1670_v30 = vpop.f32.mrf.mxu1  ;;  %v6709_v45 = vpop.f32.mrf.mxu0  ;;  %8872 = vst [vmem:[#allocation72_spill] sm:$0xff] %v6711_v1 }
 0x273   :  { %3459 = vmatpush.bf16.msrb.mxu2 %v5768_v15  ;;  %3628 = vmatpush.bf16.msrb.mxu3 %v5776_v37  ;;  %v2063_v33 = vpack.c.bf16 %v1670_v30, %v1670_v30  ;;  %v2557_v52 = vunpack.c.l.b16 %v2057_v29  ;;  %v2559_v32 = vunpack.c.l.b16 %v2059_v39  ;;  %8874 = vst [vmem:[#allocation73_spill] sm:$0xff] %v6717_v9  ;;  %v5767_v30 = vld [vmem:[#allocation7 + $0x68] sm:$0xff] }
 0x274   :  { %3800 = vmatpush.bf16.msrb.mxu0 %v5781_v13  ;;  %v8877_v13 = vld [vmem:[#allocation24_spill] sm:$0xff]  ;;  %v8878_v29 = vld [vmem:[#allocation33_spill] sm:$0xff] }
 0x275   :  { %v2563_v17 = vunpack.c.l.b16 %v2063_v33  ;;  %v5775_v39 = vld [vmem:[#allocation7 + $0xa8] sm:$0xff] }
 0x276   :  { %3307 = vmatmul.bf16.gmra.mxu0 %v6711_v1  ;;  %3327 = vmatmul.bf16.gmra.mxu1 %v8873_v6 }
 0x277   :  { %3460 = vmatpush.bf16.msrb.mxu2 %v5767_v30  ;;  %3629 = vmatpush.bf16.msrb.mxu3 %v5775_v39 }
 0x278   :  { %v1630_v62 = vpop.f32.mrf.mxu2  ;;  %v1644_v15 = vpop.f32.mrf.mxu3  ;;  %3801 = vmatpush.bf16.msrb.mxu0 %v5780_v35  ;;  %v8880_v35 = vld [vmem:[#allocation12_spill] sm:$0xff] }
 0x279   :  { %v2058_v10 = vpack.c.bf16 %v1630_v62, %v1630_v62  ;;  %v2060_v37 = vpack.c.bf16 %v1644_v15, %v1644_v15 }
 0x27a   :  { %v1672_v16 = vpop.f32.mrf.mxu1  ;;  %v6715_v63 = vpop.f32.mrf.mxu0 }
 0x27b   :  { %v2558_v2 = vunpack.c.l.b16 %v2058_v10  ;;  %v2560_v51 = vunpack.c.l.b16 %v2060_v37  ;;  %v2064_v42 = vpack.c.bf16 %v1672_v16, %v1672_v16 }
 0x27c   :  { %3802 = vmatpush.bf16.msrb.mxu0 %v5779_v0 }
 0x27d   :  { %v2564_v56 = vunpack.c.l.b16 %v2064_v42  ;;  %v6719_v40 = vpack.c.b16 %v2558_v2, %v2557_v52  ;;  %v6721_v62 = vpack.c.b16 %v2560_v51, %v2559_v32  ;;  %v5778_v42 = vld [vmem:[#allocation7 + $0xc0] sm:$0xff] }
 0x27e   :  { %3372 = vmatmul.bf16.gmra.mxu2 %v8877_v13  ;;  %3417 = vmatmul.bf16.gmra.mxu3 %v8878_v29  ;;  %v8881_v52 = vld [vmem:[#allocation16_spill] sm:$0xff] }
 0x27f   :  { %8875 = vst [vmem:[#allocation74_spill] sm:$0xff] %v6719_v40  ;;  %v6725_v25 = vpack.c.b16 %v2564_v56, %v2563_v17 }
 0x280   :  { %8876 = vst [vmem:[#allocation75_spill] sm:$0xff] %v6721_v62  ;;  %v1684_v46 = vpop.f32.mrf.mxu2  ;;  %v1698_v33 = vpop.f32.mrf.mxu3  ;;  %3803 = vmatpush.bf16.msrb.mxu0 %v5778_v42 }
 0x281   :  { %8879 = vst [vmem:[#allocation76_spill] sm:$0xff] %v6725_v25  ;;  %v2065_v37 = vpack.c.bf16 %v1684_v46, %v1684_v46  ;;  %v2067_v51 = vpack.c.bf16 %v1698_v33, %v1698_v33  ;;  %v5791_v46 = vld [vmem:[#allocation7 + $0x128] sm:$0xff] }
 0x282   :  { %v1726_v15 = vpop.f32.mrf.mxu1  ;;  %v6727_v10 = vpop.f32.mrf.mxu0  ;;  %3967 = vmatpush.bf16.msrb.mxu1 %v5791_v46 }
 0x283   :  { %v2071_v32 = vpack.c.bf16 %v1726_v15, %v1726_v15  ;;  %v2565_v30 = vunpack.c.l.b16 %v2065_v37  ;;  %v2567_v9 = vunpack.c.l.b16 %v2067_v51  ;;  %v5766_v15 = vld [vmem:[#allocation7 + $0x60] sm:$0xff] }
 0x284   :  { %3461 = vmatpush.bf16.msrb.mxu2 %v5766_v15 }
 0x285   :  { %v2571_v43 = vunpack.c.l.b16 %v2071_v32  ;;  %v2061_v32 = vpack.c.bf16 %v6634_v58, %v6634_v58 }
 0x286   :  { %3312 = vmatmul.bf16.gmra.mxu0 %v8880_v35  ;;  %3332 = vmatmul.bf16.gmra.mxu1 %v8881_v52 }
 0x287   :  { %3968 = vmatpush.bf16.msrb.mxu1 %v5790_v34 }
 0x288   :  { %v1686_v16 = vpop.f32.mrf.mxu2  ;;  %v1700_v2 = vpop.f32.mrf.mxu3 }
 0x289   :  { %v2066_v56 = vpack.c.bf16 %v1686_v16, %v1686_v16  ;;  %v2068_v17 = vpack.c.bf16 %v1700_v2, %v1700_v2  ;;  %v2062_v2 = vpack.c.bf16 %v6648_v48, %v6648_v48 }
 0x28a   :  { %v1728_v39 = vpop.f32.mrf.mxu1  ;;  %v6731_v0 = vpop.f32.mrf.mxu0 }
 0x28b   :  { %v2566_v50 = vunpack.c.l.b16 %v2066_v56  ;;  %v2568_v60 = vunpack.c.l.b16 %v2068_v17  ;;  %v2072_v42 = vpack.c.bf16 %v1728_v39, %v1728_v39  ;;  %v2562_v17 = vunpack.c.l.b16 %v2062_v2 }
 0x28d   :  { %v2572_v33 = vunpack.c.l.b16 %v2072_v42  ;;  %v6733_v53 = vpack.c.b16 %v2566_v50, %v2565_v30  ;;  %v6735_v7 = vpack.c.b16 %v2568_v60, %v2567_v9  ;;  %v5774_v60 = vld [vmem:[#allocation7 + $0xa0] sm:$0xff]  ;;  %v2561_v9 = vunpack.c.l.b16 %v2061_v32  ;;  %v8886_v42 = vld [vmem:[#allocation17_spill] sm:$0xff] }
 0x28e   :  { %3377 = vmatmul.bf16.gmra.mxu2 %v6640_v54  ;;  %3422 = vmatmul.bf16.gmra.mxu3 %v6389_v14 }
 0x28f   :  { %8882 = vst [vmem:[#allocation77_spill] sm:$0xff] %v6733_v53  ;;  %v6739_v37 = vpack.c.b16 %v2572_v33, %v2571_v43  ;;  %3630 = vmatpush.bf16.msrb.mxu3 %v5774_v60  ;;  %v8885_v43 = vld [vmem:[#allocation14_spill] sm:$0xff]  ;;  %v6751_v3 = vpack.c.b16 %v2562_v17, %v2561_v9  ;;  %v2069_v17 = vpack.c.bf16 %v6676_v18, %v6676_v18 }
 0x290   :  { %8883 = vst [vmem:[#allocation78_spill] sm:$0xff] %v6735_v7  ;;  %v1740_v51 = vpop.f32.mrf.mxu2  ;;  %v1754_v16 = vpop.f32.mrf.mxu3 }
 0x291   :  { %8884 = vst [vmem:[#allocation79_spill] sm:$0xff] %v6739_v37  ;;  %v2073_v30 = vpack.c.bf16 %v1740_v51, %v1740_v51  ;;  %v2075_v39 = vpack.c.bf16 %v1754_v16, %v1754_v16  ;;  %v8890_v37 = vld [vmem:[#allocation25_spill] sm:$0xff] }
 0x292   :  { %v1782_v50 = vpop.f32.mrf.mxu1  ;;  %v6745_v56 = vpop.f32.mrf.mxu0  ;;  %8887 = vst [vmem:[#allocation80_spill] sm:$0xff] %v6751_v3 }
 0x293   :  { %v2079_v46 = vpack.c.bf16 %v1782_v50, %v1782_v50  ;;  %v2573_v14 = vunpack.c.l.b16 %v2073_v30  ;;  %v2575_v48 = vunpack.c.l.b16 %v2075_v39 }
 0x295   :  { %v2579_v32 = vunpack.c.l.b16 %v2079_v46  ;;  %v5765_v46 = vld [vmem:[#allocation7 + $0x58] sm:$0xff] }
 0x296   :  { %3317 = vmatmul.bf16.gmra.mxu0 %v8885_v43  ;;  %3337 = vmatmul.bf16.gmra.mxu1 %v8886_v42 }
 0x297   :  { %3462 = vmatpush.bf16.msrb.mxu2 %v5765_v46 }
 0x298   :  { %v1742_v33 = vpop.f32.mrf.mxu2  ;;  %v1756_v15 = vpop.f32.mrf.mxu3 }
 0x299   :  { %v2074_v58 = vpack.c.bf16 %v1742_v33, %v1742_v33  ;;  %v2076_v54 = vpack.c.bf16 %v1756_v15, %v1756_v15  ;;  %v5773_v33 = vld [vmem:[#allocation7 + $0x98] sm:$0xff]  ;;  %v2569_v15 = vunpack.c.l.b16 %v2069_v17 }
 0x29a   :  { %v1784_v29 = vpop.f32.mrf.mxu1  ;;  %v6749_v23 = vpop.f32.mrf.mxu0  ;;  %3631 = vmatpush.bf16.msrb.mxu3 %v5773_v33  ;;  %v8896_v33 = vld [vmem:[#allocation27_spill] sm:$0xff] }
 0x29b   :  { %v2574_v2 = vunpack.c.l.b16 %v2074_v58  ;;  %v2576_v51 = vunpack.c.l.b16 %v2076_v54  ;;  %v2080_v16 = vpack.c.bf16 %v1784_v29, %v1784_v29  ;;  %v2070_v54 = vpack.c.bf16 %v6687_v5, %v6687_v5 }
 0x29d   :  { %v2580_v60 = vunpack.c.l.b16 %v2080_v16  ;;  %v6753_v22 = vpack.c.b16 %v2574_v2, %v2573_v14  ;;  %v6755_v50 = vpack.c.b16 %v2576_v51, %v2575_v48  ;;  %v2570_v58 = vunpack.c.l.b16 %v2070_v54 }
 0x29e   :  { %3382 = vmatmul.bf16.gmra.mxu2 %v8890_v37  ;;  %3427 = vmatmul.bf16.gmra.mxu3 %v6391_v61 }
 0x29f   :  { %8888 = vst [vmem:[#allocation81_spill] sm:$0xff] %v6753_v22  ;;  %v6759_v30 = vpack.c.b16 %v2580_v60, %v2579_v32  ;;  %v8892_v32 = vld [vmem:[#allocation18_spill] sm:$0xff]  ;;  %v6771_v46 = vpack.c.b16 %v2570_v58, %v2569_v15  ;;  %v5789_v22 = vld [vmem:[#allocation7 + $0x118] sm:$0xff]  ;;  %v2077_v58 = vpack.c.bf16 %v6709_v45, %v6709_v45 }
 0x2a0   :  { %8889 = vst [vmem:[#allocation82_spill] sm:$0xff] %v6755_v50  ;;  %v1796_v39 = vpop.f32.mrf.mxu2  ;;  %v1810_v9 = vpop.f32.mrf.mxu3  ;;  %3969 = vmatpush.bf16.msrb.mxu1 %v5789_v22  ;;  %v8898_v22 = vld [vmem:[#allocation19_spill] sm:$0xff] }
 0x2a1   :  { %8891 = vst [vmem:[#allocation83_spill] sm:$0xff] %v6759_v30  ;;  %v2081_v48 = vpack.c.bf16 %v1796_v39, %v1796_v39  ;;  %v2083_v34 = vpack.c.bf16 %v1810_v9, %v1810_v9 }
 0x2a2   :  { %v1838_v29 = vpop.f32.mrf.mxu1  ;;  %v6765_v14 = vpop.f32.mrf.mxu0  ;;  %8893 = vst [vmem:[#allocation84_spill] sm:$0xff] %v6771_v46 }
 0x2a3   :  { %v2087_v2 = vpack.c.bf16 %v1838_v29, %v1838_v29  ;;  %v2581_v60 = vunpack.c.l.b16 %v2081_v48  ;;  %v2583_v61 = vunpack.c.l.b16 %v2083_v34 }
 0x2a5   :  { %v2585_v17 = vunpack.c.l.b16 %v2087_v2 }
 0x2a6   :  { %3342 = vmatmul.bf16.gmra.mxu1 %v8892_v32  ;;  %3804 = vmatmul.bf16.vlgmr.msrb.gmra.mxu0 %v6681_v47 }
 0x2a8   :  { %v1798_v18 = vpop.f32.mrf.mxu2  ;;  %v1812_v51 = vpop.f32.mrf.mxu3 }
 0x2a9   :  { %v2082_v16 = vpack.c.bf16 %v1798_v18, %v1798_v18  ;;  %v2084_v5 = vpack.c.bf16 %v1812_v51, %v1812_v51  ;;  %v5772_v51 = vld [vmem:[#allocation7 + $0x90] sm:$0xff] }
 0x2aa   :  { %v1840_v30 = vpop.f32.mrf.mxu1  ;;  %v6769_v50 = vpop.f32.mrf.mxu0  ;;  %3632 = vmatpush.bf16.msrb.mxu3 %v5772_v51  ;;  %v5788_v51 = vld [vmem:[#allocation7 + $0x110] sm:$0xff] }
 0x2ab   :  { %v2582_v39 = vunpack.c.l.b16 %v2082_v16  ;;  %v2584_v9 = vunpack.c.l.b16 %v2084_v5  ;;  %v2088_v54 = vpack.c.bf16 %v1840_v30, %v1840_v30  ;;  %v2078_v30 = vpack.c.bf16 %v6715_v63, %v6715_v63  ;;  %3970 = vmatpush.bf16.msrb.mxu1 %v5788_v51 }
 0x2ac   :  { %v2577_v16 = vunpack.c.l.b16 %v2077_v58 }
 0x2ad   :  { %v2586_v37 = vunpack.c.l.b16 %v2088_v54  ;;  %v6773_v47 = vpack.c.b16 %v2582_v39, %v2581_v60  ;;  %v6775_v29 = vpack.c.b16 %v2584_v9, %v2583_v61  ;;  %v5764_v61 = vld [vmem:[#allocation7 + $0x50] sm:$0xff]  ;;  %v2578_v5 = vunpack.c.l.b16 %v2078_v30 }
 0x2ae   :  { %3387 = vmatmul.bf16.gmra.mxu2 %v8896_v33  ;;  %3432 = vmatmul.bf16.gmra.mxu3 %v6397_v28 }
 0x2af   :  { %8894 = vst [vmem:[#allocation85_spill] sm:$0xff] %v6773_v47  ;;  %v6779_v48 = vpack.c.b16 %v2586_v37, %v2585_v17  ;;  %3463 = vmatpush.bf16.msrb.mxu2 %v5764_v61  ;;  %v6791_v58 = vpack.c.b16 %v2578_v5, %v2577_v16  ;;  %v8901_v61 = vld [vmem:[#allocation28_spill] sm:$0xff]  ;;  %v2085_v16 = vpack.c.bf16 %v6727_v10, %v6727_v10 }
 0x2b0   :  { %8895 = vst [vmem:[#allocation86_spill] sm:$0xff] %v6775_v29  ;;  %v1852_v34 = vpop.f32.mrf.mxu2  ;;  %v1866_v15 = vpop.f32.mrf.mxu3 }
 0x2b1   :  { %8897 = vst [vmem:[#allocation87_spill] sm:$0xff] %v6779_v48  ;;  %v2089_v60 = vpack.c.bf16 %v1852_v34, %v1852_v34  ;;  %v2091_v39 = vpack.c.bf16 %v1866_v15, %v1866_v15 }
 0x2b2   :  { %v1894_v2 = vpop.f32.mrf.mxu1  ;;  %v6785_v18 = vpop.f32.mrf.mxu0 }
 0x2b3   :  { %v2095_v37 = vpack.c.bf16 %v1894_v2, %v1894_v2  ;;  %v2587_v54 = vunpack.c.l.b16 %v2089_v60  ;;  %v2589_v28 = vunpack.c.l.b16 %v2091_v39 }
 0x2b5   :  { %v2593_v34 = vunpack.c.l.b16 %v2095_v37  ;;  %v2705_v37 = vunpack.c.l.b16 %v2085_v16 }
 0x2b6   :  { %3347 = vmatmul.bf16.gmra.mxu1 %v8898_v22  ;;  %3809 = vmatmul.bf16.gmra.mxu0 %v6711_v1 }
 0x2b8   :  { %v1854_v45 = vpop.f32.mrf.mxu2  ;;  %v1868_v17 = vpop.f32.mrf.mxu3 }
 0x2b9   :  { %v2090_v9 = vpack.c.bf16 %v1854_v45, %v1854_v45  ;;  %v2092_v63 = vpack.c.bf16 %v1868_v17, %v1868_v17 }
 0x2ba   :  { %v1896_v48 = vpop.f32.mrf.mxu1  ;;  %v6789_v29 = vpop.f32.mrf.mxu0 }
 0x2bb   :  { %v2588_v15 = vunpack.c.l.b16 %v2090_v9  ;;  %v2590_v30 = vunpack.c.l.b16 %v2092_v63  ;;  %v2096_v47 = vpack.c.bf16 %v1896_v48, %v1896_v48 }
 0x2bd   :  { %v2594_v33 = vunpack.c.l.b16 %v2096_v47  ;;  %v6793_v1 = vpack.c.b16 %v2588_v15, %v2587_v54  ;;  %v6795_v2 = vpack.c.b16 %v2590_v30, %v2589_v28  ;;  %v2086_v47 = vpack.c.bf16 %v6731_v0, %v6731_v0  ;;  %v5763_v28 = vld [vmem:[#allocation7 + $0x48] sm:$0xff] }
 0x2be   :  { %3392 = vmatmul.bf16.gmra.mxu2 %v8901_v61  ;;  %3437 = vmatmul.bf16.gmra.mxu3 %v6413_v38  ;;  %v5771_v54 = vld [vmem:[#allocation7 + $0x88] sm:$0xff] }
 0x2bf   :  { %8899 = vst [vmem:[#allocation88_spill] sm:$0xff] %v6793_v1  ;;  %v6799_v60 = vpack.c.b16 %v2594_v33, %v2593_v34  ;;  %3464 = vmatpush.bf16.msrb.mxu2 %v5763_v28  ;;  %v2706_v17 = vunpack.c.l.b16 %v2086_v47  ;;  %v8903_v33 = vld [vmem:[#allocation20_spill] sm:$0xff]  ;;  %3633 = vmatpush.bf16.msrb.mxu3 %v5771_v54  ;;  %v8907_v54 = vld [vmem:[#allocation29_spill] sm:$0xff] }
 0x2c0   :  { %8900 = vst [vmem:[#allocation89_spill] sm:$0xff] %v6795_v2  ;;  %v1908_v39 = vpop.f32.mrf.mxu2  ;;  %v1922_v45 = vpop.f32.mrf.mxu3 }
 0x2c1   :  { %8902 = vst [vmem:[#allocation90_spill] sm:$0xff] %v6799_v60  ;;  %v2097_v9 = vpack.c.bf16 %v1908_v39, %v1908_v39  ;;  %v2099_v63 = vpack.c.bf16 %v1922_v45, %v1922_v45  ;;  %v6811_v16 = vpack.c.b16 %v2706_v17, %v2705_v37  ;;  %v5786_v17 = vld [vmem:[#allocation7 + $0x100] sm:$0xff] }
 0x2c2   :  { %v1950_v48 = vpop.f32.mrf.mxu1  ;;  %v6805_v5 = vpop.f32.mrf.mxu0 }
 0x2c3   :  { %v2103_v34 = vpack.c.bf16 %v1950_v48, %v1950_v48  ;;  %v2595_v51 = vunpack.c.l.b16 %v2097_v9  ;;  %v2597_v38 = vunpack.c.l.b16 %v2099_v63  ;;  %8904 = vst [vmem:[#allocation91_spill] sm:$0xff] %v6811_v16 }
 0x2c5   :  { %v2601_v39 = vunpack.c.l.b16 %v2103_v34  ;;  %v2093_v34 = vpack.c.bf16 %v6745_v56, %v6745_v56 }
 0x2c6   :  { %3352 = vmatmul.bf16.gmra.mxu1 %v8903_v33  ;;  %3814 = vmatmul.bf16.gmra.mxu0 %v8880_v35  ;;  %v5787_v35 = vld [vmem:[#allocation7 + $0x108] sm:$0xff] }
 0x2c7   :  { %3971 = vmatpush.bf16.msrb.mxu1 %v5787_v35  ;;  %v8909_v35 = vld [vmem:[#allocation21_spill] sm:$0xff] }
 0x2c8   :  { %v1910_v15 = vpop.f32.mrf.mxu2  ;;  %v1924_v10 = vpop.f32.mrf.mxu3 }
 0x2c9   :  { %v2098_v30 = vpack.c.bf16 %v1910_v15, %v1910_v15  ;;  %v2100_v0 = vpack.c.bf16 %v1924_v10, %v1924_v10 }
 0x2ca   :  { %v1952_v60 = vpop.f32.mrf.mxu1  ;;  %v6809_v2 = vpop.f32.mrf.mxu0 }
 0x2cb   :  { %v2596_v45 = vunpack.c.l.b16 %v2098_v30  ;;  %v2598_v47 = vunpack.c.l.b16 %v2100_v0  ;;  %v2104_v28 = vpack.c.bf16 %v1952_v60, %v1952_v60  ;;  %v2094_v60 = vpack.c.bf16 %v6749_v23, %v6749_v23  ;;  %3972 = vmatpush.bf16.msrb.mxu1 %v5786_v17  ;;  %v5770_v23 = vld [vmem:[#allocation7 + $0x80] sm:$0xff] }
 0x2cc   :  { %3634 = vmatpush.bf16.msrb.mxu3 %v5770_v23 }
 0x2cd   :  { %v2602_v1 = vunpack.c.l.b16 %v2104_v28  ;;  %v6813_v61 = vpack.c.b16 %v2596_v45, %v2595_v51  ;;  %v6815_v48 = vpack.c.b16 %v2598_v47, %v2597_v38  ;;  %v2591_v38 = vunpack.c.l.b16 %v2093_v34 }
 0x2ce   :  { %3397 = vmatmul.bf16.gmra.mxu2 %v8907_v54  ;;  %3442 = vmatmul.bf16.gmra.mxu3 %v6415_v24  ;;  %v2592_v30 = vunpack.c.l.b16 %v2094_v60 }
 0x2cf   :  { %8905 = vst [vmem:[#allocation92_spill] sm:$0xff] %v6813_v61  ;;  %v6819_v9 = vpack.c.b16 %v2602_v1, %v2601_v39  ;;  %v5762_v1 = vld [vmem:[#allocation7 + $0x40] sm:$0xff] }
 0x2d0   :  { %8906 = vst [vmem:[#allocation93_spill] sm:$0xff] %v6815_v48  ;;  %v1964_v63 = vpop.f32.mrf.mxu2  ;;  %v1978_v37 = vpop.f32.mrf.mxu3  ;;  %3465 = vmatpush.bf16.msrb.mxu2 %v5762_v1  ;;  %v6829_v17 = vpack.c.b16 %v2592_v30, %v2591_v38  ;;  %v8913_v1 = vld [vmem:[#allocation30_spill] sm:$0xff] }
 0x2d1   :  { %8908 = vst [vmem:[#allocation94_spill] sm:$0xff] %v6819_v9  ;;  %v2105_v0 = vpack.c.bf16 %v1964_v63, %v1964_v63  ;;  %v2107_v51 = vpack.c.bf16 %v1978_v37, %v1978_v37 }
 0x2d2   :  { %v2006_v15 = vpop.f32.mrf.mxu1  ;;  %8910 = vst [vmem:[#allocation95_spill] sm:$0xff] %v6829_v17 }
 0x2d3   :  { %v6825_v10 = vpop.f32.mrf.mxu0  ;;  %v2111_v39 = vpack.c.bf16 %v2006_v15, %v2006_v15  ;;  %v2603_v16 = vunpack.c.l.b16 %v2105_v0  ;;  %v2605_v9 = vunpack.c.l.b16 %v2107_v51  ;;  %v2101_v51 = vpack.c.bf16 %v6765_v14, %v6765_v14  ;;  %v5801_v14 = vld [vmem:[#allocation7 + $0x178] sm:$0xff] }
 0x2d4   :  { %4134 = vmatpush.bf16.msra.mxu2 %v5801_v14 }
 0x2d5   :  { %v2609_v34 = vunpack.c.l.b16 %v2111_v39 }
 0x2d6   :  { %3357 = vmatmul.bf16.gmra.mxu1 %v8909_v35  ;;  %3819 = vmatmul.bf16.gmra.mxu0 %v8885_v43 }
 0x2d8   :  { %v1966_v45 = vpop.f32.mrf.mxu2  ;;  %v1980_v47 = vpop.f32.mrf.mxu3 }
 0x2d9   :  { %v2106_v56 = vpack.c.bf16 %v1966_v45, %v1966_v45  ;;  %v2108_v28 = vpack.c.bf16 %v1980_v47, %v1980_v47  ;;  %v8915_v47 = vld [vmem:[#allocation23_spill] sm:$0xff] }
 0x2da   :  { %v2008_v48 = vpop.f32.mrf.mxu1 }
 0x2db   :  { %v2604_v63 = vunpack.c.l.b16 %v2106_v56  ;;  %v2606_v37 = vunpack.c.l.b16 %v2108_v28  ;;  %v2112_v60 = vpack.c.bf16 %v2008_v48, %v2008_v48  ;;  %v6831_v24 = vpop.f32.mrf.mxu0  ;;  %v2102_v48 = vpack.c.bf16 %v6769_v50, %v6769_v50 }
 0x2dd   :  { %v2610_v43 = vunpack.c.l.b16 %v2112_v60  ;;  %v6833_v15 = vpack.c.b16 %v2604_v63, %v2603_v16  ;;  %v6835_v61 = vpack.c.b16 %v2606_v37, %v2605_v9  ;;  %v2599_v9 = vunpack.c.l.b16 %v2101_v51 }
 0x2de   :  { %3402 = vmatmul.bf16.gmra.mxu2 %v8913_v1  ;;  %3447 = vmatmul.bf16.gmra.mxu3 %v6457_v19  ;;  %v2600_v45 = vunpack.c.l.b16 %v2102_v48  ;;  %v5809_v48 = vld [vmem:[#allocation7 + $0x1b8] sm:$0xff]  ;;  %v5823_v19 = vld [vmem:[#allocation7 + $0x228] sm:$0xff] }
 0x2df   :  { %8911 = vst [vmem:[#allocation96_spill] sm:$0xff] %v6833_v15  ;;  %v6839_v0 = vpack.c.b16 %v2610_v43, %v2609_v34  ;;  %4303 = vmatpush.bf16.msra.mxu3 %v5809_v48 }
 0x2e0   :  { %8912 = vst [vmem:[#allocation97_spill] sm:$0xff] %v6835_v61  ;;  %v2020_v38 = vpop.f32.mrf.mxu2  ;;  %v2034_v30 = vpop.f32.mrf.mxu3  ;;  %v6851_v37 = vpack.c.b16 %v2600_v45, %v2599_v9 }
 0x2e1   :  { %8914 = vst [vmem:[#allocation98_spill] sm:$0xff] %v6839_v0  ;;  %v2113_v43 = vpack.c.bf16 %v2020_v38, %v2020_v38  ;;  %v2115_v56 = vpack.c.bf16 %v2034_v30, %v2034_v30 }
 0x2e2   :  { %8916 = vst [vmem:[#allocation99_spill] sm:$0xff] %v6851_v37 }
 0x2e3   :  { %v6845_v39 = vpop.f32.mrf.mxu0  ;;  %v6847_v16 = vpop.f32.mrf.mxu1  ;;  %v2611_v50 = vunpack.c.l.b16 %v2113_v43  ;;  %v2613_v60 = vunpack.c.l.b16 %v2115_v56  ;;  %v2109_v43 = vpack.c.bf16 %v6785_v18, %v6785_v18  ;;  %v2110_v56 = vpack.c.bf16 %v6789_v29, %v6789_v29 }
 0x2e5   :  { %v2608_v14 = vunpack.c.l.b16 %v2110_v56 }
 0x2e6   :  { %3362 = vmatmul.bf16.gmra.mxu1 %v8915_v47  ;;  %3824 = vmatmul.bf16.gmra.mxu0 %v6238_v41 }
 0x2e8   :  { %v2022_v28 = vpop.f32.mrf.mxu2  ;;  %v2036_v23 = vpop.f32.mrf.mxu3 }
 0x2e9   :  { %v2114_v34 = vpack.c.bf16 %v2022_v28, %v2022_v28  ;;  %v2116_v63 = vpack.c.bf16 %v2036_v23, %v2036_v23  ;;  %v8919_v28 = vld [vmem:[#allocation32_spill] sm:$0xff] }
 0x2eb   :  { %v2612_v0 = vunpack.c.l.b16 %v2114_v34  ;;  %v2614_v61 = vunpack.c.l.b16 %v2116_v63  ;;  %v6853_v15 = vpop.f32.mrf.mxu0  ;;  %v6855_v51 = vpop.f32.mrf.mxu1  ;;  %v5825_v34 = vld [vmem:[#allocation7 + $0x238] sm:$0xff]  ;;  %v2607_v63 = vunpack.c.l.b16 %v2109_v43 }
 0x2ec   :  { %4641 = vmatpush.bf16.msra.mxu1 %v5825_v34  ;;  %v2118_v34 = vpack.c.bf16 %v6809_v2, %v6809_v2 }
 0x2ed   :  { %v6857_v38 = vpack.c.b16 %v2612_v0, %v2611_v50  ;;  %v6859_v30 = vpack.c.b16 %v2614_v61, %v2613_v60  ;;  %v5817_v61 = vld [vmem:[#allocation7 + $0x1f8] sm:$0xff]  ;;  %v6881_v60 = vpack.c.b16 %v2608_v14, %v2607_v63 }
 0x2ee   :  { %3407 = vmatmul.bf16.gmra.mxu2 %v8919_v28  ;;  %3452 = vmatmul.bf16.gmra.mxu3 %v6419_v4  ;;  %v2708_v41 = vunpack.c.l.b16 %v2118_v34  ;;  %v5824_v4 = vld [vmem:[#allocation7 + $0x230] sm:$0xff] }
 0x2ef   :  { %8917 = vst [vmem:[#allocation100_spill] sm:$0xff] %v6857_v38  ;;  %4472 = vmatpush.bf16.msra.mxu0 %v5817_v61  ;;  %v2117_v61 = vpack.c.bf16 %v6805_v5, %v6805_v5 }
 0x2f0   :  { %8918 = vst [vmem:[#allocation101_spill] sm:$0xff] %v6859_v30  ;;  %4642 = vmatpush.bf16.msra.mxu1 %v5824_v4 }
 0x2f1   :  { %v6863_v9 = vpop.f32.mrf.mxu2  ;;  %v6865_v45 = vpop.f32.mrf.mxu3  ;;  %8924 = vst [vmem:[#allocation106_spill] sm:$0xff] %v6881_v60  ;;  %v5800_v60 = vld [vmem:[#allocation7 + $0x170] sm:$0xff] }
 0x2f2   :  { %8920 = vst [vmem:[#allocation102_spill] sm:$0xff] %v6863_v9  ;;  %4135 = vmatpush.bf16.msra.mxu2 %v5800_v60 }
 0x2f3   :  { %8921 = vst [vmem:[#allocation103_spill] sm:$0xff] %v6865_v45  ;;  %v6871_v23 = vpop.f32.mrf.mxu0  ;;  %v6873_v0 = vpop.f32.mrf.mxu1 }
 0x2f4   :  { %4643 = vmatpush.bf16.msra.mxu1 %v5823_v19 }
 0x2f6   :  { %3829 = vmatmul.bf16.gmra.mxu0 %v8873_v6  ;;  %3973 = vmatmul.bf16.vlgmr.msrb.gmra.mxu1 %v6395_v59  ;;  %v2707_v6 = vunpack.c.l.b16 %v2117_v61 }
 0x2f9   :  { %v6877_v50 = vpop.f32.mrf.mxu2  ;;  %v6879_v18 = vpop.f32.mrf.mxu3 }
 0x2fa   :  { %8922 = vst [vmem:[#allocation104_spill] sm:$0xff] %v6877_v50 }
 0x2fb   :  { %8923 = vst [vmem:[#allocation105_spill] sm:$0xff] %v6879_v18  ;;  %v6883_v29 = vpop.f32.mrf.mxu0  ;;  %v6885_v48 = vpop.f32.mrf.mxu1 }
 0x2fe   :  { %3466 = vmatmul.bf16.vlgmr.msrb.gmra.mxu2 %v6431_v8  ;;  %3635 = vmatmul.bf16.vlgmr.msrb.gmra.mxu3 %v6622_v36 }
 0x301   :  { %v6889_v43 = vpop.f32.mrf.mxu2  ;;  %v6891_v56 = vpop.f32.mrf.mxu3 }
 0x302   :  { %8925 = vst [vmem:[#allocation107_spill] sm:$0xff] %v6889_v43 }
 0x303   :  { %8926 = vst [vmem:[#allocation108_spill] sm:$0xff] %v6891_v56  ;;  %v6897_v63 = vpop.f32.mrf.mxu0  ;;  %v6899_v14 = vpop.f32.mrf.mxu1  ;;  %v6907_v56 = vpack.c.b16 %v2708_v41, %v2707_v6 }
 0x305   :  { %8929 = vst [vmem:[#allocation111_spill] sm:$0xff] %v6907_v56 }
 0x306   :  { %3834 = vmatmul.bf16.gmra.mxu0 %v8881_v52  ;;  %3978 = vmatmul.bf16.gmra.mxu1 %v6441_v44 }
 0x309   :  { %v6903_v18 = vpop.f32.mrf.mxu2  ;;  %v6905_v45 = vpop.f32.mrf.mxu3 }
 0x30a   :  { %8927 = vst [vmem:[#allocation109_spill] sm:$0xff] %v6903_v18 }
 0x30b   :  { %8928 = vst [vmem:[#allocation110_spill] sm:$0xff] %v6905_v45  ;;  %v6909_v5 = vpop.f32.mrf.mxu0  ;;  %v6911_v30 = vpop.f32.mrf.mxu1 }
 0x30e   :  { %3471 = vmatmul.bf16.gmra.mxu2 %v6395_v59  ;;  %3640 = vmatmul.bf16.gmra.mxu3 %v6703_v20 }
 0x311   :  { %v6915_v2 = vpop.f32.mrf.mxu2  ;;  %v6917_v61 = vpop.f32.mrf.mxu3 }
 0x312   :  { %8930 = vst [vmem:[#allocation112_spill] sm:$0xff] %v6915_v2 }
 0x313   :  { %8931 = vst [vmem:[#allocation113_spill] sm:$0xff] %v6917_v61  ;;  %v6919_v34 = vpop.f32.mrf.mxu0  ;;  %v6921_v52 = vpop.f32.mrf.mxu1 }
 0x316   :  { %3839 = vmatmul.bf16.gmra.mxu0 %v8886_v42  ;;  %3983 = vmatmul.bf16.gmra.mxu1 %v6463_v27 }
 0x319   :  { %v6925_v41 = vpop.f32.mrf.mxu2  ;;  %v6927_v6 = vpop.f32.mrf.mxu3 }
 0x31a   :  { %8932 = vst [vmem:[#allocation114_spill] sm:$0xff] %v6925_v41 }
 0x31b   :  { %8933 = vst [vmem:[#allocation115_spill] sm:$0xff] %v6927_v6  ;;  %v6929_v56 = vpop.f32.mrf.mxu0  ;;  %v6931_v59 = vpop.f32.mrf.mxu1 }
 0x31e   :  { %3476 = vmatmul.bf16.gmra.mxu2 %v6441_v44  ;;  %3645 = vmatmul.bf16.gmra.mxu3 %v6719_v40 }
 0x321   :  { %v6935_v61 = vpop.f32.mrf.mxu2  ;;  %v6937_v45 = vpop.f32.mrf.mxu3 }
 0x322   :  { %8934 = vst [vmem:[#allocation116_spill] sm:$0xff] %v6935_v61  ;;  %v5808_v61 = vld [vmem:[#allocation7 + $0x1b0] sm:$0xff] }
 0x323   :  { %8935 = vst [vmem:[#allocation117_spill] sm:$0xff] %v6937_v45  ;;  %v6939_v20 = vpop.f32.mrf.mxu1  ;;  %v6941_v42 = vpop.f32.mrf.mxu0  ;;  %4304 = vmatpush.bf16.msra.mxu3 %v5808_v61 }
 0x326   :  { %3844 = vmatmul.bf16.gmra.mxu0 %v8892_v32  ;;  %3988 = vmatmul.bf16.gmra.mxu1 %v6465_v21 }
 0x329   :  { %v6945_v6 = vpop.f32.mrf.mxu2  ;;  %v6947_v38 = vpop.f32.mrf.mxu3 }
 0x32a   :  { %8936 = vst [vmem:[#allocation118_spill] sm:$0xff] %v6945_v6 }
 0x32b   :  { %8937 = vst [vmem:[#allocation119_spill] sm:$0xff] %v6947_v38  ;;  %v6949_v44 = vpop.f32.mrf.mxu1  ;;  %v6951_v40 = vpop.f32.mrf.mxu0  ;;  %v5816_v38 = vld [vmem:[#allocation7 + $0x1f0] sm:$0xff] }
 0x32c   :  { %4473 = vmatpush.bf16.msra.mxu0 %v5816_v38 }
 0x32e   :  { %3481 = vmatmul.bf16.gmra.mxu2 %v6463_v27  ;;  %3650 = vmatmul.bf16.gmra.mxu3 %v6721_v62 }
 0x331   :  { %v6955_v45 = vpop.f32.mrf.mxu2  ;;  %v6957_v32 = vpop.f32.mrf.mxu3 }
 0x332   :  { %8938 = vst [vmem:[#allocation120_spill] sm:$0xff] %v6955_v45 }
 0x333   :  { %8939 = vst [vmem:[#allocation121_spill] sm:$0xff] %v6957_v32  ;;  %v6959_v41 = vpop.f32.mrf.mxu1  ;;  %v6961_v6 = vpop.f32.mrf.mxu0 }
 0x336   :  { %3849 = vmatmul.bf16.gmra.mxu0 %v8898_v22  ;;  %3993 = vmatmul.bf16.gmra.mxu1 %v6507_v11 }
 0x339   :  { %v6965_v60 = vpop.f32.mrf.mxu2  ;;  %v6967_v61 = vpop.f32.mrf.mxu3 }
 0x33a   :  { %8940 = vst [vmem:[#allocation122_spill] sm:$0xff] %v6965_v60 }
 0x33b   :  { %8941 = vst [vmem:[#allocation123_spill] sm:$0xff] %v6967_v61  ;;  %v6969_v62 = vpop.f32.mrf.mxu1  ;;  %v6971_v27 = vpop.f32.mrf.mxu0 }
 0x33e   :  { %3486 = vmatmul.bf16.gmra.mxu2 %v6465_v21  ;;  %3655 = vmatmul.bf16.gmra.mxu3 %v6751_v3 }
 0x341   :  { %v6975_v32 = vpop.f32.mrf.mxu2  ;;  %v6977_v38 = vpop.f32.mrf.mxu3 }
 0x342   :  { %8942 = vst [vmem:[#allocation124_spill] sm:$0xff] %v6975_v32 }
 0x343   :  { %8943 = vst [vmem:[#allocation125_spill] sm:$0xff] %v6977_v38  ;;  %v6979_v4 = vpop.f32.mrf.mxu1  ;;  %v6981_v22 = vpop.f32.mrf.mxu0 }
 0x346   :  { %3854 = vmatmul.bf16.gmra.mxu0 %v8903_v33  ;;  %3998 = vmatmul.bf16.gmra.mxu1 %v6469_v49 }
 0x349   :  { %v6985_v61 = vpop.f32.mrf.mxu2  ;;  %v6987_v60 = vpop.f32.mrf.mxu3 }
 0x34a   :  { %8944 = vst [vmem:[#allocation126_spill] sm:$0xff] %v6985_v61 }
 0x34b   :  { %8945 = vst [vmem:[#allocation127_spill] sm:$0xff] %v6987_v60  ;;  %v6989_v45 = vpop.f32.mrf.mxu1  ;;  %v6991_v21 = vpop.f32.mrf.mxu0 }
 0x34e   :  { %3491 = vmatmul.bf16.gmra.mxu2 %v6507_v11  ;;  %3660 = vmatmul.bf16.gmra.mxu3 %v6725_v25 }
 0x351   :  { %v6995_v38 = vpop.f32.mrf.mxu2  ;;  %v6997_v3 = vpop.f32.mrf.mxu3 }
 0x352   :  { %8946 = vst [vmem:[#allocation128_spill] sm:$0xff] %v6995_v38 }
 0x353   :  { %8947 = vst [vmem:[#allocation129_spill] sm:$0xff] %v6997_v3  ;;  %v6999_v32 = vpop.f32.mrf.mxu1  ;;  %v7001_v33 = vpop.f32.mrf.mxu0 }
 0x356   :  { %3859 = vmatmul.bf16.gmra.mxu0 %v8909_v35  ;;  %4003 = vmatmul.bf16.gmra.mxu1 %v6485_v55 }
 0x359   :  { %v7005_v60 = vpop.f32.mrf.mxu2  ;;  %v7007_v61 = vpop.f32.mrf.mxu3 }
 0x35a   :  { %8948 = vst [vmem:[#allocation130_spill] sm:$0xff] %v7005_v60 }
 0x35b   :  { %8949 = vst [vmem:[#allocation131_spill] sm:$0xff] %v7007_v61  ;;  %v7009_v2 = vpop.f32.mrf.mxu1  ;;  %v7011_v11 = vpop.f32.mrf.mxu0 }
 0x35e   :  { %3496 = vmatmul.bf16.gmra.mxu2 %v6469_v49  ;;  %3665 = vmatmul.bf16.gmra.mxu3 %v6733_v53  ;;  %v5807_v53 = vld [vmem:[#allocation7 + $0x1a8] sm:$0xff] }
 0x35f   :  { %4305 = vmatpush.bf16.msra.mxu3 %v5807_v53 }
 0x361   :  { %v7015_v3 = vpop.f32.mrf.mxu2  ;;  %v7017_v25 = vpop.f32.mrf.mxu3 }
 0x362   :  { %8950 = vst [vmem:[#allocation132_spill] sm:$0xff] %v7015_v3 }
 0x363   :  { %8951 = vst [vmem:[#allocation133_spill] sm:$0xff] %v7017_v25  ;;  %v7019_v38 = vpop.f32.mrf.mxu1  ;;  %v7021_v35 = vpop.f32.mrf.mxu0  ;;  %v5799_v25 = vld [vmem:[#allocation7 + $0x168] sm:$0xff] }
 0x364   :  { %4136 = vmatpush.bf16.msra.mxu2 %v5799_v25 }
 0x366   :  { %3864 = vmatmul.bf16.gmra.mxu0 %v8915_v47  ;;  %4008 = vmatmul.bf16.gmra.mxu1 %v6487_v57 }
 0x369   :  { %v7025_v61 = vpop.f32.mrf.mxu2  ;;  %v7027_v60 = vpop.f32.mrf.mxu3 }
 0x36a   :  { %8952 = vst [vmem:[#allocation134_spill] sm:$0xff] %v7025_v61 }
 0x36b   :  { %8953 = vst [vmem:[#allocation135_spill] sm:$0xff] %v7027_v60  ;;  %v7029_v37 = vpop.f32.mrf.mxu1  ;;  %v7031_v49 = vpop.f32.mrf.mxu0  ;;  %v5815_v60 = vld [vmem:[#allocation7 + $0x1e8] sm:$0xff] }
 0x36c   :  { %8954 = vst [vmem:[#allocation136_spill] sm:$0xff] %v7029_v37  ;;  %4474 = vmatpush.bf16.msra.mxu0 %v5815_v60 }
 0x36e   :  { %3501 = vmatmul.bf16.gmra.mxu2 %v6485_v55  ;;  %3670 = vmatmul.bf16.gmra.mxu3 %v6735_v7 }
 0x371   :  { %v7035_v3 = vpop.f32.mrf.mxu2  ;;  %v7037_v47 = vpop.f32.mrf.mxu3 }
 0x372   :  { %8955 = vst [vmem:[#allocation137_spill] sm:$0xff] %v7035_v3 }
 0x373   :  { %8956 = vst [vmem:[#allocation138_spill] sm:$0xff] %v7037_v47  ;;  %v7039_v18 = vpop.f32.mrf.mxu0  ;;  %v3974_v61 = vpop.f32.mrf.mxu1 }
 0x376   :  { %3869 = vmatmul.bf16.gmra.mxu0 %v6298_v31  ;;  %4013 = vmatmul.bf16.gmra.mxu1 %v6535_v26 }
 0x379   :  { %v7043_v7 = vpop.f32.mrf.mxu2  ;;  %v7045_v55 = vpop.f32.mrf.mxu3 }
 0x37a   :  { %8957 = vst [vmem:[#allocation139_spill] sm:$0xff] %v7043_v7 }
 0x37b   :  { %8958 = vst [vmem:[#allocation140_spill] sm:$0xff] %v7045_v55  ;;  %v7047_v53 = vpop.f32.mrf.mxu0  ;;  %v3976_v25 = vpop.f32.mrf.mxu1 }
 0x37e   :  { %3506 = vmatmul.bf16.gmra.mxu2 %v6487_v57  ;;  %3675 = vmatmul.bf16.gmra.mxu3 %v6771_v46 }
 0x381   :  { %v3467_v47 = vpop.f32.mrf.mxu2  ;;  %v3636_v3 = vpop.f32.mrf.mxu3 }
 0x382   :  { %v3468_v31 = vadd.f32 %v3467_v47, %v6825_v10 }
 0x383   :  { %v7052_v43 = vpop.f32.mrf.mxu0  ;;  %v3979_v50 = vpop.f32.mrf.mxu1 }
 0x384   :  { %v3637_v60 = vadd.f32 %v3636_v3, %v3468_v31  ;;  %v8960_v31 = vld [vmem:[#allocation79_spill] sm:$0xff] }
 0x386   :  { %v3806_v19 = vadd.f32 %v6941_v42, %v3637_v60  ;;  %3874 = vmatmul.bf16.gmra.mxu0 %v8877_v13  ;;  %4018 = vmatmul.bf16.gmra.mxu1 %v6491_v12 }
 0x388   :  { %v7057_v55 = vadd.f32 %v3974_v61, %v3806_v19 }
 0x389   :  { %v3469_v7 = vpop.f32.mrf.mxu2  ;;  %v3638_v57 = vpop.f32.mrf.mxu3 }
 0x38a   :  { %8959 = vst [vmem:[#allocation141_spill] sm:$0xff] %v7057_v55  ;;  %v3470_v46 = vadd.f32 %v3469_v7, %v6831_v24  ;;  %v8962_v55 = vld [vmem:[#allocation26_spill] sm:$0xff] }
 0x38b   :  { %v7060_v9 = vpop.f32.mrf.mxu0  ;;  %v3981_v37 = vpop.f32.mrf.mxu1 }
 0x38c   :  { %v3639_v10 = vadd.f32 %v3638_v57, %v3470_v46  ;;  %v8963_v57 = vld [vmem:[#allocation49_spill] sm:$0xff] }
 0x38e   :  { %v3808_v47 = vadd.f32 %v6951_v40, %v3639_v10  ;;  %3511 = vmatmul.bf16.gmra.mxu2 %v6535_v26  ;;  %3680 = vmatmul.bf16.gmra.mxu3 %v8960_v31 }
 0x390   :  { %v7065_v3 = vadd.f32 %v3976_v25, %v3808_v47 }
 0x391   :  { %v3472_v42 = vpop.f32.mrf.mxu2  ;;  %v3641_v60 = vpop.f32.mrf.mxu3 }
 0x392   :  { %8961 = vst [vmem:[#allocation79_spill] sm:$0xff] %v7065_v3  ;;  %v3473_v61 = vadd.f32 %v3472_v42, %v6845_v39 }
 0x393   :  { %v7068_v19 = vpop.f32.mrf.mxu0  ;;  %v3984_v13 = vpop.f32.mrf.mxu1 }
 0x394   :  { %v3642_v24 = vadd.f32 %v3641_v60, %v3473_v61  ;;  %v8965_v60 = vld [vmem:[#allocation81_spill] sm:$0xff] }
 0x396   :  { %v3811_v7 = vadd.f32 %v6961_v6, %v3642_v24  ;;  %3879 = vmatmul.bf16.gmra.mxu0 %v8962_v55  ;;  %4023 = vmatmul.bf16.gmra.mxu1 %v8963_v57 }
 0x398   :  { %v7073_v40 = vadd.f32 %v3979_v50, %v3811_v7 }
 0x399   :  { %v3474_v46 = vpop.f32.mrf.mxu2  ;;  %v3643_v10 = vpop.f32.mrf.mxu3 }
 0x39a   :  { %8964 = vst [vmem:[#allocation49_spill] sm:$0xff] %v7073_v40  ;;  %v3475_v25 = vadd.f32 %v3474_v46, %v6853_v15  ;;  %v8967_v40 = vld [vmem:[#allocation25_spill] sm:$0xff] }
 0x39b   :  { %v7076_v47 = vpop.f32.mrf.mxu0  ;;  %v3986_v3 = vpop.f32.mrf.mxu1 }
 0x39c   :  { %v3644_v39 = vadd.f32 %v3643_v10, %v3475_v25  ;;  %v8968_v10 = vld [vmem:[#allocation50_spill] sm:$0xff] }
 0x39e   :  { %v3813_v42 = vadd.f32 %v6971_v27, %v3644_v39  ;;  %3516 = vmatmul.bf16.gmra.mxu2 %v6491_v12  ;;  %3685 = vmatmul.bf16.gmra.mxu3 %v8965_v60 }
 0x3a0   :  { %v7081_v6 = vadd.f32 %v3981_v37, %v3813_v42 }
 0x3a1   :  { %v3477_v61 = vpop.f32.mrf.mxu2  ;;  %v3646_v24 = vpop.f32.mrf.mxu3 }
 0x3a2   :  { %8966 = vst [vmem:[#allocation81_spill] sm:$0xff] %v7081_v6  ;;  %v3478_v50 = vadd.f32 %v3477_v61, %v6871_v23 }
 0x3a3   :  { %v7084_v7 = vpop.f32.mrf.mxu0  ;;  %v3989_v55 = vpop.f32.mrf.mxu1 }
 0x3a4   :  { %v3647_v15 = vadd.f32 %v3646_v24, %v3478_v50  ;;  %v8970_v24 = vld [vmem:[#allocation82_spill] sm:$0xff] }
 0x3a6   :  { %v3816_v46 = vadd.f32 %v6981_v22, %v3647_v15  ;;  %3884 = vmatmul.bf16.gmra.mxu0 %v8967_v40  ;;  %4028 = vmatmul.bf16.gmra.mxu1 %v8968_v10  ;;  %v5798_v22 = vld [vmem:[#allocation7 + $0x160] sm:$0xff] }
 0x3a7   :  { %v5806_v40 = vld [vmem:[#allocation7 + $0x1a0] sm:$0xff]  ;;  %4137 = vmatpush.bf16.msra.mxu2 %v5798_v22 }
 0x3a8   :  { %v7089_v27 = vadd.f32 %v3984_v13, %v3816_v46  ;;  %4306 = vmatpush.bf16.msra.mxu3 %v5806_v40 }
 0x3a9   :  { %v3479_v25 = vpop.f32.mrf.mxu2  ;;  %v3648_v39 = vpop.f32.mrf.mxu3 }
 0x3aa   :  { %8969 = vst [vmem:[#allocation25_spill] sm:$0xff] %v7089_v27  ;;  %v3480_v37 = vadd.f32 %v3479_v25, %v6883_v29  ;;  %v5814_v27 = vld [vmem:[#allocation7 + $0x1e0] sm:$0xff] }
 0x3ab   :  { %v7092_v42 = vpop.f32.mrf.mxu0  ;;  %v3991_v6 = vpop.f32.mrf.mxu1  ;;  %4475 = vmatpush.bf16.msra.mxu0 %v5814_v27 }
 0x3ac   :  { %v3649_v23 = vadd.f32 %v3648_v39, %v3480_v37  ;;  %v8971_v37 = vld [vmem:[#allocation27_spill] sm:$0xff] }
 0x3ae   :  { %v3818_v61 = vadd.f32 %v6991_v21, %v3649_v23  ;;  %3521 = vmatmul.bf16.gmra.mxu2 %v8963_v57  ;;  %3690 = vmatmul.bf16.gmra.mxu3 %v8970_v24  ;;  %v8972_v23 = vld [vmem:[#allocation55_spill] sm:$0xff]  ;;  %v5822_v24 = vld [vmem:[#allocation7 + $0x220] sm:$0xff] }
 0x3af   :  { %4644 = vmatpush.bf16.msra.mxu1 %v5822_v24 }
 0x3b0   :  { %v7097_v13 = vadd.f32 %v3986_v3, %v3818_v61 }
 0x3b1   :  { %v3482_v50 = vpop.f32.mrf.mxu2  ;;  %v3651_v15 = vpop.f32.mrf.mxu3 }
 0x3b2   :  { %v3483_v29 = vadd.f32 %v3482_v50, %v6897_v63 }
 0x3b3   :  { %v7100_v46 = vpop.f32.mrf.mxu0  ;;  %v3994_v25 = vpop.f32.mrf.mxu1 }
 0x3b4   :  { %v3652_v39 = vadd.f32 %v3651_v15, %v3483_v29 }
 0x3b6   :  { %v3821_v21 = vadd.f32 %v7001_v33, %v3652_v39  ;;  %3889 = vmatmul.bf16.gmra.mxu0 %v8971_v37  ;;  %4033 = vmatmul.bf16.gmra.mxu1 %v8972_v23  ;;  %v8974_v37 = vld [vmem:[#allocation28_spill] sm:$0xff] }
 0x3b8   :  { %v7105_v3 = vadd.f32 %v3989_v55, %v3821_v21 }
 0x3b9   :  { %v3484_v61 = vpop.f32.mrf.mxu2  ;;  %v3653_v22 = vpop.f32.mrf.mxu3 }
 0x3ba   :  { %v3485_v63 = vadd.f32 %v3484_v61, %v6909_v5 }
 0x3bb   :  { %v7108_v40 = vpop.f32.mrf.mxu0  ;;  %v3996_v50 = vpop.f32.mrf.mxu1 }
 0x3bc   :  { %v3654_v15 = vadd.f32 %v3653_v22, %v3485_v63  ;;  %v8975_v22 = vld [vmem:[#allocation51_spill] sm:$0xff] }
 0x3be   :  { %v3823_v33 = vadd.f32 %v7011_v11, %v3654_v15  ;;  %3526 = vmatmul.bf16.gmra.mxu2 %v8968_v10  ;;  %3695 = vmatmul.bf16.gmra.mxu3 %v6791_v58 }
 0x3c0   :  { %v7113_v29 = vadd.f32 %v3991_v6, %v3823_v33 }
 0x3c1   :  { %v3487_v27 = vpop.f32.mrf.mxu2  ;;  %v3656_v24 = vpop.f32.mrf.mxu3 }
 0x3c2   :  { %8973 = vst [vmem:[#allocation50_spill] sm:$0xff] %v7113_v29  ;;  %v3488_v55 = vadd.f32 %v3487_v27, %v6919_v34 }
 0x3c3   :  { %v7116_v39 = vpop.f32.mrf.mxu0  ;;  %v3999_v21 = vpop.f32.mrf.mxu1 }
 0x3c4   :  { %v3657_v5 = vadd.f32 %v3656_v24, %v3488_v55  ;;  %v8976_v24 = vld [vmem:[#allocation83_spill] sm:$0xff] }
 0x3c6   :  { %v3826_v61 = vadd.f32 %v7021_v35, %v3657_v5  ;;  %3894 = vmatmul.bf16.gmra.mxu0 %v8974_v37  ;;  %4038 = vmatmul.bf16.gmra.mxu1 %v8975_v22 }
 0x3c8   :  { %v7121_v11 = vadd.f32 %v3994_v25, %v3826_v61 }
 0x3c9   :  { %v3489_v63 = vpop.f32.mrf.mxu2  ;;  %v3658_v15 = vpop.f32.mrf.mxu3 }
 0x3ca   :  { %v3490_v6 = vadd.f32 %v3489_v63, %v6929_v56 }
 0x3cb   :  { %v7124_v33 = vpop.f32.mrf.mxu0  ;;  %v4001_v29 = vpop.f32.mrf.mxu1 }
 0x3cc   :  { %v3659_v34 = vadd.f32 %v3658_v15, %v3490_v6  ;;  %v8978_v15 = vld [vmem:[#allocation52_spill] sm:$0xff] }
 0x3ce   :  { %v3828_v27 = vadd.f32 %v7031_v49, %v3659_v34  ;;  %3531 = vmatmul.bf16.gmra.mxu2 %v8972_v23  ;;  %3700 = vmatmul.bf16.gmra.mxu3 %v8976_v24 }
 0x3d0   :  { %v7129_v35 = vadd.f32 %v3996_v50, %v3828_v27 }
 0x3d1   :  { %v3492_v55 = vpop.f32.mrf.mxu2  ;;  %v3661_v5 = vpop.f32.mrf.mxu3 }
 0x3d2   :  { %8977 = vst [vmem:[#allocation55_spill] sm:$0xff] %v7129_v35  ;;  %v3493_v25 = vadd.f32 %v3492_v55, %v6847_v16 }
 0x3d3   :  { %v7132_v61 = vpop.f32.mrf.mxu0  ;;  %v4004_v37 = vpop.f32.mrf.mxu1 }
 0x3d4   :  { %v3662_v56 = vadd.f32 %v3661_v5, %v3493_v25  ;;  %v8979_v5 = vld [vmem:[#allocation85_spill] sm:$0xff] }
 0x3d6   :  { %v3831_v63 = vadd.f32 %v7039_v18, %v3662_v56  ;;  %3899 = vmatmul.bf16.gmra.mxu0 %v8907_v54  ;;  %4043 = vmatmul.bf16.gmra.mxu1 %v8978_v15 }
 0x3d8   :  { %v7137_v49 = vadd.f32 %v3999_v21, %v3831_v63 }
 0x3d9   :  { %v3494_v6 = vpop.f32.mrf.mxu2  ;;  %v3663_v34 = vpop.f32.mrf.mxu3 }
 0x3da   :  { %v3495_v50 = vadd.f32 %v3494_v6, %v6855_v51 }
 0x3db   :  { %v7140_v27 = vpop.f32.mrf.mxu0  ;;  %v4006_v35 = vpop.f32.mrf.mxu1 }
 0x3dc   :  { %v3664_v16 = vadd.f32 %v3663_v34, %v3495_v50  ;;  %v8981_v34 = vld [vmem:[#allocation53_spill] sm:$0xff] }
 0x3de   :  { %v3833_v55 = vadd.f32 %v7047_v53, %v3664_v16  ;;  %3536 = vmatmul.bf16.gmra.mxu2 %v8975_v22  ;;  %3705 = vmatmul.bf16.gmra.mxu3 %v8979_v5 }
 0x3e0   :  { %v7145_v18 = vadd.f32 %v4001_v29, %v3833_v55 }
 0x3e1   :  { %v3497_v25 = vpop.f32.mrf.mxu2  ;;  %v3666_v56 = vpop.f32.mrf.mxu3 }
 0x3e2   :  { %8980 = vst [vmem:[#allocation51_spill] sm:$0xff] %v7145_v18  ;;  %v3498_v21 = vadd.f32 %v3497_v25, %v6873_v0 }
 0x3e3   :  { %v7148_v63 = vpop.f32.mrf.mxu0  ;;  %v4009_v54 = vpop.f32.mrf.mxu1 }
 0x3e4   :  { %v3667_v51 = vadd.f32 %v3666_v56, %v3498_v21  ;;  %v8983_v56 = vld [vmem:[#allocation86_spill] sm:$0xff]  ;;  %v5805_v21 = vld [vmem:[#allocation7 + $0x198] sm:$0xff] }
 0x3e5   :  { %4307 = vmatpush.bf16.msra.mxu3 %v5805_v21 }
 0x3e6   :  { %v3836_v6 = vadd.f32 %v7052_v43, %v3667_v51  ;;  %3904 = vmatmul.bf16.gmra.mxu0 %v8913_v1  ;;  %4048 = vmatmul.bf16.gmra.mxu1 %v8981_v34  ;;  %v5797_v43 = vld [vmem:[#allocation7 + $0x158] sm:$0xff] }
 0x3e7   :  { %4138 = vmatpush.bf16.msra.mxu2 %v5797_v43 }
 0x3e8   :  { %v7153_v53 = vadd.f32 %v4004_v37, %v3836_v6 }
 0x3e9   :  { %v3499_v50 = vpop.f32.mrf.mxu2  ;;  %v3668_v16 = vpop.f32.mrf.mxu3 }
 0x3ea   :  { %8982 = vst [vmem:[#allocation83_spill] sm:$0xff] %v7153_v53  ;;  %v3500_v29 = vadd.f32 %v3499_v50, %v6885_v48  ;;  %v5821_v53 = vld [vmem:[#allocation7 + $0x218] sm:$0xff] }
 0x3eb   :  { %v7156_v55 = vpop.f32.mrf.mxu0  ;;  %v4011_v18 = vpop.f32.mrf.mxu1  ;;  %4645 = vmatpush.bf16.msra.mxu1 %v5821_v53 }
 0x3ec   :  { %v3669_v0 = vadd.f32 %v3668_v16, %v3500_v29  ;;  %v8984_v29 = vld [vmem:[#allocation59_spill] sm:$0xff] }
 0x3ee   :  { %v3838_v25 = vadd.f32 %v7060_v9, %v3669_v0  ;;  %3541 = vmatmul.bf16.gmra.mxu2 %v8978_v15  ;;  %3710 = vmatmul.bf16.gmra.mxu3 %v8983_v56  ;;  %v5813_v0 = vld [vmem:[#allocation7 + $0x1d8] sm:$0xff] }
 0x3ef   :  { %4476 = vmatpush.bf16.msra.mxu0 %v5813_v0 }
 0x3f0   :  { %v7161_v37 = vadd.f32 %v4006_v35, %v3838_v25 }
 0x3f1   :  { %v3502_v51 = vpop.f32.mrf.mxu2  ;;  %v3671_v6 = vpop.f32.mrf.mxu3 }
 0x3f2   :  { %v3503_v48 = vadd.f32 %v3502_v51, %v6899_v14 }
 0x3f3   :  { %v7164_v50 = vpop.f32.mrf.mxu0  ;;  %v4014_v1 = vpop.f32.mrf.mxu1 }
 0x3f4   :  { %v3672_v16 = vadd.f32 %v3671_v6, %v3503_v48 }
 0x3f6   :  { %v3841_v9 = vadd.f32 %v7068_v19, %v3672_v16  ;;  %3909 = vmatmul.bf16.gmra.mxu0 %v8919_v28  ;;  %4053 = vmatmul.bf16.gmra.mxu1 %v8984_v29  ;;  %v8986_v28 = vld [vmem:[#allocation31_spill] sm:$0xff] }
 0x3f8   :  { %v7169_v35 = vadd.f32 %v4009_v54, %v3841_v9 }
 0x3f9   :  { %v3504_v25 = vpop.f32.mrf.mxu2  ;;  %v3673_v43 = vpop.f32.mrf.mxu3 }
 0x3fa   :  { %v3505_v14 = vadd.f32 %v3504_v25, %v6911_v30 }
 0x3fb   :  { %v7172_v21 = vpop.f32.mrf.mxu0  ;;  %v4016_v51 = vpop.f32.mrf.mxu1 }
 0x3fc   :  { %v3674_v6 = vadd.f32 %v3673_v43, %v3505_v14  ;;  %v8987_v43 = vld [vmem:[#allocation54_spill] sm:$0xff] }
 0x3fe   :  { %v3843_v19 = vadd.f32 %v7076_v47, %v3674_v6  ;;  %3546 = vmatmul.bf16.gmra.mxu2 %v6431_v8  ;;  %3715 = vmatmul.bf16.gmra.mxu3 %v6622_v36 }
 0x400   :  { %v7177_v48 = vadd.f32 %v4011_v18, %v3843_v19 }
 0x401   :  { %v3507_v16 = vpop.f32.mrf.mxu2  ;;  %v3676_v53 = vpop.f32.mrf.mxu3 }
 0x402   :  { %8985 = vst [vmem:[#allocation52_spill] sm:$0xff] %v7177_v48  ;;  %v3508_v54 = vadd.f32 %v3507_v16, %v6921_v52 }
 0x403   :  { %v7180_v9 = vpop.f32.mrf.mxu0  ;;  %v4019_v0 = vpop.f32.mrf.mxu1 }
 0x404   :  { %v3677_v30 = vadd.f32 %v3676_v53, %v3508_v54  ;;  %v8989_v53 = vld [vmem:[#allocation87_spill] sm:$0xff] }
 0x406   :  { %v3846_v25 = vadd.f32 %v7084_v7, %v3677_v30  ;;  %3914 = vmatmul.bf16.gmra.mxu0 %v8986_v28  ;;  %4058 = vmatmul.bf16.gmra.mxu1 %v8987_v43 }
 0x408   :  { %v7185_v47 = vadd.f32 %v4014_v1, %v3846_v25 }
 0x409   :  { %v3509_v14 = vpop.f32.mrf.mxu2  ;;  %v3678_v6 = vpop.f32.mrf.mxu3 }
 0x40a   :  { %8988 = vst [vmem:[#allocation85_spill] sm:$0xff] %v7185_v47  ;;  %v3510_v18 = vadd.f32 %v3509_v14, %v6931_v59  ;;  %v8991_v47 = vld [vmem:[#allocation33_spill] sm:$0xff] }
 0x40b   :  { %v7188_v19 = vpop.f32.mrf.mxu0  ;;  %v4021_v48 = vpop.f32.mrf.mxu1 }
 0x40c   :  { %v3679_v52 = vadd.f32 %v3678_v6, %v3510_v18  ;;  %v8992_v6 = vld [vmem:[#allocation56_spill] sm:$0xff] }
 0x40e   :  { %v3848_v16 = vadd.f32 %v7092_v42, %v3679_v52  ;;  %3551 = vmatmul.bf16.gmra.mxu2 %v8984_v29  ;;  %3720 = vmatmul.bf16.gmra.mxu3 %v8989_v53 }
 0x410   :  { %v7193_v7 = vadd.f32 %v4016_v51, %v3848_v16 }
 0x411   :  { %v3512_v54 = vpop.f32.mrf.mxu2  ;;  %v3681_v30 = vpop.f32.mrf.mxu3 }
 0x412   :  { %8990 = vst [vmem:[#allocation53_spill] sm:$0xff] %v7193_v7  ;;  %v3513_v1 = vadd.f32 %v3512_v54, %v6939_v20  ;;  %v5820_v7 = vld [vmem:[#allocation7 + $0x210] sm:$0xff] }
 0x413   :  { %v7196_v25 = vpop.f32.mrf.mxu0  ;;  %v4024_v28 = vpop.f32.mrf.mxu1  ;;  %4646 = vmatpush.bf16.msra.mxu1 %v5820_v7 }
 0x414   :  { %v3682_v59 = vadd.f32 %v3681_v30, %v3513_v1  ;;  %v8994_v30 = vld [vmem:[#allocation88_spill] sm:$0xff] }
 0x416   :  { %v3851_v14 = vadd.f32 %v7100_v46, %v3682_v59  ;;  %3919 = vmatmul.bf16.gmra.mxu0 %v8991_v47  ;;  %4063 = vmatmul.bf16.gmra.mxu1 %v8992_v6 }
 0x418   :  { %v7201_v42 = vadd.f32 %v4019_v0, %v3851_v14 }
 0x419   :  { %v3514_v29 = vpop.f32.mrf.mxu2  ;;  %v3683_v18 = vpop.f32.mrf.mxu3 }
 0x41a   :  { %8993 = vst [vmem:[#allocation86_spill] sm:$0xff] %v7201_v42  ;;  %v3515_v51 = vadd.f32 %v3514_v29, %v6949_v44  ;;  %v8996_v42 = vld [vmem:[#allocation34_spill] sm:$0xff] }
 0x41b   :  { %v7204_v52 = vpop.f32.mrf.mxu0  ;;  %v4026_v16 = vpop.f32.mrf.mxu1 }
 0x41c   :  { %v3684_v20 = vadd.f32 %v3683_v18, %v3515_v51  ;;  %v8997_v18 = vld [vmem:[#allocation57_spill] sm:$0xff] }
 0x41e   :  { %v3853_v54 = vadd.f32 %v7108_v40, %v3684_v20  ;;  %3556 = vmatmul.bf16.gmra.mxu2 %v8987_v43  ;;  %3725 = vmatmul.bf16.gmra.mxu3 %v8994_v30 }
 0x420   :  { %v7209_v46 = vadd.f32 %v4021_v48, %v3853_v54 }
 0x421   :  { %v3517_v1 = vpop.f32.mrf.mxu2  ;;  %v3686_v59 = vpop.f32.mrf.mxu3 }
 0x422   :  { %8995 = vst [vmem:[#allocation59_spill] sm:$0xff] %v7209_v46  ;;  %v3518_v0 = vadd.f32 %v3517_v1, %v6959_v41 }
 0x423   :  { %v7212_v14 = vpop.f32.mrf.mxu0  ;;  %v4029_v47 = vpop.f32.mrf.mxu1 }
 0x424   :  { %v3687_v44 = vadd.f32 %v3686_v59, %v3518_v0  ;;  %v8999_v59 = vld [vmem:[#allocation89_spill] sm:$0xff]  ;;  %v5804_v0 = vld [vmem:[#allocation7 + $0x190] sm:$0xff] }
 0x425   :  { %4308 = vmatpush.bf16.msra.mxu3 %v5804_v0 }
 0x426   :  { %v3856_v29 = vadd.f32 %v7116_v39, %v3687_v44  ;;  %3924 = vmatmul.bf16.gmra.mxu0 %v8996_v42  ;;  %4068 = vmatmul.bf16.gmra.mxu1 %v8997_v18  ;;  %v5796_v39 = vld [vmem:[#allocation7 + $0x150] sm:$0xff] }
 0x427   :  { %4139 = vmatpush.bf16.msra.mxu2 %v5796_v39 }
 0x428   :  { %v7217_v40 = vadd.f32 %v4024_v28, %v3856_v29 }
 0x429   :  { %v3519_v51 = vpop.f32.mrf.mxu2  ;;  %v3688_v20 = vpop.f32.mrf.mxu3 }
 0x42a   :  { %8998 = vst [vmem:[#allocation54_spill] sm:$0xff] %v7217_v40  ;;  %v3520_v48 = vadd.f32 %v3519_v51, %v6969_v62  ;;  %v5812_v40 = vld [vmem:[#allocation7 + $0x1d0] sm:$0xff] }
 0x42b   :  { %v7220_v54 = vpop.f32.mrf.mxu0  ;;  %v4031_v46 = vpop.f32.mrf.mxu1  ;;  %4477 = vmatpush.bf16.msra.mxu0 %v5812_v40 }
 0x42c   :  { %v3689_v41 = vadd.f32 %v3688_v20, %v3520_v48  ;;  %v9001_v48 = vld [vmem:[#allocation35_spill] sm:$0xff] }
 0x42e   :  { %v3858_v1 = vadd.f32 %v7124_v33, %v3689_v41  ;;  %3561 = vmatmul.bf16.gmra.mxu2 %v8992_v6  ;;  %3730 = vmatmul.bf16.gmra.mxu3 %v8999_v59  ;;  %v9002_v41 = vld [vmem:[#allocation64_spill] sm:$0xff] }
 0x430   :  { %v7225_v28 = vadd.f32 %v4026_v16, %v3858_v1 }
 0x431   :  { %v3522_v44 = vpop.f32.mrf.mxu2  ;;  %v3691_v29 = vpop.f32.mrf.mxu3 }
 0x432   :  { %9000 = vst [vmem:[#allocation87_spill] sm:$0xff] %v7225_v28  ;;  %v3523_v62 = vadd.f32 %v3522_v44, %v6979_v4  ;;  %v9017_v28 = vld [vmem:[#allocation38_spill] sm:$0xff] }
 0x433   :  { %v7228_v51 = vpop.f32.mrf.mxu0  ;;  %v4034_v42 = vpop.f32.mrf.mxu1 }
 0x434   :  { %v3692_v20 = vadd.f32 %v3691_v29, %v3523_v62 }
 0x436   :  { %v3861_v33 = vadd.f32 %v7132_v61, %v3692_v20  ;;  %3929 = vmatmul.bf16.gmra.mxu0 %v9001_v48  ;;  %4073 = vmatmul.bf16.gmra.mxu1 %v9002_v41  ;;  %v9005_v48 = vld [vmem:[#allocation36_spill] sm:$0xff] }
 0x438   :  { %v7233_v16 = vadd.f32 %v4029_v47, %v3861_v33 }
 0x439   :  { %v3524_v1 = vpop.f32.mrf.mxu2  ;;  %v3693_v39 = vpop.f32.mrf.mxu3 }
 0x43a   :  { %9003 = vst [vmem:[#allocation56_spill] sm:$0xff] %v7233_v16  ;;  %v3525_v4 = vadd.f32 %v3524_v1, %v6989_v45 }
 0x43b   :  { %v7236_v0 = vpop.f32.mrf.mxu0  ;;  %v4036_v44 = vpop.f32.mrf.mxu1 }
 0x43c   :  { %v3694_v29 = vadd.f32 %v3693_v39, %v3525_v4  ;;  %v9006_v39 = vld [vmem:[#allocation58_spill] sm:$0xff] }
 0x43e   :  { %v3863_v61 = vadd.f32 %v7140_v27, %v3694_v29  ;;  %3566 = vmatmul.bf16.gmra.mxu2 %v8997_v18  ;;  %3735 = vmatmul.bf16.gmra.mxu3 %v6829_v17 }
 0x440   :  { %v7241_v62 = vadd.f32 %v4031_v46, %v3863_v61 }
 0x441   :  { %v3527_v40 = vpop.f32.mrf.mxu2  ;;  %v3696_v7 = vpop.f32.mrf.mxu3 }
 0x442   :  { %9004 = vst [vmem:[#allocation88_spill] sm:$0xff] %v7241_v62  ;;  %v3528_v47 = vadd.f32 %v3527_v40, %v6999_v32 }
 0x443   :  { %v7244_v20 = vpop.f32.mrf.mxu0  ;;  %v4039_v33 = vpop.f32.mrf.mxu1 }
 0x444   :  { %v3697_v45 = vadd.f32 %v3696_v7, %v3528_v47  ;;  %v9008_v7 = vld [vmem:[#allocation90_spill] sm:$0xff] }
 0x446   :  { %v3866_v1 = vadd.f32 %v7148_v63, %v3697_v45  ;;  %3934 = vmatmul.bf16.gmra.mxu0 %v9005_v48  ;;  %4078 = vmatmul.bf16.gmra.mxu1 %v9006_v39 }
 0x448   :  { %v7249_v27 = vadd.f32 %v4034_v42, %v3866_v1 }
 0x449   :  { %v3529_v4 = vpop.f32.mrf.mxu2  ;;  %v3698_v29 = vpop.f32.mrf.mxu3 }
 0x44a   :  { %9007 = vst [vmem:[#allocation57_spill] sm:$0xff] %v7249_v27  ;;  %v3530_v46 = vadd.f32 %v3529_v4, %v7009_v2  ;;  %v9010_v27 = vld [vmem:[#allocation37_spill] sm:$0xff] }
 0x44b   :  { %v7252_v61 = vpop.f32.mrf.mxu0  ;;  %v4041_v62 = vpop.f32.mrf.mxu1 }
 0x44c   :  { %v3699_v32 = vadd.f32 %v3698_v29, %v3530_v46  ;;  %v9011_v29 = vld [vmem:[#allocation60_spill] sm:$0xff] }
 0x44e   :  { %v3868_v40 = vadd.f32 %v7156_v55, %v3699_v32  ;;  %3571 = vmatmul.bf16.gmra.mxu2 %v9002_v41  ;;  %3740 = vmatmul.bf16.gmra.mxu3 %v9008_v7  ;;  %v5819_v7 = vld [vmem:[#allocation7 + $0x208] sm:$0xff] }
 0x44f   :  { %4647 = vmatpush.bf16.msra.mxu1 %v5819_v7 }
 0x450   :  { %v7257_v63 = vadd.f32 %v4036_v44, %v3868_v40  ;;  %v9013_v44 = vld [vmem:[#allocation136_spill] sm:$0xff] }
 0x451   :  { %v3532_v47 = vpop.f32.mrf.mxu2  ;;  %v3701_v45 = vpop.f32.mrf.mxu3 }
 0x452   :  { %9009 = vst [vmem:[#allocation64_spill] sm:$0xff] %v7257_v63  ;;  %v3533_v42 = vadd.f32 %v3532_v47, %v7019_v38 }
 0x453   :  { %v7260_v1 = vpop.f32.mrf.mxu0  ;;  %v4044_v48 = vpop.f32.mrf.mxu1 }
 0x454   :  { %v3702_v2 = vadd.f32 %v3701_v45, %v3533_v42  ;;  %v9014_v45 = vld [vmem:[#allocation92_spill] sm:$0xff] }
 0x456   :  { %v3871_v4 = vadd.f32 %v7164_v50, %v3702_v2  ;;  %3939 = vmatmul.bf16.gmra.mxu0 %v9010_v27  ;;  %4083 = vmatmul.bf16.gmra.mxu1 %v9011_v29 }
 0x458   :  { %v7265_v55 = vadd.f32 %v4039_v33, %v3871_v4  ;;  %v9016_v33 = vld [vmem:[#allocation102_spill] sm:$0xff] }
 0x459   :  { %v3534_v46 = vpop.f32.mrf.mxu2  ;;  %v3703_v32 = vpop.f32.mrf.mxu3 }
 0x45a   :  { %9012 = vst [vmem:[#allocation58_spill] sm:$0xff] %v7265_v55  ;;  %v3535_v40 = vadd.f32 %v3534_v46, %v9013_v44 }
 0x45b   :  { %v7268_v63 = vpop.f32.mrf.mxu0  ;;  %v4046_v16 = vpop.f32.mrf.mxu1 }
 0x45c   :  { %v3704_v38 = vadd.f32 %v3703_v32, %v3535_v40  ;;  %v9018_v32 = vld [vmem:[#allocation61_spill] sm:$0xff] }
 0x45e   :  { %v3873_v47 = vadd.f32 %v7172_v21, %v3704_v38  ;;  %3576 = vmatmul.bf16.gmra.mxu2 %v9006_v39  ;;  %3745 = vmatmul.bf16.gmra.mxu3 %v9014_v45 }
 0x460   :  { %v7273_v50 = vadd.f32 %v4041_v62, %v3873_v47  ;;  %v9020_v62 = vld [vmem:[#allocation104_spill] sm:$0xff] }
 0x461   :  { %v3537_v42 = vpop.f32.mrf.mxu2  ;;  %v3706_v2 = vpop.f32.mrf.mxu3 }
 0x462   :  { %9015 = vst [vmem:[#allocation60_spill] sm:$0xff] %v7273_v50  ;;  %v3538_v4 = vadd.f32 %v3537_v42, %v9016_v33 }
 0x463   :  { %v7276_v27 = vpop.f32.mrf.mxu0  ;;  %v4049_v55 = vpop.f32.mrf.mxu1 }
 0x464   :  { %v3707_v46 = vadd.f32 %v3706_v2, %v3538_v4  ;;  %v9021_v2 = vld [vmem:[#allocation93_spill] sm:$0xff] }
 0x465   :  { %v5803_v4 = vld [vmem:[#allocation7 + $0x188] sm:$0xff] }
 0x466   :  { %v3876_v44 = vadd.f32 %v7180_v9, %v3707_v46  ;;  %3944 = vmatmul.bf16.gmra.mxu0 %v9017_v28  ;;  %4088 = vmatmul.bf16.gmra.mxu1 %v9018_v32  ;;  %v5795_v9 = vld [vmem:[#allocation7 + $0x148] sm:$0xff]  ;;  %v9023_v28 = vld [vmem:[#allocation107_spill] sm:$0xff] }
 0x467   :  { %4140 = vmatpush.bf16.msra.mxu2 %v5795_v9  ;;  %4309 = vmatpush.bf16.msra.mxu3 %v5803_v4  ;;  %v9027_v4 = vld [vmem:[#allocation109_spill] sm:$0xff] }
 0x468   :  { %v7281_v21 = vadd.f32 %v4044_v48, %v3876_v44 }
 0x469   :  { %v3539_v40 = vpop.f32.mrf.mxu2  ;;  %v3708_v38 = vpop.f32.mrf.mxu3 }
 0x46a   :  { %9019 = vst [vmem:[#allocation136_spill] sm:$0xff] %v7281_v21  ;;  %v3540_v47 = vadd.f32 %v3539_v40, %v9020_v62 }
 0x46b   :  { %v7284_v50 = vpop.f32.mrf.mxu0  ;;  %v4051_v45 = vpop.f32.mrf.mxu1 }
 0x46c   :  { %v3709_v42 = vadd.f32 %v3708_v38, %v3540_v47  ;;  %v9024_v47 = vld [vmem:[#allocation42_spill] sm:$0xff] }
 0x46e   :  { %v3878_v33 = vadd.f32 %v7188_v19, %v3709_v42  ;;  %3581 = vmatmul.bf16.gmra.mxu2 %v9011_v29  ;;  %3750 = vmatmul.bf16.gmra.mxu3 %v9021_v2  ;;  %v9025_v42 = vld [vmem:[#allocation68_spill] sm:$0xff]  ;;  %v5811_v2 = vld [vmem:[#allocation7 + $0x1c8] sm:$0xff] }
 0x46f   :  { %4478 = vmatpush.bf16.msra.mxu0 %v5811_v2 }
 0x470   :  { %v7289_v48 = vadd.f32 %v4046_v16, %v3878_v33 }
 0x471   :  { %v3542_v46 = vpop.f32.mrf.mxu2  ;;  %v3711_v44 = vpop.f32.mrf.mxu3 }
 0x472   :  { %9022 = vst [vmem:[#allocation102_spill] sm:$0xff] %v7289_v48  ;;  %v3543_v40 = vadd.f32 %v3542_v46, %v9023_v28 }
 0x473   :  { %v7292_v62 = vpop.f32.mrf.mxu0  ;;  %v4054_v21 = vpop.f32.mrf.mxu1 }
 0x474   :  { %v3712_v38 = vadd.f32 %v3711_v44, %v3543_v40  ;;  %v9028_v40 = vld [vmem:[#allocation99_spill] sm:$0xff] }
 0x476   :  { %v3881_v19 = vadd.f32 %v7196_v25, %v3712_v38  ;;  %3949 = vmatmul.bf16.gmra.mxu0 %v9024_v47  ;;  %4093 = vmatmul.bf16.gmra.mxu1 %v9025_v42 }
 0x478   :  { %v7297_v16 = vadd.f32 %v4049_v55, %v3881_v19  ;;  %v5810_v55 = vld [vmem:[#allocation7 + $0x1c0] sm:$0xff] }
 0x479   :  { %v3544_v33 = vpop.f32.mrf.mxu2  ;;  %v3713_v9 = vpop.f32.mrf.mxu3  ;;  %v9030_v19 = vld [vmem:[#allocation112_spill] sm:$0xff]  ;;  %4479 = vmatpush.bf16.msra.mxu0 %v5810_v55 }
 0x47a   :  { %9026 = vst [vmem:[#allocation61_spill] sm:$0xff] %v7297_v16  ;;  %v3545_v28 = vadd.f32 %v3544_v33, %v9027_v4 }
 0x47b   :  { %v7300_v46 = vpop.f32.mrf.mxu0  ;;  %v4056_v48 = vpop.f32.mrf.mxu1 }
 0x47c   :  { %v3714_v44 = vadd.f32 %v3713_v9, %v3545_v28  ;;  %v9031_v28 = vld [vmem:[#allocation39_spill] sm:$0xff] }
 0x47e   :  { %v3883_v25 = vadd.f32 %v7204_v52, %v3714_v44  ;;  %3586 = vmatmul.bf16.gmra.mxu2 %v9018_v32  ;;  %3755 = vmatmul.bf16.gmra.mxu3 %v9028_v40  ;;  %v9032_v52 = vld [vmem:[#allocation62_spill] sm:$0xff] }
 0x480   :  { %v7305_v38 = vadd.f32 %v4051_v45, %v3883_v25 }
 0x481   :  { %v3547_v2 = vpop.f32.mrf.mxu2  ;;  %v3716_v7 = vpop.f32.mrf.mxu3 }
 0x482   :  { %9029 = vst [vmem:[#allocation104_spill] sm:$0xff] %v7305_v38  ;;  %v3548_v47 = vadd.f32 %v3547_v2, %v9030_v19  ;;  %v9034_v38 = vld [vmem:[#allocation114_spill] sm:$0xff] }
 0x483   :  { %v7308_v16 = vpop.f32.mrf.mxu0  ;;  %v4059_v33 = vpop.f32.mrf.mxu1 }
 0x484   :  { %v3717_v4 = vadd.f32 %v3716_v7, %v3548_v47  ;;  %v9035_v47 = vld [vmem:[#allocation94_spill] sm:$0xff] }
 0x486   :  { %v3886_v9 = vadd.f32 %v7212_v14, %v3717_v4  ;;  %3954 = vmatmul.bf16.gmra.mxu0 %v9031_v28  ;;  %4098 = vmatmul.bf16.gmra.mxu1 %v9032_v52 }
 0x488   :  { %v7313_v44 = vadd.f32 %v4054_v21, %v3886_v9  ;;  %v9037_v21 = vld [vmem:[#allocation116_spill] sm:$0xff] }
 0x489   :  { %v3549_v45 = vpop.f32.mrf.mxu2  ;;  %v3718_v25 = vpop.f32.mrf.mxu3 }
 0x48a   :  { %9033 = vst [vmem:[#allocation107_spill] sm:$0xff] %v7313_v44  ;;  %v3550_v40 = vadd.f32 %v3549_v45, %v9034_v38  ;;  %v9038_v44 = vld [vmem:[#allocation40_spill] sm:$0xff] }
 0x48b   :  { %v7316_v17 = vpop.f32.mrf.mxu0  ;;  %v4061_v2 = vpop.f32.mrf.mxu1 }
 0x48c   :  { %v3719_v19 = vadd.f32 %v3718_v25, %v3550_v40  ;;  %v9039_v40 = vld [vmem:[#allocation65_spill] sm:$0xff] }
 0x48e   :  { %v3888_v59 = vadd.f32 %v7220_v54, %v3719_v19  ;;  %3591 = vmatmul.bf16.gmra.mxu2 %v9025_v42  ;;  %3760 = vmatmul.bf16.gmra.mxu3 %v9035_v47  ;;  %v9045_v42 = vld [vmem:[#allocation66_spill] sm:$0xff] }
 0x490   :  { %v7321_v14 = vadd.f32 %v4056_v48, %v3888_v59  ;;  %v9041_v59 = vld [vmem:[#allocation118_spill] sm:$0xff] }
 0x491   :  { %v3552_v7 = vpop.f32.mrf.mxu2  ;;  %v3721_v55 = vpop.f32.mrf.mxu3 }
 0x492   :  { %9036 = vst [vmem:[#allocation109_spill] sm:$0xff] %v7321_v14  ;;  %v3553_v4 = vadd.f32 %v3552_v7, %v9037_v21 }
 0x493   :  { %v7324_v9 = vpop.f32.mrf.mxu0  ;;  %v4064_v28 = vpop.f32.mrf.mxu1 }
 0x494   :  { %v3722_v38 = vadd.f32 %v3721_v55, %v3553_v4  ;;  %v9042_v55 = vld [vmem:[#allocation96_spill] sm:$0xff] }
 0x496   :  { %v3891_v45 = vadd.f32 %v7228_v51, %v3722_v38  ;;  %3959 = vmatmul.bf16.gmra.mxu0 %v9038_v44  ;;  %4103 = vmatmul.bf16.gmra.mxu1 %v9039_v40 }
 0x498   :  { %v7329_v54 = vadd.f32 %v4059_v33, %v3891_v45  ;;  %v9044_v33 = vld [vmem:[#allocation120_spill] sm:$0xff] }
 0x499   :  { %v3554_v25 = vpop.f32.mrf.mxu2  ;;  %v3723_v19 = vpop.f32.mrf.mxu3 }
 0x49a   :  { %9040 = vst [vmem:[#allocation112_spill] sm:$0xff] %v7329_v54  ;;  %v3555_v48 = vadd.f32 %v3554_v25, %v9041_v59 }
 0x49b   :  { %v7332_v14 = vpop.f32.mrf.mxu0  ;;  %v4066_v47 = vpop.f32.mrf.mxu1 }
 0x49c   :  { %v3724_v7 = vadd.f32 %v3723_v19, %v3555_v48  ;;  %v9046_v19 = vld [vmem:[#allocation41_spill] sm:$0xff] }
 0x49e   :  { %v3893_v21 = vadd.f32 %v7236_v0, %v3724_v7  ;;  %3596 = vmatmul.bf16.gmra.mxu2 %v9032_v52  ;;  %3765 = vmatmul.bf16.gmra.mxu3 %v9042_v55  ;;  %v9059_v52 = vld [vmem:[#allocation67_spill] sm:$0xff] }
 0x4a0   :  { %v7337_v51 = vadd.f32 %v4061_v2, %v3893_v21  ;;  %v9048_v2 = vld [vmem:[#allocation122_spill] sm:$0xff] }
 0x4a1   :  { %v3557_v4 = vpop.f32.mrf.mxu2  ;;  %v3726_v38 = vpop.f32.mrf.mxu3 }
 0x4a2   :  { %9043 = vst [vmem:[#allocation114_spill] sm:$0xff] %v7337_v51  ;;  %v3558_v45 = vadd.f32 %v3557_v4, %v9044_v33 }
 0x4a3   :  { %v7340_v44 = vpop.f32.mrf.mxu0  ;;  %v4069_v54 = vpop.f32.mrf.mxu1 }
 0x4a4   :  { %v3727_v25 = vadd.f32 %v3726_v38, %v3558_v45  ;;  %v9049_v38 = vld [vmem:[#allocation97_spill] sm:$0xff]  ;;  %v5802_v45 = vld [vmem:[#allocation7 + $0x180] sm:$0xff] }
 0x4a5   :  { %4310 = vmatpush.bf16.msra.mxu3 %v5802_v45  ;;  %v9055_v45 = vld [vmem:[#allocation126_spill] sm:$0xff] }
 0x4a6   :  { %v3896_v59 = vadd.f32 %v7244_v20, %v3727_v25  ;;  %4108 = vmatmul.bf16.gmra.mxu1 %v9045_v42  ;;  %4480 = vmatmul.bf16.vlgmr.msra.gmra.mxu0 %v9046_v19  ;;  %v5794_v20 = vld [vmem:[#allocation7 + $0x140] sm:$0xff] }
 0x4a7   :  { %4141 = vmatpush.bf16.msra.mxu2 %v5794_v20  ;;  %v9051_v19 = vld [vmem:[#allocation124_spill] sm:$0xff] }
 0x4a8   :  { %v7345_v0 = vadd.f32 %v4064_v28, %v3896_v59 }
 0x4a9   :  { %v3559_v48 = vpop.f32.mrf.mxu2  ;;  %v3728_v7 = vpop.f32.mrf.mxu3 }
 0x4aa   :  { %9047 = vst [vmem:[#allocation116_spill] sm:$0xff] %v7345_v0  ;;  %v3560_v21 = vadd.f32 %v3559_v48, %v9048_v2 }
 0x4ab   :  { %v7348_v51 = vpop.f32.mrf.mxu0  ;;  %v4071_v55 = vpop.f32.mrf.mxu1 }
 0x4ac   :  { %v3729_v4 = vadd.f32 %v3728_v7, %v3560_v21  ;;  %v9052_v21 = vld [vmem:[#allocation73_spill] sm:$0xff] }
 0x4ae   :  { %v3898_v33 = vadd.f32 %v7252_v61, %v3729_v4  ;;  %3601 = vmatmul.bf16.gmra.mxu2 %v9039_v40  ;;  %3770 = vmatmul.bf16.gmra.mxu3 %v9049_v38  ;;  %v9053_v4 = vld [vmem:[#allocation43_spill] sm:$0xff]  ;;  %v5818_v38 = vld [vmem:[#allocation7 + $0x200] sm:$0xff] }
 0x4af   :  { %4648 = vmatpush.bf16.msra.mxu1 %v5818_v38 }
 0x4b0   :  { %v7353_v28 = vadd.f32 %v4066_v47, %v3898_v33 }
 0x4b1   :  { %v3562_v25 = vpop.f32.mrf.mxu2  ;;  %v3731_v59 = vpop.f32.mrf.mxu3 }
 0x4b2   :  { %9050 = vst [vmem:[#allocation118_spill] sm:$0xff] %v7353_v28  ;;  %v3563_v48 = vadd.f32 %v3562_v25, %v9051_v19 }
 0x4b3   :  { %v7356_v2 = vpop.f32.mrf.mxu0  ;;  %v4074_v0 = vpop.f32.mrf.mxu1 }
 0x4b4   :  { %v3732_v7 = vadd.f32 %v3731_v59, %v3563_v48 }
 0x4b6   :  { %v3901_v61 = vadd.f32 %v7260_v1, %v3732_v7  ;;  %4113 = vmatmul.bf16.gmra.mxu1 %v9052_v21  ;;  %4485 = vmatmul.bf16.gmra.mxu0 %v9053_v4  ;;  %v9056_v1 = vld [vmem:[#allocation106_spill] sm:$0xff] }
 0x4b8   :  { %v7361_v20 = vadd.f32 %v4069_v54, %v3901_v61  ;;  %v9058_v54 = vld [vmem:[#allocation128_spill] sm:$0xff] }
 0x4b9   :  { %v3564_v47 = vpop.f32.mrf.mxu2  ;;  %v3733_v33 = vpop.f32.mrf.mxu3 }
 0x4ba   :  { %9054 = vst [vmem:[#allocation120_spill] sm:$0xff] %v7361_v20  ;;  %v3565_v28 = vadd.f32 %v3564_v47, %v9055_v45 }
 0x4bb   :  { %v7364_v40 = vpop.f32.mrf.mxu0  ;;  %v4076_v25 = vpop.f32.mrf.mxu1 }
 0x4bc   :  { %v3734_v19 = vadd.f32 %v3733_v33, %v3565_v28  ;;  %v9060_v28 = vld [vmem:[#allocation44_spill] sm:$0xff] }
 0x4be   :  { %v3903_v59 = vadd.f32 %v7268_v63, %v3734_v19  ;;  %3606 = vmatmul.bf16.gmra.mxu2 %v9045_v42  ;;  %3775 = vmatmul.bf16.gmra.mxu3 %v9056_v1  ;;  %v9066_v42 = vld [vmem:[#allocation69_spill] sm:$0xff] }
 0x4c0   :  { %v7369_v48 = vadd.f32 %v4071_v55, %v3903_v59  ;;  %v9062_v55 = vld [vmem:[#allocation130_spill] sm:$0xff] }
 0x4c1   :  { %v3567_v7 = vpop.f32.mrf.mxu2  ;;  %v3736_v38 = vpop.f32.mrf.mxu3 }
 0x4c2   :  { %9057 = vst [vmem:[#allocation41_spill] sm:$0xff] %v7369_v48  ;;  %v3568_v61 = vadd.f32 %v3567_v7, %v9058_v54 }
 0x4c3   :  { %v7372_v4 = vpop.f32.mrf.mxu0  ;;  %v4079_v20 = vpop.f32.mrf.mxu1 }
 0x4c4   :  { %v3737_v47 = vadd.f32 %v3736_v38, %v3568_v61  ;;  %v9063_v38 = vld [vmem:[#allocation98_spill] sm:$0xff] }
 0x4c6   :  { %v3906_v45 = vadd.f32 %v7276_v27, %v3737_v47  ;;  %4118 = vmatmul.bf16.gmra.mxu1 %v9059_v52  ;;  %4490 = vmatmul.bf16.gmra.mxu0 %v9060_v28 }
 0x4c8   :  { %v7377_v63 = vadd.f32 %v4074_v0, %v3906_v45  ;;  %v9065_v0 = vld [vmem:[#allocation132_spill] sm:$0xff] }
 0x4c9   :  { %v3569_v33 = vpop.f32.mrf.mxu2  ;;  %v3738_v19 = vpop.f32.mrf.mxu3 }
 0x4ca   :  { %9061 = vst [vmem:[#allocation122_spill] sm:$0xff] %v7377_v63  ;;  %v3570_v59 = vadd.f32 %v3569_v33, %v9062_v55 }
 0x4cb   :  { %v7380_v48 = vpop.f32.mrf.mxu0  ;;  %v4081_v1 = vpop.f32.mrf.mxu1 }
 0x4cc   :  { %v3739_v7 = vadd.f32 %v3738_v19, %v3570_v59  ;;  %v9067_v19 = vld [vmem:[#allocation48_spill] sm:$0xff] }
 0x4ce   :  { %v3908_v54 = vadd.f32 %v7284_v50, %v3739_v7  ;;  %3611 = vmatmul.bf16.gmra.mxu2 %v9052_v21  ;;  %3780 = vmatmul.bf16.gmra.mxu3 %v9063_v38  ;;  %v9073_v21 = vld [vmem:[#allocation70_spill] sm:$0xff] }
 0x4d0   :  { %v7385_v27 = vadd.f32 %v4076_v25, %v3908_v54  ;;  %v9069_v25 = vld [vmem:[#allocation134_spill] sm:$0xff] }
 0x4d1   :  { %v3572_v61 = vpop.f32.mrf.mxu2  ;;  %v3741_v47 = vpop.f32.mrf.mxu3 }
 0x4d2   :  { %9064 = vst [vmem:[#allocation124_spill] sm:$0xff] %v7385_v27  ;;  %v3573_v45 = vadd.f32 %v3572_v61, %v9065_v0 }
 0x4d3   :  { %v7388_v28 = vpop.f32.mrf.mxu0  ;;  %v4084_v63 = vpop.f32.mrf.mxu1 }
 0x4d4   :  { %v3742_v33 = vadd.f32 %v3741_v47, %v3573_v45  ;;  %v9070_v47 = vld [vmem:[#allocation100_spill] sm:$0xff] }
 0x4d6   :  { %v3911_v55 = vadd.f32 %v7292_v62, %v3742_v33  ;;  %4123 = vmatmul.bf16.gmra.mxu1 %v9066_v42  ;;  %4495 = vmatmul.bf16.gmra.mxu0 %v9067_v19 }
 0x4d8   :  { %v7393_v50 = vadd.f32 %v4079_v20, %v3911_v55  ;;  %v9072_v20 = vld [vmem:[#allocation137_spill] sm:$0xff] }
 0x4d9   :  { %v3574_v59 = vpop.f32.mrf.mxu2  ;;  %v3743_v7 = vpop.f32.mrf.mxu3 }
 0x4da   :  { %9068 = vst [vmem:[#allocation43_spill] sm:$0xff] %v7393_v50  ;;  %v3575_v54 = vadd.f32 %v3574_v59, %v9069_v25 }
 0x4db   :  { %v7396_v27 = vpop.f32.mrf.mxu0  ;;  %v4086_v38 = vpop.f32.mrf.mxu1 }
 0x4dc   :  { %v3744_v61 = vadd.f32 %v3743_v7, %v3575_v54  ;;  %v9074_v7 = vld [vmem:[#allocation45_spill] sm:$0xff] }
 0x4de   :  { %v3913_v0 = vadd.f32 %v7300_v46, %v3744_v61  ;;  %3616 = vmatmul.bf16.gmra.mxu2 %v9059_v52  ;;  %3785 = vmatmul.bf16.gmra.mxu3 %v9070_v47  ;;  %v9087_v52 = vld [vmem:[#allocation47_spill] sm:$0xff] }
 0x4e0   :  { %v7401_v62 = vadd.f32 %v4081_v1, %v3913_v0  ;;  %v9076_v1 = vld [vmem:[#allocation139_spill] sm:$0xff] }
 0x4e1   :  { %v3577_v45 = vpop.f32.mrf.mxu2  ;;  %v3746_v33 = vpop.f32.mrf.mxu3 }
 0x4e2   :  { %9071 = vst [vmem:[#allocation126_spill] sm:$0xff] %v7401_v62  ;;  %v3578_v55 = vadd.f32 %v3577_v45, %v9072_v20 }
 0x4e3   :  { %v7404_v19 = vpop.f32.mrf.mxu0  ;;  %v4089_v50 = vpop.f32.mrf.mxu1 }
 0x4e4   :  { %v3747_v59 = vadd.f32 %v3746_v33, %v3578_v55  ;;  %v9077_v33 = vld [vmem:[#allocation101_spill] sm:$0xff] }
 0x4e6   :  { %v3916_v25 = vadd.f32 %v7308_v16, %v3747_v59  ;;  %4128 = vmatmul.bf16.gmra.mxu1 %v9073_v21  ;;  %4500 = vmatmul.bf16.gmra.mxu0 %v9074_v7  ;;  %v9080_v21 = vld [vmem:[#allocation46_spill] sm:$0xff] }
 0x4e8   :  { %v7409_v46 = vadd.f32 %v4084_v63, %v3916_v25  ;;  %v9079_v63 = vld [vmem:[#allocation103_spill] sm:$0xff] }
 0x4e9   :  { %v3579_v54 = vpop.f32.mrf.mxu2  ;;  %v3748_v61 = vpop.f32.mrf.mxu3 }
 0x4ea   :  { %9075 = vst [vmem:[#allocation128_spill] sm:$0xff] %v7409_v46  ;;  %v3580_v0 = vadd.f32 %v3579_v54, %v9076_v1 }
 0x4eb   :  { %v7412_v62 = vpop.f32.mrf.mxu0  ;;  %v4091_v47 = vpop.f32.mrf.mxu1 }
 0x4ec   :  { %v3749_v45 = vadd.f32 %v3748_v61, %v3580_v0  ;;  %v9081_v61 = vld [vmem:[#allocation74_spill] sm:$0xff] }
 0x4ee   :  { %v3918_v20 = vadd.f32 %v7316_v17, %v3749_v45  ;;  %3621 = vmatmul.bf16.gmra.mxu2 %v9066_v42  ;;  %3790 = vmatmul.bf16.gmra.mxu3 %v9077_v33  ;;  %v9084_v42 = vld [vmem:[#allocation71_spill] sm:$0xff] }
 0x4f0   :  { %v7417_v16 = vadd.f32 %v4086_v38, %v3918_v20  ;;  %v9083_v38 = vld [vmem:[#allocation105_spill] sm:$0xff] }
 0x4f1   :  { %v3582_v55 = vpop.f32.mrf.mxu2  ;;  %v3751_v59 = vpop.f32.mrf.mxu3 }
 0x4f2   :  { %9078 = vst [vmem:[#allocation44_spill] sm:$0xff] %v7417_v16  ;;  %v3583_v25 = vadd.f32 %v3582_v55, %v9079_v63 }
 0x4f3   :  { %v7420_v7 = vpop.f32.mrf.mxu0  ;;  %v4094_v46 = vpop.f32.mrf.mxu1 }
 0x4f4   :  { %v3752_v54 = vadd.f32 %v3751_v59, %v3583_v25  ;;  %v9085_v59 = vld [vmem:[#allocation72_spill] sm:$0xff] }
 0x4f6   :  { %v3921_v1 = vadd.f32 %v7324_v9, %v3752_v54  ;;  %4505 = vmatmul.bf16.gmra.mxu0 %v9080_v21  ;;  %4649 = vmatmul.bf16.vlgmr.msra.gmra.mxu1 %v9081_v61 }
 0x4f8   :  { %v7425_v17 = vadd.f32 %v4089_v50, %v3921_v1  ;;  %v9086_v50 = vld [vmem:[#allocation108_spill] sm:$0xff] }
 0x4f9   :  { %v3584_v0 = vpop.f32.mrf.mxu2  ;;  %v3753_v45 = vpop.f32.mrf.mxu3 }
 0x4fa   :  { %9082 = vst [vmem:[#allocation130_spill] sm:$0xff] %v7425_v17  ;;  %v3585_v20 = vadd.f32 %v3584_v0, %v9083_v38 }
 0x4fb   :  { %v7428_v16 = vpop.f32.mrf.mxu0  ;;  %v4096_v33 = vpop.f32.mrf.mxu1 }
 0x4fc   :  { %v3754_v55 = vadd.f32 %v3753_v45, %v3585_v20  ;;  %v9088_v45 = vld [vmem:[#allocation75_spill] sm:$0xff] }
 0x4fe   :  { %v3923_v63 = vadd.f32 %v7332_v14, %v3754_v55  ;;  %4142 = vmatmul.bf16.vlgmr.msra.gmra.mxu2 %v9084_v42  ;;  %4311 = vmatmul.bf16.vlgmr.msra.gmra.mxu3 %v9085_v59 }
 0x500   :  { %v7433_v9 = vadd.f32 %v4091_v47, %v3923_v63  ;;  %v9090_v47 = vld [vmem:[#allocation110_spill] sm:$0xff] }
 0x501   :  { %v3587_v21 = vpop.f32.mrf.mxu2  ;;  %v3756_v25 = vpop.f32.mrf.mxu3 }
 0x502   :  { %v3588_v54 = vadd.f32 %v3587_v21, %v9086_v50 }
 0x503   :  { %v7436_v1 = vpop.f32.mrf.mxu0  ;;  %v4099_v17 = vpop.f32.mrf.mxu1 }
 0x504   :  { %v3757_v0 = vadd.f32 %v3756_v25, %v3588_v54  ;;  %v9091_v25 = vld [vmem:[#allocation12_spill] sm:$0xff] }
 0x506   :  { %v3926_v38 = vadd.f32 %v7340_v44, %v3757_v0  ;;  %4510 = vmatmul.bf16.gmra.mxu0 %v9087_v52  ;;  %4654 = vmatmul.bf16.gmra.mxu1 %v9088_v45 }
 0x508   :  { %v7441_v14 = vadd.f32 %v4094_v46, %v3926_v38  ;;  %v9092_v46 = vld [vmem:[#allocation113_spill] sm:$0xff] }
 0x509   :  { %v3589_v42 = vpop.f32.mrf.mxu2  ;;  %v3758_v20 = vpop.f32.mrf.mxu3 }
 0x50a   :  { %9089 = vst [vmem:[#allocation132_spill] sm:$0xff] %v7441_v14  ;;  %v3590_v55 = vadd.f32 %v3589_v42, %v9090_v47 }
 0x50b   :  { %v7444_v63 = vpop.f32.mrf.mxu0  ;;  %v4101_v59 = vpop.f32.mrf.mxu1 }
 0x50c   :  { %v3759_v21 = vadd.f32 %v3758_v20, %v3590_v55  ;;  %v9093_v20 = vld [vmem:[#allocation80_spill] sm:$0xff] }
 0x50e   :  { %v3928_v50 = vadd.f32 %v7348_v51, %v3759_v21  ;;  %4147 = vmatmul.bf16.gmra.mxu2 %v9081_v61  ;;  %4316 = vmatmul.bf16.gmra.mxu3 %v9091_v25 }
 0x510   :  { %v7449_v44 = vadd.f32 %v4096_v33, %v3928_v50  ;;  %v9095_v33 = vld [vmem:[#allocation115_spill] sm:$0xff] }
 0x511   :  { %v3592_v52 = vpop.f32.mrf.mxu2  ;;  %v3761_v54 = vpop.f32.mrf.mxu3 }
 0x512   :  { %v3593_v0 = vadd.f32 %v3592_v52, %v9092_v46 }
 0x513   :  { %v7452_v38 = vpop.f32.mrf.mxu0  ;;  %v4104_v14 = vpop.f32.mrf.mxu1 }
 0x514   :  { %v3762_v42 = vadd.f32 %v3761_v54, %v3593_v0  ;;  %v9096_v54 = vld [vmem:[#allocation14_spill] sm:$0xff] }
 0x516   :  { %v3931_v47 = vadd.f32 %v7356_v2, %v3762_v42  ;;  %4515 = vmatmul.bf16.gmra.mxu0 %v6535_v26  ;;  %4659 = vmatmul.bf16.gmra.mxu1 %v9093_v20 }
 0x518   :  { %v7457_v51 = vadd.f32 %v4099_v17, %v3931_v47  ;;  %v9097_v17 = vld [vmem:[#allocation117_spill] sm:$0xff] }
 0x519   :  { %v3594_v61 = vpop.f32.mrf.mxu2  ;;  %v3763_v55 = vpop.f32.mrf.mxu3 }
 0x51a   :  { %9094 = vst [vmem:[#allocation48_spill] sm:$0xff] %v7457_v51  ;;  %v3595_v21 = vadd.f32 %v3594_v61, %v9095_v33 }
 0x51b   :  { %v7460_v50 = vpop.f32.mrf.mxu0  ;;  %v4106_v25 = vpop.f32.mrf.mxu1 }
 0x51c   :  { %v3764_v52 = vadd.f32 %v3763_v55, %v3595_v21  ;;  %v9098_v55 = vld [vmem:[#allocation76_spill] sm:$0xff] }
 0x51e   :  { %v3933_v46 = vadd.f32 %v7364_v40, %v3764_v52  ;;  %4152 = vmatmul.bf16.gmra.mxu2 %v9088_v45  ;;  %4321 = vmatmul.bf16.gmra.mxu3 %v9096_v54 }
 0x520   :  { %v7465_v2 = vadd.f32 %v4101_v59, %v3933_v46  ;;  %v9100_v59 = vld [vmem:[#allocation119_spill] sm:$0xff] }
 0x521   :  { %v3597_v26 = vpop.f32.mrf.mxu2  ;;  %v3766_v0 = vpop.f32.mrf.mxu3 }
 0x522   :  { %v3598_v42 = vadd.f32 %v3597_v26, %v9097_v17 }
 0x523   :  { %v4109_v47 = vpop.f32.mrf.mxu1  ;;  %v7468_v51 = vpop.f32.mrf.mxu0 }
 0x524   :  { %v3767_v61 = vadd.f32 %v3766_v0, %v3598_v42  ;;  %v9101_v0 = vld [vmem:[#allocation13_spill] sm:$0xff] }
 0x526   :  { %v3936_v33 = vadd.f32 %v7372_v4, %v3767_v61  ;;  %4520 = vmatmul.bf16.gmra.mxu0 %v6491_v12  ;;  %4664 = vmatmul.bf16.gmra.mxu1 %v9098_v55 }
 0x528   :  { %v7473_v40 = vadd.f32 %v4104_v14, %v3936_v33  ;;  %v9103_v14 = vld [vmem:[#allocation121_spill] sm:$0xff] }
 0x529   :  { %v3599_v45 = vpop.f32.mrf.mxu2  ;;  %v3768_v21 = vpop.f32.mrf.mxu3 }
 0x52a   :  { %9099 = vst [vmem:[#allocation134_spill] sm:$0xff] %v7473_v40  ;;  %v3600_v52 = vadd.f32 %v3599_v45, %v9100_v59 }
 0x52b   :  { %v4111_v46 = vpop.f32.mrf.mxu1  ;;  %v7476_v54 = vpop.f32.mrf.mxu0 }
 0x52c   :  { %v3769_v26 = vadd.f32 %v3768_v21, %v3600_v52  ;;  %v9104_v21 = vld [vmem:[#allocation77_spill] sm:$0xff] }
 0x52e   :  { %v3938_v17 = vadd.f32 %v7380_v48, %v3769_v26  ;;  %4157 = vmatmul.bf16.gmra.mxu2 %v9093_v20  ;;  %4326 = vmatmul.bf16.gmra.mxu3 %v9101_v0 }
 0x530   :  { %v7481_v4 = vadd.f32 %v4106_v25, %v3938_v17  ;;  %v9106_v25 = vld [vmem:[#allocation123_spill] sm:$0xff] }
 0x531   :  { %v3602_v12 = vpop.f32.mrf.mxu2  ;;  %v3771_v42 = vpop.f32.mrf.mxu3 }
 0x532   :  { %9102 = vst [vmem:[#allocation137_spill] sm:$0xff] %v7481_v4  ;;  %v3603_v61 = vadd.f32 %v3602_v12, %v9103_v14 }
 0x533   :  { %v4114_v33 = vpop.f32.mrf.mxu1  ;;  %v7484_v40 = vpop.f32.mrf.mxu0 }
 0x534   :  { %v3772_v45 = vadd.f32 %v3771_v42, %v3603_v61  ;;  %v9107_v42 = vld [vmem:[#allocation15_spill] sm:$0xff] }
 0x536   :  { %v3941_v59 = vadd.f32 %v7388_v28, %v3772_v45  ;;  %4525 = vmatmul.bf16.gmra.mxu0 %v8963_v57  ;;  %4669 = vmatmul.bf16.gmra.mxu1 %v9104_v21 }
 0x538   :  { %v7489_v48 = vadd.f32 %v4109_v47, %v3941_v59  ;;  %v9109_v47 = vld [vmem:[#allocation125_spill] sm:$0xff] }
 0x539   :  { %v3604_v20 = vpop.f32.mrf.mxu2  ;;  %v3773_v52 = vpop.f32.mrf.mxu3 }
 0x53a   :  { %9105 = vst [vmem:[#allocation45_spill] sm:$0xff] %v7489_v48  ;;  %v3605_v26 = vadd.f32 %v3604_v20, %v9106_v25 }
 0x53b   :  { %v4116_v17 = vpop.f32.mrf.mxu1  ;;  %v7492_v0 = vpop.f32.mrf.mxu0 }
 0x53c   :  { %v3774_v12 = vadd.f32 %v3773_v52, %v3605_v26  ;;  %v9110_v52 = vld [vmem:[#allocation78_spill] sm:$0xff] }
 0x53e   :  { %v3943_v14 = vadd.f32 %v7396_v27, %v3774_v12  ;;  %4162 = vmatmul.bf16.gmra.mxu2 %v9098_v55  ;;  %4331 = vmatmul.bf16.gmra.mxu3 %v9107_v42 }
 0x540   :  { %v7497_v28 = vadd.f32 %v4111_v46, %v3943_v14  ;;  %v9112_v46 = vld [vmem:[#allocation127_spill] sm:$0xff] }
 0x541   :  { %v3607_v57 = vpop.f32.mrf.mxu2  ;;  %v3776_v61 = vpop.f32.mrf.mxu3 }
 0x542   :  { %9108 = vst [vmem:[#allocation139_spill] sm:$0xff] %v7497_v28  ;;  %v3608_v45 = vadd.f32 %v3607_v57, %v9109_v47 }
 0x543   :  { %v4119_v59 = vpop.f32.mrf.mxu1  ;;  %v7500_v48 = vpop.f32.mrf.mxu0 }
 0x544   :  { %v3777_v20 = vadd.f32 %v3776_v61, %v3608_v45  ;;  %v9113_v61 = vld [vmem:[#allocation16_spill] sm:$0xff] }
 0x546   :  { %v3946_v25 = vadd.f32 %v7404_v19, %v3777_v20  ;;  %4530 = vmatmul.bf16.gmra.mxu0 %v8968_v10  ;;  %4674 = vmatmul.bf16.gmra.mxu1 %v9110_v52 }
 0x548   :  { %v7505_v27 = vadd.f32 %v4114_v33, %v3946_v25  ;;  %v9115_v33 = vld [vmem:[#allocation129_spill] sm:$0xff] }
 0x549   :  { %v3609_v55 = vpop.f32.mrf.mxu2  ;;  %v3778_v26 = vpop.f32.mrf.mxu3 }
 0x54a   :  { %9111 = vst [vmem:[#allocation103_spill] sm:$0xff] %v7505_v27  ;;  %v3610_v12 = vadd.f32 %v3609_v55, %v9112_v46 }
 0x54b   :  { %v4121_v14 = vpop.f32.mrf.mxu1  ;;  %v7508_v42 = vpop.f32.mrf.mxu0 }
 0x54c   :  { %v3779_v57 = vadd.f32 %v3778_v26, %v3610_v12  ;;  %v9116_v26 = vld [vmem:[#allocation84_spill] sm:$0xff] }
 0x54e   :  { %v3948_v47 = vadd.f32 %v7412_v62, %v3779_v57  ;;  %4167 = vmatmul.bf16.gmra.mxu2 %v9104_v21  ;;  %4336 = vmatmul.bf16.gmra.mxu3 %v9113_v61 }
 0x550   :  { %v7513_v19 = vadd.f32 %v4116_v17, %v3948_v47  ;;  %v9118_v17 = vld [vmem:[#allocation131_spill] sm:$0xff] }
 0x551   :  { %v3612_v10 = vpop.f32.mrf.mxu2  ;;  %v3781_v45 = vpop.f32.mrf.mxu3 }
 0x552   :  { %9114 = vst [vmem:[#allocation46_spill] sm:$0xff] %v7513_v19  ;;  %v3613_v20 = vadd.f32 %v3612_v10, %v9115_v33 }
 0x553   :  { %v4124_v25 = vpop.f32.mrf.mxu1  ;;  %v7516_v27 = vpop.f32.mrf.mxu0 }
 0x554   :  { %v3782_v55 = vadd.f32 %v3781_v45, %v3613_v20  ;;  %v9119_v45 = vld [vmem:[#allocation17_spill] sm:$0xff] }
 0x556   :  { %v3951_v46 = vadd.f32 %v7420_v7, %v3782_v55  ;;  %4535 = vmatmul.bf16.gmra.mxu0 %v8972_v23  ;;  %4679 = vmatmul.bf16.gmra.mxu1 %v9116_v26 }
 0x558   :  { %v7521_v62 = vadd.f32 %v4119_v59, %v3951_v46  ;;  %v9121_v59 = vld [vmem:[#allocation133_spill] sm:$0xff] }
 0x559   :  { %v3614_v21 = vpop.f32.mrf.mxu2  ;;  %v3783_v12 = vpop.f32.mrf.mxu3 }
 0x55a   :  { %9117 = vst [vmem:[#allocation74_spill] sm:$0xff] %v7521_v62  ;;  %v3615_v57 = vadd.f32 %v3614_v21, %v9118_v17 }
 0x55b   :  { %v4126_v47 = vpop.f32.mrf.mxu1  ;;  %v7524_v61 = vpop.f32.mrf.mxu0 }
 0x55c   :  { %v3784_v10 = vadd.f32 %v3783_v12, %v3615_v57 }
 0x55e   :  { %v3953_v33 = vadd.f32 %v7428_v16, %v3784_v10  ;;  %4172 = vmatmul.bf16.gmra.mxu2 %v9110_v52  ;;  %4341 = vmatmul.bf16.gmra.mxu3 %v9119_v45 }
 0x560   :  { %v7529_v7 = vadd.f32 %v4121_v14, %v3953_v33  ;;  %v9123_v14 = vld [vmem:[#allocation135_spill] sm:$0xff] }
 0x561   :  { %v3617_v23 = vpop.f32.mrf.mxu2  ;;  %v3786_v20 = vpop.f32.mrf.mxu3 }
 0x562   :  { %9120 = vst [vmem:[#allocation105_spill] sm:$0xff] %v7529_v7  ;;  %v3618_v55 = vadd.f32 %v3617_v23, %v9121_v59 }
 0x563   :  { %v4129_v46 = vpop.f32.mrf.mxu1  ;;  %v7532_v62 = vpop.f32.mrf.mxu0 }
 0x564   :  { %v3787_v21 = vadd.f32 %v3786_v20, %v3618_v55  ;;  %v9124_v20 = vld [vmem:[#allocation18_spill] sm:$0xff] }
 0x566   :  { %v3956_v17 = vadd.f32 %v7436_v1, %v3787_v21  ;;  %4540 = vmatmul.bf16.gmra.mxu0 %v8975_v22  ;;  %4684 = vmatmul.bf16.gmra.mxu1 %v8960_v31 }
 0x568   :  { %v7537_v16 = vadd.f32 %v4124_v25, %v3956_v17  ;;  %v9126_v25 = vld [vmem:[#allocation138_spill] sm:$0xff] }
 0x569   :  { %v3619_v52 = vpop.f32.mrf.mxu2  ;;  %v3788_v12 = vpop.f32.mrf.mxu3 }
 0x56a   :  { %9122 = vst [vmem:[#allocation71_spill] sm:$0xff] %v7537_v16  ;;  %v3620_v57 = vadd.f32 %v3619_v52, %v9123_v14 }
 0x56b   :  { %v4131_v10 = vpop.f32.mrf.mxu1  ;;  %v7540_v33 = vpop.f32.mrf.mxu0 }
 0x56c   :  { %v3789_v45 = vadd.f32 %v3788_v12, %v3620_v57 }
 0x56e   :  { %v3958_v23 = vadd.f32 %v7444_v63, %v3789_v45  ;;  %4177 = vmatmul.bf16.gmra.mxu2 %v9116_v26  ;;  %4346 = vmatmul.bf16.gmra.mxu3 %v9124_v20 }
 0x570   :  { %v7545_v1 = vadd.f32 %v4126_v47, %v3958_v23  ;;  %v9128_v47 = vld [vmem:[#allocation140_spill] sm:$0xff] }
 0x571   :  { %v3622_v22 = vpop.f32.mrf.mxu2  ;;  %v3791_v59 = vpop.f32.mrf.mxu3 }
 0x572   :  { %9125 = vst [vmem:[#allocation72_spill] sm:$0xff] %v7545_v1  ;;  %v3623_v55 = vadd.f32 %v3622_v22, %v9126_v25 }
 0x573   :  { %v7548_v21 = vpop.f32.mrf.mxu0  ;;  %v4650_v17 = vpop.f32.mrf.mxu1 }
 0x574   :  { %v3792_v52 = vadd.f32 %v3791_v59, %v3623_v55  ;;  %v9129_v59 = vld [vmem:[#allocation19_spill] sm:$0xff] }
 0x576   :  { %v3961_v14 = vadd.f32 %v7452_v38, %v3792_v52  ;;  %4545 = vmatmul.bf16.gmra.mxu0 %v8978_v15  ;;  %4689 = vmatmul.bf16.gmra.mxu1 %v8965_v60 }
 0x578   :  { %v7553_v63 = vadd.f32 %v4129_v46, %v3961_v14  ;;  %v9131_v46 = vld [vmem:[#allocation141_spill] sm:$0xff] }
 0x579   :  { %v3624_v26 = vpop.f32.mrf.mxu2  ;;  %v3793_v12 = vpop.f32.mrf.mxu3 }
 0x57a   :  { %9127 = vst [vmem:[#allocation108_spill] sm:$0xff] %v7553_v63  ;;  %v3625_v57 = vadd.f32 %v3624_v26, %v9128_v47 }
 0x57b   :  { %v7556_v45 = vpop.f32.mrf.mxu0  ;;  %v4652_v23 = vpop.f32.mrf.mxu1 }
 0x57c   :  { %v3794_v20 = vadd.f32 %v3793_v12, %v3625_v57  ;;  %v9132_v12 = vld [vmem:[#allocation82_spill] sm:$0xff] }
 0x57e   :  { %v3963_v22 = vadd.f32 %v7460_v50, %v3794_v20  ;;  %4182 = vmatmul.bf16.gmra.mxu2 %v8960_v31  ;;  %4351 = vmatmul.bf16.gmra.mxu3 %v9129_v59 }
 0x580   :  { %v7561_v38 = vadd.f32 %v4131_v10, %v3963_v22  ;;  %v9133_v10 = vld [vmem:[#allocation79_spill] sm:$0xff] }
 0x581   :  { %v4143_v15 = vpop.f32.mrf.mxu2  ;;  %v4312_v25 = vpop.f32.mrf.mxu3 }
 0x582   :  { %9130 = vst [vmem:[#allocation47_spill] sm:$0xff] %v7561_v38  ;;  %v4144_v55 = vadd.f32 %v4143_v15, %v9131_v46 }
 0x583   :  { %v7564_v52 = vpop.f32.mrf.mxu0  ;;  %v4655_v14 = vpop.f32.mrf.mxu1 }
 0x584   :  { %v4313_v26 = vadd.f32 %v4312_v25, %v4144_v55  ;;  %v9134_v25 = vld [vmem:[#allocation20_spill] sm:$0xff] }
 0x586   :  { %v4482_v47 = vadd.f32 %v7468_v51, %v4313_v26  ;;  %4550 = vmatmul.bf16.gmra.mxu0 %v8981_v34  ;;  %4694 = vmatmul.bf16.gmra.mxu1 %v9132_v12 }
 0x588   :  { %v7569_v50 = vadd.f32 %v4650_v17, %v4482_v47  ;;  %v9135_v17 = vld [vmem:[#allocation49_spill] sm:$0xff] }
 0x589   :  { %v4145_v31 = vpop.f32.mrf.mxu2  ;;  %v4314_v57 = vpop.f32.mrf.mxu3 }
 0x58a   :  { %v4146_v20 = vadd.f32 %v4145_v31, %v9133_v10 }
 0x58b   :  { %v7572_v22 = vpop.f32.mrf.mxu0  ;;  %v4657_v59 = vpop.f32.mrf.mxu1 }
 0x58c   :  { %v4315_v15 = vadd.f32 %v4314_v57, %v4146_v20 }
 0x58e   :  { %v4484_v46 = vadd.f32 %v7476_v54, %v4315_v15  ;;  %4187 = vmatmul.bf16.gmra.mxu2 %v8965_v60  ;;  %4356 = vmatmul.bf16.gmra.mxu3 %v9134_v25 }
 0x590   :  { %v7577_v51 = vadd.f32 %v4652_v23, %v4484_v46  ;;  %v9136_v23 = vld [vmem:[#allocation81_spill] sm:$0xff] }
 0x591   :  { %v4148_v34 = vpop.f32.mrf.mxu2  ;;  %v4317_v55 = vpop.f32.mrf.mxu3 }
 0x592   :  { %v4149_v26 = vadd.f32 %v4148_v34, %v9135_v17 }
 0x593   :  { %v7580_v47 = vpop.f32.mrf.mxu0  ;;  %v4660_v38 = vpop.f32.mrf.mxu1 }
 0x594   :  { %v4318_v31 = vadd.f32 %v4317_v55, %v4149_v26  ;;  %v9137_v55 = vld [vmem:[#allocation21_spill] sm:$0xff] }
 0x596   :  { %v4487_v10 = vadd.f32 %v7484_v40, %v4318_v31  ;;  %4555 = vmatmul.bf16.gmra.mxu0 %v6431_v8  ;;  %4699 = vmatmul.bf16.gmra.mxu1 %v6791_v58 }
 0x598   :  { %v7585_v54 = vadd.f32 %v4655_v14, %v4487_v10  ;;  %v9138_v14 = vld [vmem:[#allocation25_spill] sm:$0xff] }
 0x599   :  { %v4150_v60 = vpop.f32.mrf.mxu2  ;;  %v4319_v57 = vpop.f32.mrf.mxu3 }
 0x59a   :  { %v4151_v20 = vadd.f32 %v4150_v60, %v9136_v23 }
 0x59b   :  { %v4662_v15 = vpop.f32.mrf.mxu1  ;;  %v7588_v25 = vpop.f32.mrf.mxu0 }
 0x59c   :  { %v4320_v46 = vadd.f32 %v4319_v57, %v4151_v20 }
 0x59e   :  { %v4489_v34 = vadd.f32 %v7492_v0, %v4320_v46  ;;  %4192 = vmatmul.bf16.gmra.mxu2 %v9132_v12  ;;  %4361 = vmatmul.bf16.gmra.mxu3 %v9137_v55  ;;  %v9139_v55 = vld [vmem:[#allocation23_spill] sm:$0xff] }
 0x5a0   :  { %v7593_v40 = vadd.f32 %v4657_v59, %v4489_v34 }
 0x5a1   :  { %v4153_v17 = vpop.f32.mrf.mxu2  ;;  %v4322_v26 = vpop.f32.mrf.mxu3 }
 0x5a2   :  { %v4154_v31 = vadd.f32 %v4153_v17, %v9138_v14 }
 0x5a3   :  { %v4665_v10 = vpop.f32.mrf.mxu1  ;;  %v7597_v23 = vpop.f32.mrf.mxu0 }
 0x5a4   :  { %v4323_v63 = vadd.f32 %v4322_v26, %v4154_v31 }
 0x5a6   :  { %v4492_v60 = vadd.f32 %v7500_v48, %v4323_v63  ;;  %4560 = vmatmul.bf16.gmra.mxu0 %v8987_v43  ;;  %4704 = vmatmul.bf16.gmra.mxu1 %v8976_v24 }
 0x5a8   :  { %v7601_v0 = vadd.f32 %v4660_v38, %v4492_v60  ;;  %v9140_v60 = vld [vmem:[#allocation50_spill] sm:$0xff] }
 0x5a9   :  { %v4155_v12 = vpop.f32.mrf.mxu2  ;;  %v4324_v57 = vpop.f32.mrf.mxu3 }
 0x5aa   :  { %v4156_v59 = vadd.f32 %v4155_v12, %v7097_v13 }
 0x5ab   :  { %v4667_v20 = vpop.f32.mrf.mxu1  ;;  %v7609_v63 = vpop.f32.mrf.mxu0 }
 0x5ac   :  { %v4325_v46 = vadd.f32 %v4324_v57, %v4156_v59 }
 0x5ae   :  { %v4494_v34 = vadd.f32 %v7508_v42, %v4325_v46  ;;  %4197 = vmatmul.bf16.gmra.mxu2 %v6791_v58  ;;  %4366 = vmatmul.bf16.gmra.mxu3 %v9139_v55  ;;  %v9141_v46 = vld [vmem:[#allocation22_spill] sm:$0xff] }
 0x5b0   :  { %v7607_v48 = vadd.f32 %v4662_v15, %v4494_v34 }
 0x5b1   :  { %v4158_v43 = vpop.f32.mrf.mxu2  ;;  %v4327_v17 = vpop.f32.mrf.mxu3 }
 0x5b2   :  { %v4159_v38 = vadd.f32 %v4158_v43, %v7105_v3 }
 0x5b3   :  { %v4670_v26 = vpop.f32.mrf.mxu1  ;;  %v7617_v15 = vpop.f32.mrf.mxu0 }
 0x5b4   :  { %v4328_v14 = vadd.f32 %v4327_v17, %v4159_v38 }
 0x5b6   :  { %v4497_v13 = vadd.f32 %v7516_v27, %v4328_v14  ;;  %4565 = vmatmul.bf16.gmra.mxu0 %v8992_v6  ;;  %4709 = vmatmul.bf16.gmra.mxu1 %v8979_v5 }
 0x5b8   :  { %v7615_v42 = vadd.f32 %v4665_v10, %v4497_v13 }
 0x5b9   :  { %v4160_v58 = vpop.f32.mrf.mxu2  ;;  %v4329_v31 = vpop.f32.mrf.mxu3 }
 0x5ba   :  { %v4161_v12 = vadd.f32 %v4160_v58, %v9140_v60 }
 0x5bb   :  { %v4672_v57 = vpop.f32.mrf.mxu1  ;;  %v7626_v43 = vpop.f32.mrf.mxu0 }
 0x5bc   :  { %v4330_v59 = vadd.f32 %v4329_v31, %v4161_v12  ;;  %v9143_v12 = vld [vmem:[#allocation24_spill] sm:$0xff] }
 0x5be   :  { %v4499_v3 = vadd.f32 %v7524_v61, %v4330_v59  ;;  %4202 = vmatmul.bf16.gmra.mxu2 %v8976_v24  ;;  %4371 = vmatmul.bf16.gmra.mxu3 %v9141_v46 }
 0x5c0   :  { %v7623_v27 = vadd.f32 %v4667_v20, %v4499_v3  ;;  %v9142_v20 = vld [vmem:[#allocation55_spill] sm:$0xff] }
 0x5c1   :  { %v4163_v6 = vpop.f32.mrf.mxu2  ;;  %v4332_v34 = vpop.f32.mrf.mxu3 }
 0x5c2   :  { %v4164_v10 = vadd.f32 %v4163_v6, %v7121_v11 }
 0x5c3   :  { %v4675_v55 = vpop.f32.mrf.mxu1  ;;  %v7634_v60 = vpop.f32.mrf.mxu0 }
 0x5c4   :  { %v4333_v17 = vadd.f32 %v4332_v34, %v4164_v10  ;;  %v9144_v34 = vld [vmem:[#allocation91_spill] sm:$0xff] }
 0x5c6   :  { %v4502_v38 = vadd.f32 %v7532_v62, %v4333_v17  ;;  %4570 = vmatmul.bf16.gmra.mxu0 %v8997_v18  ;;  %4714 = vmatmul.bf16.gmra.mxu1 %v8983_v56 }
 0x5c8   :  { %v7631_v61 = vadd.f32 %v4670_v26, %v4502_v38 }
 0x5c9   :  { %v4165_v24 = vpop.f32.mrf.mxu2  ;;  %v4334_v14 = vpop.f32.mrf.mxu3 }
 0x5ca   :  { %v4166_v13 = vadd.f32 %v4165_v24, %v9142_v20  ;;  %v9146_v20 = vld [vmem:[#allocation26_spill] sm:$0xff] }
 0x5cb   :  { %v4677_v58 = vpop.f32.mrf.mxu1  ;;  %v7645_v10 = vpop.f32.mrf.mxu0 }
 0x5cc   :  { %v4335_v31 = vadd.f32 %v4334_v14, %v4166_v13 }
 0x5ce   :  { %v4504_v11 = vadd.f32 %v7540_v33, %v4335_v31  ;;  %4207 = vmatmul.bf16.gmra.mxu2 %v8979_v5  ;;  %4376 = vmatmul.bf16.gmra.mxu3 %v9143_v12 }
 0x5d0   :  { %v7639_v62 = vadd.f32 %v4672_v57, %v4504_v11  ;;  %v9145_v57 = vld [vmem:[#allocation51_spill] sm:$0xff] }
 0x5d1   :  { %v4168_v18 = vpop.f32.mrf.mxu2  ;;  %v4337_v59 = vpop.f32.mrf.mxu3 }
 0x5d2   :  { %v4169_v26 = vadd.f32 %v4168_v18, %v7137_v49 }
 0x5d3   :  { %v4680_v3 = vpop.f32.mrf.mxu1  ;;  %v7655_v31 = vpop.f32.mrf.mxu0 }
 0x5d4   :  { %v4338_v46 = vadd.f32 %v4337_v59, %v4169_v26 }
 0x5d6   :  { %v4507_v6 = vadd.f32 %v7548_v21, %v4338_v46  ;;  %4575 = vmatmul.bf16.gmra.mxu0 %v9002_v41  ;;  %4719 = vmatmul.bf16.gmra.mxu1 %v9144_v34 }
 0x5d8   :  { %v7647_v33 = vadd.f32 %v4675_v55, %v4507_v6  ;;  %v9147_v55 = vld [vmem:[#allocation83_spill] sm:$0xff] }
 0x5d9   :  { %v4170_v5 = vpop.f32.mrf.mxu2  ;;  %v4339_v17 = vpop.f32.mrf.mxu3 }
 0x5da   :  { %v4171_v38 = vadd.f32 %v4170_v5, %v9145_v57  ;;  %v9148_v57 = vld [vmem:[#allocation63_spill] sm:$0xff] }
 0x5db   :  { %v4682_v24 = vpop.f32.mrf.mxu1  ;;  %v7664_v6 = vpop.f32.mrf.mxu0 }
 0x5dc   :  { %v4340_v14 = vadd.f32 %v4339_v17, %v4171_v38 }
 0x5de   :  { %v4509_v49 = vadd.f32 %v7556_v45, %v4340_v14  ;;  %4212 = vmatmul.bf16.gmra.mxu2 %v8983_v56  ;;  %4381 = vmatmul.bf16.gmra.mxu3 %v9146_v20 }
 0x5e0   :  { %v7653_v21 = vadd.f32 %v4677_v58, %v4509_v49 }
 0x5e1   :  { %v4173_v41 = vpop.f32.mrf.mxu2  ;;  %v4342_v13 = vpop.f32.mrf.mxu3 }
 0x5e2   :  { %v4174_v11 = vadd.f32 %v4173_v41, %v9147_v55 }
 0x5e3   :  { %v4685_v12 = vpop.f32.mrf.mxu1  ;;  %v7672_v20 = vpop.f32.mrf.mxu0 }
 0x5e4   :  { %v4343_v18 = vadd.f32 %v4342_v13, %v4174_v11 }
 0x5e6   :  { %v4512_v59 = vadd.f32 %v7564_v52, %v4343_v18  ;;  %4580 = vmatmul.bf16.gmra.mxu0 %v9006_v39  ;;  %4724 = vmatmul.bf16.gmra.mxu1 %v6622_v36  ;;  %v9150_v18 = vld [vmem:[#allocation27_spill] sm:$0xff] }
 0x5e8   :  { %v7661_v45 = vadd.f32 %v4680_v3, %v4512_v59 }
 0x5e9   :  { %v4175_v56 = vpop.f32.mrf.mxu2  ;;  %v4344_v26 = vpop.f32.mrf.mxu3 }
 0x5ea   :  { %v4176_v58 = vadd.f32 %v4175_v56, %v7161_v37 }
 0x5eb   :  { %v4687_v46 = vpop.f32.mrf.mxu1  ;;  %v7683_v59 = vpop.f32.mrf.mxu0 }
 0x5ec   :  { %v4345_v5 = vadd.f32 %v4344_v26, %v4176_v58 }
 0x5ee   :  { %v4514_v17 = vadd.f32 %v7572_v22, %v4345_v5  ;;  %4217 = vmatmul.bf16.gmra.mxu2 %v9144_v34  ;;  %4386 = vmatmul.bf16.gmra.mxu3 %v9148_v57 }
 0x5f0   :  { %v7669_v52 = vadd.f32 %v4682_v24, %v4514_v17  ;;  %v9149_v24 = vld [vmem:[#allocation52_spill] sm:$0xff] }
 0x5f1   :  { %v4178_v39 = vpop.f32.mrf.mxu2  ;;  %v4347_v38 = vpop.f32.mrf.mxu3 }
 0x5f2   :  { %v4179_v3 = vadd.f32 %v4178_v39, %v7169_v35  ;;  %v9152_v39 = vld [vmem:[#allocation89_spill] sm:$0xff] }
 0x5f3   :  { %v4690_v14 = vpop.f32.mrf.mxu1 }
 0x5f4   :  { %v4348_v49 = vadd.f32 %v4347_v38, %v4179_v3  ;;  %v7693_v3 = vpop.f32.mrf.mxu0 }
 0x5f6   :  { %v4517_v37 = vadd.f32 %v7580_v47, %v4348_v49  ;;  %4585 = vmatmul.bf16.gmra.mxu0 %v9011_v29  ;;  %4729 = vmatmul.bf16.gmra.mxu1 %v8994_v30 }
 0x5f8   :  { %v7677_v22 = vadd.f32 %v4685_v12, %v4517_v37  ;;  %v9151_v12 = vld [vmem:[#allocation85_spill] sm:$0xff] }
 0x5f9   :  { %v4180_v34 = vpop.f32.mrf.mxu2  ;;  %v4349_v41 = vpop.f32.mrf.mxu3 }
 0x5fa   :  { %v4181_v13 = vadd.f32 %v4180_v34, %v9149_v24  ;;  %v9154_v24 = vld [vmem:[#allocation28_spill] sm:$0xff] }
 0x5fb   :  { %v4692_v55 = vpop.f32.mrf.mxu1 }
 0x5fc   :  { %v4350_v11 = vadd.f32 %v4349_v41, %v4181_v13 }
 0x5fe   :  { %v4519_v35 = vadd.f32 %v7588_v25, %v4350_v11  ;;  %4222 = vmatmul.bf16.gmra.mxu2 %v8989_v53  ;;  %4391 = vmatmul.bf16.gmra.mxu3 %v9150_v18  ;;  %v7702_v18 = vpop.f32.mrf.mxu0 }
 0x600   :  { %v7685_v47 = vadd.f32 %v4687_v46, %v4519_v35  ;;  %v9153_v46 = vld [vmem:[#allocation53_spill] sm:$0xff] }
 0x601   :  { %v4183_v29 = vpop.f32.mrf.mxu2  ;;  %v4352_v56 = vpop.f32.mrf.mxu3 }
 0x602   :  { %v4184_v26 = vadd.f32 %v4183_v29, %v9151_v12  ;;  %v9157_v12 = vld [vmem:[#allocation68_spill] sm:$0xff] }
 0x603   :  { %v4695_v58 = vpop.f32.mrf.mxu1 }
 0x604   :  { %v4353_v5 = vadd.f32 %v4352_v56, %v4184_v26  ;;  %v9158_v26 = vld [vmem:[#allocation95_spill] sm:$0xff] }
 0x606   :  { %v4522_v17 = vadd.f32 %v7597_v23, %v4353_v5  ;;  %4590 = vmatmul.bf16.gmra.mxu0 %v9018_v32  ;;  %4734 = vmatmul.bf16.gmra.mxu1 %v9152_v39 }
 0x608   :  { %v7691_v25 = vadd.f32 %v4690_v14, %v4522_v17  ;;  %v9156_v14 = vld [vmem:[#allocation86_spill] sm:$0xff] }
 0x609   :  { %v4185_v53 = vpop.f32.mrf.mxu2  ;;  %v4354_v38 = vpop.f32.mrf.mxu3 }
 0x60a   :  { %v4186_v49 = vadd.f32 %v4185_v53, %v9153_v46  ;;  %v7710_v46 = vpop.f32.mrf.mxu0 }
 0x60b   :  { %v4697_v37 = vpop.f32.mrf.mxu1 }
 0x60c   :  { %v4355_v34 = vadd.f32 %v4354_v38, %v4186_v49 }
 0x60e   :  { %v4524_v41 = vadd.f32 %v7609_v63, %v4355_v34  ;;  %4227 = vmatmul.bf16.gmra.mxu2 %v8994_v30  ;;  %4396 = vmatmul.bf16.gmra.mxu3 %v9154_v24  ;;  %v9161_v34 = vld [vmem:[#allocation29_spill] sm:$0xff] }
 0x610   :  { %v7699_v23 = vadd.f32 %v4692_v55, %v4524_v41  ;;  %v9160_v55 = vld [vmem:[#allocation59_spill] sm:$0xff] }
 0x611   :  { %v4188_v32 = vpop.f32.mrf.mxu2  ;;  %v4357_v13 = vpop.f32.mrf.mxu3 }
 0x612   :  { %9155 = vst [vmem:[#allocation75_spill] sm:$0xff] %v7699_v23  ;;  %v4189_v11 = vadd.f32 %v4188_v32, %v9156_v14 }
 0x613   :  { %v4700_v35 = vpop.f32.mrf.mxu1 }
 0x614   :  { %v4358_v29 = vadd.f32 %v4357_v13, %v4189_v11 }
 0x616   :  { %v4527_v56 = vadd.f32 %v7617_v15, %v4358_v29  ;;  %4595 = vmatmul.bf16.gmra.mxu0 %v9157_v12  ;;  %4739 = vmatmul.bf16.gmra.mxu1 %v9158_v26  ;;  %v9164_v29 = vld [vmem:[#allocation62_spill] sm:$0xff]  ;;  %v7721_v12 = vpop.f32.mrf.mxu0 }
 0x618   :  { %v7707_v63 = vadd.f32 %v4695_v58, %v4527_v56  ;;  %v9163_v58 = vld [vmem:[#allocation54_spill] sm:$0xff] }
 0x619   :  { %v4190_v30 = vpop.f32.mrf.mxu2  ;;  %v4359_v5 = vpop.f32.mrf.mxu3  ;;  %v9165_v56 = vld [vmem:[#allocation90_spill] sm:$0xff] }
 0x61a   :  { %9159 = vst [vmem:[#allocation110_spill] sm:$0xff] %v7707_v63  ;;  %v4191_v17 = vadd.f32 %v4190_v30, %v9160_v55 }
 0x61b   :  { %v4702_v53 = vpop.f32.mrf.mxu1 }
 0x61c   :  { %v4360_v38 = vadd.f32 %v4359_v5, %v4191_v17 }
 0x61e   :  { %v4529_v49 = vadd.f32 %v7626_v43, %v4360_v38  ;;  %4232 = vmatmul.bf16.gmra.mxu2 %v9152_v39  ;;  %4401 = vmatmul.bf16.gmra.mxu3 %v9161_v34 }
 0x620   :  { %v7715_v15 = vadd.f32 %v4697_v37, %v4529_v49  ;;  %v9167_v37 = vld [vmem:[#allocation87_spill] sm:$0xff]  ;;  %v9168_v49 = vld [vmem:[#allocation30_spill] sm:$0xff] }
 0x621   :  { %v4193_v41 = vpop.f32.mrf.mxu2  ;;  %v4362_v24 = vpop.f32.mrf.mxu3 }
 0x622   :  { %9162 = vst [vmem:[#allocation12_spill] sm:$0xff] %v7715_v15  ;;  %v4194_v32 = vadd.f32 %v4193_v41, %v9163_v58 }
 0x623   :  { %v4705_v13 = vpop.f32.mrf.mxu1 }
 0x624   :  { %v4363_v14 = vadd.f32 %v4362_v24, %v4194_v32  ;;  %v7731_v24 = vpop.f32.mrf.mxu0 }
 0x626   :  { %v4532_v11 = vadd.f32 %v7634_v60, %v4363_v14  ;;  %4600 = vmatmul.bf16.gmra.mxu0 %v9164_v29  ;;  %4744 = vmatmul.bf16.gmra.mxu1 %v9165_v56  ;;  %v9171_v29 = vld [vmem:[#allocation65_spill] sm:$0xff] }
 0x628   :  { %v7723_v43 = vadd.f32 %v4700_v35, %v4532_v11  ;;  %v9170_v35 = vld [vmem:[#allocation56_spill] sm:$0xff] }
 0x629   :  { %v4195_v39 = vpop.f32.mrf.mxu2  ;;  %v4364_v30 = vpop.f32.mrf.mxu3 }
 0x62a   :  { %9166 = vst [vmem:[#allocation113_spill] sm:$0xff] %v7723_v43  ;;  %v4196_v5 = vadd.f32 %v4195_v39, %v9167_v37  ;;  %v9172_v39 = vld [vmem:[#allocation92_spill] sm:$0xff] }
 0x62b   :  { %v4707_v55 = vpop.f32.mrf.mxu1 }
 0x62c   :  { %v4365_v17 = vadd.f32 %v4364_v30, %v4196_v5 }
 0x62e   :  { %v4534_v38 = vadd.f32 %v7645_v10, %v4365_v17  ;;  %4237 = vmatmul.bf16.gmra.mxu2 %v9158_v26  ;;  %4406 = vmatmul.bf16.gmra.mxu3 %v9168_v49  ;;  %v7740_v17 = vpop.f32.mrf.mxu0 }
 0x630   :  { %v7729_v60 = vadd.f32 %v4702_v53, %v4534_v38  ;;  %v9174_v53 = vld [vmem:[#allocation88_spill] sm:$0xff] }
 0x631   :  { %v4198_v34 = vpop.f32.mrf.mxu2  ;;  %v4367_v41 = vpop.f32.mrf.mxu3 }
 0x632   :  { %9169 = vst [vmem:[#allocation80_spill] sm:$0xff] %v7729_v60  ;;  %v4199_v58 = vadd.f32 %v4198_v34, %v9170_v35  ;;  %v9175_v34 = vld [vmem:[#allocation32_spill] sm:$0xff] }
 0x633   :  { %v4710_v32 = vpop.f32.mrf.mxu1 }
 0x634   :  { %v4368_v14 = vadd.f32 %v4367_v41, %v4199_v58 }
 0x636   :  { %v4537_v11 = vadd.f32 %v7655_v31, %v4368_v14  ;;  %4605 = vmatmul.bf16.gmra.mxu0 %v9171_v29  ;;  %4749 = vmatmul.bf16.gmra.mxu1 %v9172_v39  ;;  %v7748_v29 = vpop.f32.mrf.mxu0 }
 0x638   :  { %v7737_v10 = vadd.f32 %v4705_v13, %v4537_v11  ;;  %v9177_v13 = vld [vmem:[#allocation57_spill] sm:$0xff] }
 0x639   :  { %v4200_v26 = vpop.f32.mrf.mxu2  ;;  %v4369_v30 = vpop.f32.mrf.mxu3 }
 0x63a   :  { %9173 = vst [vmem:[#allocation115_spill] sm:$0xff] %v7737_v10  ;;  %v4201_v37 = vadd.f32 %v4200_v26, %v9174_v53  ;;  %v9178_v53 = vld [vmem:[#allocation66_spill] sm:$0xff] }
 0x63b   :  { %v4712_v5 = vpop.f32.mrf.mxu1 }
 0x63c   :  { %v4370_v38 = vadd.f32 %v4369_v30, %v4201_v37  ;;  %v9179_v30 = vld [vmem:[#allocation93_spill] sm:$0xff] }
 0x63e   :  { %v4539_v49 = vadd.f32 %v7664_v6, %v4370_v38  ;;  %4242 = vmatmul.bf16.gmra.mxu2 %v9165_v56  ;;  %4411 = vmatmul.bf16.gmra.mxu3 %v9175_v34 }
 0x640   :  { %v7745_v31 = vadd.f32 %v4707_v55, %v4539_v49  ;;  %v9181_v55 = vld [vmem:[#allocation64_spill] sm:$0xff] }
 0x641   :  { %v4203_v41 = vpop.f32.mrf.mxu2  ;;  %v4372_v35 = vpop.f32.mrf.mxu3 }
 0x642   :  { %9176 = vst [vmem:[#allocation14_spill] sm:$0xff] %v7745_v31  ;;  %v4204_v58 = vadd.f32 %v4203_v41, %v9177_v13  ;;  %v7759_v13 = vpop.f32.mrf.mxu0 }
 0x643   :  { %v4715_v14 = vpop.f32.mrf.mxu1 }
 0x644   :  { %v4373_v11 = vadd.f32 %v4372_v35, %v4204_v58  ;;  %v9182_v35 = vld [vmem:[#allocation31_spill] sm:$0xff] }
 0x646   :  { %v4542_v26 = vadd.f32 %v7672_v20, %v4373_v11  ;;  %4610 = vmatmul.bf16.gmra.mxu0 %v9178_v53  ;;  %4754 = vmatmul.bf16.gmra.mxu1 %v9179_v30 }
 0x648   :  { %v7753_v6 = vadd.f32 %v4710_v32, %v4542_v26  ;;  %v9184_v32 = vld [vmem:[#allocation58_spill] sm:$0xff] }
 0x649   :  { %v4205_v56 = vpop.f32.mrf.mxu2  ;;  %v4374_v37 = vpop.f32.mrf.mxu3 }
 0x64a   :  { %9180 = vst [vmem:[#allocation117_spill] sm:$0xff] %v7753_v6  ;;  %v4206_v38 = vadd.f32 %v4205_v56, %v9181_v55  ;;  %v9185_v55 = vld [vmem:[#allocation73_spill] sm:$0xff] }
 0x64b   :  { %v4717_v49 = vpop.f32.mrf.mxu1 }
 0x64c   :  { %v4375_v34 = vadd.f32 %v4374_v37, %v4206_v38  ;;  %v9186_v37 = vld [vmem:[#allocation99_spill] sm:$0xff] }
 0x64e   :  { %v4544_v41 = vadd.f32 %v7683_v59, %v4375_v34  ;;  %4247 = vmatmul.bf16.gmra.mxu2 %v9172_v39  ;;  %4416 = vmatmul.bf16.gmra.mxu3 %v9182_v35  ;;  %v7769_v34 = vpop.f32.mrf.mxu0 }
 0x650   :  { %v7761_v20 = vadd.f32 %v4712_v5, %v4544_v41  ;;  %v9188_v5 = vld [vmem:[#allocation60_spill] sm:$0xff] }
 0x651   :  { %v4208_v58 = vpop.f32.mrf.mxu2  ;;  %v4377_v11 = vpop.f32.mrf.mxu3 }
 0x652   :  { %9183 = vst [vmem:[#allocation76_spill] sm:$0xff] %v7761_v20  ;;  %v4209_v26 = vadd.f32 %v4208_v58, %v9184_v32 }
 0x653   :  { %v4720_v53 = vpop.f32.mrf.mxu1 }
 0x654   :  { %v4378_v1 = vadd.f32 %v4377_v11, %v4209_v26  ;;  %v9189_v11 = vld [vmem:[#allocation33_spill] sm:$0xff] }
 0x656   :  { %v4547_v56 = vadd.f32 %v7693_v3, %v4378_v1  ;;  %4615 = vmatmul.bf16.gmra.mxu0 %v9185_v55  ;;  %4759 = vmatmul.bf16.gmra.mxu1 %v9186_v37  ;;  %v7778_v55 = vpop.f32.mrf.mxu0 }
 0x658   :  { %v7767_v59 = vadd.f32 %v4715_v14, %v4547_v56  ;;  %v9191_v14 = vld [vmem:[#allocation136_spill] sm:$0xff] }
 0x659   :  { %v4210_v39 = vpop.f32.mrf.mxu2  ;;  %v4379_v38 = vpop.f32.mrf.mxu3 }
 0x65a   :  { %9187 = vst [vmem:[#allocation119_spill] sm:$0xff] %v7767_v59  ;;  %v4211_v41 = vadd.f32 %v4210_v39, %v9188_v5  ;;  %v9192_v5 = vld [vmem:[#allocation67_spill] sm:$0xff] }
 0x65b   :  { %v4722_v35 = vpop.f32.mrf.mxu1 }
 0x65c   :  { %v4380_v16 = vadd.f32 %v4379_v38, %v4211_v41  ;;  %v9193_v38 = vld [vmem:[#allocation94_spill] sm:$0xff] }
 0x65e   :  { %v4549_v58 = vadd.f32 %v7702_v18, %v4380_v16  ;;  %4252 = vmatmul.bf16.gmra.mxu2 %v9179_v30  ;;  %4421 = vmatmul.bf16.gmra.mxu3 %v9189_v11  ;;  %v7786_v19 = vpop.f32.mrf.mxu0 }
 0x660   :  { %v7775_v1 = vadd.f32 %v4717_v49, %v4549_v58  ;;  %v9195_v49 = vld [vmem:[#allocation102_spill] sm:$0xff] }
 0x661   :  { %v4213_v3 = vpop.f32.mrf.mxu2  ;;  %v4382_v32 = vpop.f32.mrf.mxu3 }
 0x662   :  { %9190 = vst [vmem:[#allocation13_spill] sm:$0xff] %v7775_v1  ;;  %v4214_v26 = vadd.f32 %v4213_v3, %v9191_v14 }
 0x663   :  { %v4725_v56 = vpop.f32.mrf.mxu1 }
 0x664   :  { %v4383_v7 = vadd.f32 %v4382_v32, %v4214_v26  ;;  %v9196_v32 = vld [vmem:[#allocation34_spill] sm:$0xff] }
 0x666   :  { %v4552_v39 = vadd.f32 %v7710_v46, %v4383_v7  ;;  %4620 = vmatmul.bf16.gmra.mxu0 %v9192_v5  ;;  %4764 = vmatmul.bf16.gmra.mxu1 %v9193_v38 }
 0x668   :  { %v7783_v16 = vadd.f32 %v4720_v53, %v4552_v39  ;;  %v9198_v53 = vld [vmem:[#allocation61_spill] sm:$0xff] }
 0x669   :  { %v4215_v18 = vpop.f32.mrf.mxu2  ;;  %v4384_v30 = vpop.f32.mrf.mxu3 }
 0x66a   :  { %9194 = vst [vmem:[#allocation121_spill] sm:$0xff] %v7783_v16  ;;  %v4216_v41 = vadd.f32 %v4215_v18, %v9195_v49  ;;  %v9199_v49 = vld [vmem:[#allocation69_spill] sm:$0xff] }
 0x66b   :  { %v4727_v58 = vpop.f32.mrf.mxu1 }
 0x66c   :  { %v4385_v11 = vadd.f32 %v4384_v30, %v4216_v41  ;;  %v9200_v30 = vld [vmem:[#allocation96_spill] sm:$0xff]  ;;  %v7797_v41 = vpop.f32.mrf.mxu0 }
 0x66e   :  { %v4554_v3 = vadd.f32 %v7721_v12, %v4385_v11  ;;  %4257 = vmatmul.bf16.gmra.mxu2 %v9186_v37  ;;  %4426 = vmatmul.bf16.gmra.mxu3 %v9196_v32 }
 0x670   :  { %v7791_v7 = vadd.f32 %v4722_v35, %v4554_v3  ;;  %v9202_v35 = vld [vmem:[#allocation104_spill] sm:$0xff] }
 0x671   :  { %v4218_v46 = vpop.f32.mrf.mxu2  ;;  %v4387_v14 = vpop.f32.mrf.mxu3 }
 0x672   :  { %9197 = vst [vmem:[#allocation77_spill] sm:$0xff] %v7791_v7  ;;  %v4219_v26 = vadd.f32 %v4218_v46, %v9198_v53 }
 0x673   :  { %v4730_v39 = vpop.f32.mrf.mxu1 }
 0x674   :  { %v4388_v5 = vadd.f32 %v4387_v14, %v4219_v26  ;;  %v9203_v14 = vld [vmem:[#allocation35_spill] sm:$0xff] }
 0x676   :  { %v4557_v18 = vadd.f32 %v7731_v24, %v4388_v5  ;;  %4625 = vmatmul.bf16.gmra.mxu0 %v9199_v49  ;;  %4769 = vmatmul.bf16.gmra.mxu1 %v9200_v30  ;;  %v4576_v5 = vpop.f32.mrf.mxu0  ;;  %v9205_v49 = vld [vmem:[#allocation107_spill] sm:$0xff] }
 0x678   :  { %v7799_v12 = vadd.f32 %v4725_v56, %v4557_v18 }
 0x679   :  { %v4220_v37 = vpop.f32.mrf.mxu2  ;;  %v4389_v11 = vpop.f32.mrf.mxu3 }
 0x67a   :  { %9201 = vst [vmem:[#allocation123_spill] sm:$0xff] %v7799_v12  ;;  %v4221_v3 = vadd.f32 %v4220_v37, %v9202_v35  ;;  %v9206_v37 = vld [vmem:[#allocation70_spill] sm:$0xff]  ;;  %v9209_v35 = vld [vmem:[#allocation109_spill] sm:$0xff] }
 0x67b   :  { %v4732_v32 = vpop.f32.mrf.mxu1 }
 0x67c   :  { %v4390_v28 = vadd.f32 %v4389_v11, %v4221_v3  ;;  %v9207_v11 = vld [vmem:[#allocation97_spill] sm:$0xff] }
 0x67e   :  { %v4559_v46 = vadd.f32 %v7740_v17, %v4390_v28  ;;  %4262 = vmatmul.bf16.gmra.mxu2 %v9193_v38  ;;  %4431 = vmatmul.bf16.gmra.mxu3 %v9203_v14 }
 0x680   :  { %v7805_v24 = vadd.f32 %v4727_v58, %v4559_v46  ;;  %v4578_v46 = vpop.f32.mrf.mxu0 }
 0x681   :  { %v4223_v53 = vpop.f32.mrf.mxu2  ;;  %v4392_v26 = vpop.f32.mrf.mxu3 }
 0x682   :  { %9204 = vst [vmem:[#allocation15_spill] sm:$0xff] %v7805_v24  ;;  %v4224_v56 = vadd.f32 %v4223_v53, %v9205_v49  ;;  %v9210_v53 = vld [vmem:[#allocation36_spill] sm:$0xff] }
 0x683   :  { %v4735_v18 = vpop.f32.mrf.mxu1  ;;  %v9212_v49 = vld [vmem:[#allocation112_spill] sm:$0xff] }
 0x684   :  { %v4393_v4 = vadd.f32 %v4392_v26, %v4224_v56 }
 0x686   :  { %v4562_v12 = vadd.f32 %v7748_v29, %v4393_v4  ;;  %4630 = vmatmul.bf16.gmra.mxu0 %v9206_v37  ;;  %4774 = vmatmul.bf16.gmra.mxu1 %v9207_v11 }
 0x688   :  { %v7811_v28 = vadd.f32 %v4730_v39, %v4562_v12  ;;  %v4581_v37 = vpop.f32.mrf.mxu0 }
 0x689   :  { %v4225_v17 = vpop.f32.mrf.mxu2  ;;  %v4394_v38 = vpop.f32.mrf.mxu3 }
 0x68a   :  { %9208 = vst [vmem:[#allocation125_spill] sm:$0xff] %v7811_v28  ;;  %v4226_v58 = vadd.f32 %v4225_v17, %v9209_v35 }
 0x68b   :  { %v4737_v3 = vpop.f32.mrf.mxu1 }
 0x68c   :  { %v4395_v14 = vadd.f32 %v4394_v38, %v4226_v58  ;;  %v9213_v38 = vld [vmem:[#allocation106_spill] sm:$0xff] }
 0x68d   :  { %v9215_v58 = vld [vmem:[#allocation114_spill] sm:$0xff] }
 0x68e   :  { %v4564_v24 = vadd.f32 %v7759_v13, %v4395_v14  ;;  %4267 = vmatmul.bf16.gmra.mxu2 %v9200_v30  ;;  %4436 = vmatmul.bf16.gmra.mxu3 %v9210_v53 }
 0x690   :  { %v7817_v4 = vadd.f32 %v4732_v32, %v4564_v24 }
 0x691   :  { %v4228_v29 = vpop.f32.mrf.mxu2  ;;  %v4397_v26 = vpop.f32.mrf.mxu3 }
 0x692   :  { %9211 = vst [vmem:[#allocation78_spill] sm:$0xff] %v7817_v4  ;;  %v4229_v39 = vadd.f32 %v4228_v29, %v9212_v49  ;;  %v9216_v29 = vld [vmem:[#allocation37_spill] sm:$0xff]  ;;  %v9225_v4 = vld [vmem:[#allocation100_spill] sm:$0xff] }
 0x693   :  { %v4740_v12 = vpop.f32.mrf.mxu1 }
 0x694   :  { %v4398_v56 = vadd.f32 %v4397_v26, %v4229_v39  ;;  %v4583_v26 = vpop.f32.mrf.mxu0  ;;  %v9218_v39 = vld [vmem:[#allocation116_spill] sm:$0xff] }
 0x696   :  { %v4567_v17 = vadd.f32 %v7769_v34, %v4398_v56  ;;  %4635 = vmatmul.bf16.gmra.mxu0 %v6431_v8  ;;  %4779 = vmatmul.bf16.gmra.mxu1 %v9213_v38 }
 0x698   :  { %v7823_v13 = vadd.f32 %v4735_v18, %v4567_v17 }
 0x699   :  { %v4230_v30 = vpop.f32.mrf.mxu2  ;;  %v4399_v35 = vpop.f32.mrf.mxu3 }
 0x69a   :  { %9214 = vst [vmem:[#allocation127_spill] sm:$0xff] %v7823_v13  ;;  %v4231_v32 = vadd.f32 %v4230_v30, %v9215_v58  ;;  %v9219_v30 = vld [vmem:[#allocation98_spill] sm:$0xff] }
 0x69b   :  { %v4742_v24 = vpop.f32.mrf.mxu1 }
 0x69c   :  { %v4400_v14 = vadd.f32 %v4399_v35, %v4231_v32  ;;  %v9221_v32 = vld [vmem:[#allocation118_spill] sm:$0xff] }
 0x69e   :  { %v4569_v53 = vadd.f32 %v7778_v55, %v4400_v14  ;;  %4272 = vmatmul.bf16.gmra.mxu2 %v9207_v11  ;;  %4441 = vmatmul.bf16.gmra.mxu3 %v9216_v29  ;;  %v4586_v11 = vpop.f32.mrf.mxu0 }
 0x6a0   :  { %v7829_v34 = vadd.f32 %v4737_v3, %v4569_v53 }
 0x6a1   :  { %v4233_v8 = vpop.f32.mrf.mxu2  ;;  %v4402_v49 = vpop.f32.mrf.mxu3 }
 0x6a2   :  { %9217 = vst [vmem:[#allocation16_spill] sm:$0xff] %v7829_v34  ;;  %v4234_v18 = vadd.f32 %v4233_v8, %v9218_v39  ;;  %v9222_v8 = vld [vmem:[#allocation38_spill] sm:$0xff] }
 0x6a3   :  { %v4745_v56 = vpop.f32.mrf.mxu1 }
 0x6a4   :  { %v4403_v17 = vadd.f32 %v4402_v49, %v4234_v18  ;;  %v9224_v18 = vld [vmem:[#allocation120_spill] sm:$0xff] }
 0x6a6   :  { %v4572_v13 = vadd.f32 %v7786_v19, %v4403_v17  ;;  %4784 = vmatmul.bf16.gmra.mxu1 %v9219_v30  ;;  %v4588_v17 = vpop.f32.mrf.mxu0 }
 0x6a8   :  { %v7834_v35 = vadd.f32 %v4740_v12, %v4572_v13 }
 0x6a9   :  { %v4235_v55 = vpop.f32.mrf.mxu2  ;;  %v4404_v58 = vpop.f32.mrf.mxu3 }
 0x6aa   :  { %9220 = vst [vmem:[#allocation129_spill] sm:$0xff] %v7834_v35  ;;  %v4236_v14 = vadd.f32 %v4235_v55, %v9221_v32  ;;  %v9227_v32 = vld [vmem:[#allocation41_spill] sm:$0xff] }
 0x6ab   :  { %v4747_v29 = vpop.f32.mrf.mxu1 }
 0x6ac   :  { %v4405_v3 = vadd.f32 %v4404_v58, %v4236_v14 }
 0x6ae   :  { %v4574_v53 = vadd.f32 %v7797_v41, %v4405_v3  ;;  %4277 = vmatmul.bf16.gmra.mxu2 %v9213_v38  ;;  %4446 = vmatmul.bf16.gmra.mxu3 %v9222_v8  ;;  %v9228_v8 = vld [vmem:[#allocation42_spill] sm:$0xff] }
 0x6b0   :  { %v7840_v49 = vadd.f32 %v4742_v24, %v4574_v53  ;;  %v4591_v24 = vpop.f32.mrf.mxu0 }
 0x6b1   :  { %v4238_v19 = vpop.f32.mrf.mxu2  ;;  %v4407_v39 = vpop.f32.mrf.mxu3 }
 0x6b2   :  { %9223 = vst [vmem:[#allocation84_spill] sm:$0xff] %v7840_v49  ;;  %v4239_v12 = vadd.f32 %v4238_v19, %v9224_v18 }
 0x6b3   :  { %v4750_v13 = vpop.f32.mrf.mxu1 }
 0x6b4   :  { %v4408_v35 = vadd.f32 %v4407_v39, %v4239_v12 }
 0x6b6   :  { %v4577_v34 = vadd.f32 %v4576_v5, %v4408_v35  ;;  %4789 = vmatmul.bf16.gmra.mxu1 %v9225_v4  ;;  %v9230_v35 = vld [vmem:[#allocation122_spill] sm:$0xff] }
 0x6b8   :  { %v7844_v55 = vadd.f32 %v4745_v56, %v4577_v34 }
 0x6b9   :  { %v4240_v58 = vpop.f32.mrf.mxu2  ;;  %v4409_v41 = vpop.f32.mrf.mxu3 }
 0x6ba   :  { %9226 = vst [vmem:[#allocation131_spill] sm:$0xff] %v7844_v55  ;;  %v4241_v38 = vadd.f32 %v4240_v58, %v9227_v32  ;;  %v9231_v55 = vld [vmem:[#allocation101_spill] sm:$0xff]  ;;  %v4593_v58 = vpop.f32.mrf.mxu0 }
 0x6bb   :  { %v4752_v14 = vpop.f32.mrf.mxu1 }
 0x6bc   :  { %v4410_v3 = vadd.f32 %v4409_v41, %v4241_v38  ;;  %v9233_v38 = vld [vmem:[#allocation124_spill] sm:$0xff] }
 0x6be   :  { %v4579_v53 = vadd.f32 %v4578_v46, %v4410_v3  ;;  %4282 = vmatmul.bf16.gmra.mxu2 %v9219_v30  ;;  %4451 = vmatmul.bf16.gmra.mxu3 %v9228_v8 }
 0x6c0   :  { %v7849_v19 = vadd.f32 %v4747_v29, %v4579_v53  ;;  %v9234_v53 = vld [vmem:[#allocation39_spill] sm:$0xff] }
 0x6c1   :  { %v4243_v39 = vpop.f32.mrf.mxu2  ;;  %v4412_v5 = vpop.f32.mrf.mxu3 }
 0x6c2   :  { %9229 = vst [vmem:[#allocation17_spill] sm:$0xff] %v7849_v19  ;;  %v4244_v18 = vadd.f32 %v4243_v39, %v9230_v35  ;;  %v4596_v35 = vpop.f32.mrf.mxu0  ;;  %v9237_v19 = vld [vmem:[#allocation111_spill] sm:$0xff] }
 0x6c3   :  { %v4755_v34 = vpop.f32.mrf.mxu1 }
 0x6c4   :  { %v4413_v56 = vadd.f32 %v4412_v5, %v4244_v18  ;;  %v9236_v18 = vld [vmem:[#allocation43_spill] sm:$0xff] }
 0x6c6   :  { %v4582_v12 = vadd.f32 %v4581_v37, %v4413_v56  ;;  %4794 = vmatmul.bf16.gmra.mxu1 %v9231_v55 }
 0x6c8   :  { %v7853_v32 = vadd.f32 %v4750_v13, %v4582_v12 }
 0x6c9   :  { %v4245_v41 = vpop.f32.mrf.mxu2  ;;  %v4414_v46 = vpop.f32.mrf.mxu3 }
 0x6ca   :  { %9232 = vst [vmem:[#allocation133_spill] sm:$0xff] %v7853_v32  ;;  %v4246_v30 = vadd.f32 %v4245_v41, %v9233_v38  ;;  %v9239_v38 = vld [vmem:[#allocation126_spill] sm:$0xff] }
 0x6cb   :  { %v4757_v3 = vpop.f32.mrf.mxu1 }
 0x6cc   :  { %v4415_v8 = vadd.f32 %v4414_v46, %v4246_v30 }
 0x6ce   :  { %v4584_v29 = vadd.f32 %v4583_v26, %v4415_v8  ;;  %4287 = vmatmul.bf16.gmra.mxu2 %v9225_v4  ;;  %4456 = vmatmul.bf16.gmra.mxu3 %v9234_v53  ;;  %v4598_v8 = vpop.f32.mrf.mxu0  ;;  %v9240_v53 = vld [vmem:[#allocation40_spill] sm:$0xff] }
 0x6d0   :  { %v7858_v39 = vadd.f32 %v4752_v14, %v4584_v29 }
 0x6d1   :  { %v4248_v5 = vpop.f32.mrf.mxu2  ;;  %v4417_v37 = vpop.f32.mrf.mxu3 }
 0x6d2   :  { %9235 = vst [vmem:[#allocation135_spill] sm:$0xff] %v7858_v39  ;;  %v4249_v56 = vadd.f32 %v4248_v5, %v9236_v18  ;;  %v9242_v18 = vld [vmem:[#allocation128_spill] sm:$0xff] }
 0x6d3   :  { %v4760_v13 = vpop.f32.mrf.mxu1 }
 0x6d4   :  { %v4418_v12 = vadd.f32 %v4417_v37, %v4249_v56 }
 0x6d6   :  { %v4587_v32 = vadd.f32 %v4586_v11, %v4418_v12  ;;  %4799 = vmatmul.bf16.gmra.mxu1 %v9237_v19  ;;  %v4601_v12 = vpop.f32.mrf.mxu0 }
 0x6d8   :  { %v7862_v41 = vadd.f32 %v4755_v34, %v4587_v32 }
 0x6d9   :  { %v4250_v46 = vpop.f32.mrf.mxu2  ;;  %v4419_v26 = vpop.f32.mrf.mxu3 }
 0x6da   :  { %9238 = vst [vmem:[#allocation18_spill] sm:$0xff] %v7862_v41  ;;  %v4251_v4 = vadd.f32 %v4250_v46, %v9239_v38  ;;  %v9244_v38 = vld [vmem:[#allocation44_spill] sm:$0xff] }
 0x6db   :  { %v4762_v30 = vpop.f32.mrf.mxu1 }
 0x6dc   :  { %v4420_v14 = vadd.f32 %v4419_v26, %v4251_v4 }
 0x6de   :  { %v4589_v29 = vadd.f32 %v4588_v17, %v4420_v14  ;;  %4292 = vmatmul.bf16.gmra.mxu2 %v9231_v55  ;;  %4461 = vmatmul.bf16.gmra.mxu3 %v9240_v53 }
 0x6e0   :  { %v7867_v5 = vadd.f32 %v4757_v3, %v4589_v29  ;;  %v4603_v29 = vpop.f32.mrf.mxu0 }
 0x6e1   :  { %v4253_v37 = vpop.f32.mrf.mxu2  ;;  %v4422_v11 = vpop.f32.mrf.mxu3 }
 0x6e2   :  { %9241 = vst [vmem:[#allocation138_spill] sm:$0xff] %v7867_v5  ;;  %v4254_v56 = vadd.f32 %v4253_v37, %v9242_v18 }
 0x6e3   :  { %v4765_v34 = vpop.f32.mrf.mxu1 }
 0x6e4   :  { %v4423_v32 = vadd.f32 %v4422_v11, %v4254_v56  ;;  %v9245_v11 = vld [vmem:[#allocation130_spill] sm:$0xff] }
 0x6e6   :  { %v4592_v41 = vadd.f32 %v4591_v24, %v4423_v32  ;;  %4804 = vmatmul.bf16.gmra.mxu1 %v6622_v36 }
 0x6e8   :  { %v7871_v46 = vadd.f32 %v4760_v13, %v4592_v41  ;;  %v4810_v13 = vadd.f32 %v7577_v51, %v7569_v50 }
 0x6e9   :  { %v4255_v26 = vpop.f32.mrf.mxu2  ;;  %v4424_v17 = vpop.f32.mrf.mxu3 }
 0x6ea   :  { %9243 = vst [vmem:[#allocation140_spill] sm:$0xff] %v7871_v46  ;;  %v4256_v55 = vadd.f32 %v4255_v26, %v9244_v38  ;;  %v4811_v56 = vadd.f32 %v4810_v13, %v7585_v54 }
 0x6eb   :  { %v4767_v4 = vpop.f32.mrf.mxu1 }
 0x6ec   :  { %v4425_v14 = vadd.f32 %v4424_v17, %v4256_v55  ;;  %v4606_v17 = vpop.f32.mrf.mxu0 }
 0x6ee   :  { %v4594_v3 = vadd.f32 %v4593_v58, %v4425_v14  ;;  %4297 = vmatmul.bf16.gmra.mxu2 %v9237_v19  ;;  %4466 = vmatmul.bf16.gmra.mxu3 %v9148_v57  ;;  %v4812_v58 = vadd.f32 %v4811_v56, %v7593_v40 }
 0x6f0   :  { %v7876_v53 = vadd.f32 %v4762_v30, %v4594_v3  ;;  %v4813_v57 = vadd.f32 %v4812_v58, %v7601_v0 }
 0x6f1   :  { %v4258_v37 = vpop.f32.mrf.mxu2  ;;  %v4427_v24 = vpop.f32.mrf.mxu3 }
 0x6f2   :  { %v4259_v36 = vadd.f32 %v4258_v37, %v9245_v11  ;;  %v4814_v55 = vadd.f32 %v4813_v57, %v7607_v48 }
 0x6f3   :  { %v4770_v41 = vpop.f32.mrf.mxu1 }
 0x6f4   :  { %v4428_v18 = vadd.f32 %v4427_v24, %v4259_v36  ;;  %v4815_v37 = vadd.f32 %v4814_v55, %v7615_v42  ;;  %v4608_v58 = vpop.f32.mrf.mxu0 }
 0x6f6   :  { %v4597_v32 = vadd.f32 %v4596_v35, %v4428_v18  ;;  %v4816_v35 = vadd.f32 %v4815_v37, %v7623_v27  ;;  %v9247_v18 = vld [vmem:[#allocation132_spill] sm:$0xff] }
 0x6f8   :  { %v7883_v19 = vadd.f32 %v4765_v34, %v4597_v32  ;;  %v4817_v34 = vadd.f32 %v4816_v35, %v7631_v61 }
 0x6f9   :  { %v4260_v30 = vpop.f32.mrf.mxu2  ;;  %v4429_v26 = vpop.f32.mrf.mxu3 }
 0x6fa   :  { %9246 = vst [vmem:[#allocation19_spill] sm:$0xff] %v7883_v19  ;;  %v4261_v38 = vadd.f32 %v4260_v30, %v7433_v9  ;;  %v4818_v32 = vadd.f32 %v4817_v34, %v7639_v62 }
 0x6fb   :  { %v4772_v14 = vpop.f32.mrf.mxu1 }
 0x6fc   :  { %v4430_v3 = vadd.f32 %v4429_v26, %v4261_v38  ;;  %v4819_v30 = vadd.f32 %v4818_v32, %v7647_v33 }
 0x6fe   :  { %v4599_v24 = vadd.f32 %v4598_v8, %v4430_v3  ;;  %v4820_v8 = vadd.f32 %v4819_v30, %v7653_v21  ;;  %v9248_v30 = vld [vmem:[#allocation48_spill] sm:$0xff] }
 0x700   :  { %v7890_v11 = vadd.f32 %v4767_v4, %v4599_v24  ;;  %v4821_v4 = vadd.f32 %v4820_v8, %v7661_v45 }
 0x701   :  { %v4263_v36 = vpop.f32.mrf.mxu2  ;;  %v4432_v13 = vpop.f32.mrf.mxu3 }
 0x702   :  { %v4264_v56 = vadd.f32 %v4263_v36, %v9247_v18  ;;  %v4822_v24 = vadd.f32 %v4821_v4, %v7669_v52 }
 0x703   :  { %v4775_v9 = vpop.f32.mrf.mxu1 }
 0x704   :  { %v4433_v57 = vadd.f32 %v4432_v13, %v4264_v56  ;;  %v4823_v36 = vadd.f32 %v4822_v24, %v7677_v22  ;;  %v4611_v13 = vpop.f32.mrf.mxu0 }
 0x706   :  { %v4602_v26 = vadd.f32 %v4601_v12, %v4433_v57  ;;  %v4824_v12 = vadd.f32 %v4823_v36, %v7685_v47 }
 0x708   :  { %v7897_v38 = vadd.f32 %v4770_v41, %v4602_v26  ;;  %v4825_v41 = vadd.f32 %v4824_v12, %v7691_v25 }
 0x709   :  { %v4265_v55 = vpop.f32.mrf.mxu2  ;;  %v4434_v3 = vpop.f32.mrf.mxu3 }
 0x70a   :  { %v4266_v37 = vadd.f32 %v4265_v55, %v7449_v44  ;;  %v4826_v44 = vadd.f32 %v4825_v41, %v7699_v23 }
 0x70b   :  { %v4777_v35 = vpop.f32.mrf.mxu1 }
 0x70c   :  { %v4435_v34 = vadd.f32 %v4434_v3, %v4266_v37  ;;  %v4827_v55 = vadd.f32 %v4826_v44, %v7707_v63  ;;  %v9263_v63 = vld [vmem:[#allocation103_spill] sm:$0xff] }
 0x70e   :  { %v4604_v18 = vadd.f32 %v4603_v29, %v4435_v34  ;;  %v4828_v37 = vadd.f32 %v4827_v55, %v7715_v15  ;;  %v7911_v29 = vpop.f32.mrf.mxu0 }
 0x710   :  { %v7904_v56 = vadd.f32 %v4772_v14, %v4604_v18  ;;  %v4829_v14 = vadd.f32 %v4828_v37, %v7723_v43 }
 0x711   :  { %v4268_v32 = vpop.f32.mrf.mxu2  ;;  %v4437_v57 = vpop.f32.mrf.mxu3 }
 0x712   :  { %v4269_v26 = vadd.f32 %v4268_v32, %v9248_v30  ;;  %v4830_v12 = vadd.f32 %v4829_v14, %v7729_v60 }
 0x713   :  { %v4780_v8 = vpop.f32.mrf.mxu1 }
 0x714   :  { %v4438_v4 = vadd.f32 %v4437_v57, %v4269_v26  ;;  %v4831_v57 = vadd.f32 %v4830_v12, %v7737_v10  ;;  %v9258_v10 = vld [vmem:[#allocation133_spill] sm:$0xff] }
 0x716   :  { %v4607_v3 = vadd.f32 %v4606_v17, %v4438_v4  ;;  %v4832_v30 = vadd.f32 %v4831_v57, %v7745_v31  ;;  %v4616_v55 = vpop.f32.mrf.mxu0  ;;  %v9256_v31 = vld [vmem:[#allocation131_spill] sm:$0xff] }
 0x718   :  { %v7913_v24 = vadd.f32 %v4775_v9, %v4607_v3  ;;  %v4833_v9 = vadd.f32 %v4832_v30, %v7753_v6  ;;  %v9249_v3 = vld [vmem:[#allocation134_spill] sm:$0xff] }
 0x719   :  { %v4270_v34 = vpop.f32.mrf.mxu2  ;;  %v4439_v36 = vpop.f32.mrf.mxu3 }
 0x71a   :  { %v4271_v18 = vadd.f32 %v4270_v34, %v7465_v2  ;;  %v4834_v2 = vadd.f32 %v4833_v9, %v7761_v20 }
 0x71b   :  { %v7918_v41 = vpop.f32.mrf.mxu1 }
 0x71c   :  { %v4440_v32 = vadd.f32 %v4439_v36, %v4271_v18  ;;  %v4835_v36 = vadd.f32 %v4834_v2, %v7767_v59 }
 0x71e   :  { %v4609_v17 = vadd.f32 %v4608_v58, %v4440_v32  ;;  %v4836_v58 = vadd.f32 %v4835_v36, %v7775_v1  ;;  %v4618_v30 = vpop.f32.mrf.mxu0  ;;  %v9252_v36 = vld [vmem:[#allocation78_spill] sm:$0xff] }
 0x720   :  { %v7922_v26 = vadd.f32 %v4777_v35, %v4609_v17  ;;  %v4837_v35 = vadd.f32 %v4836_v58, %v7783_v16  ;;  %v9254_v16 = vld [vmem:[#allocation16_spill] sm:$0xff] }
 0x721   :  { %v4273_v44 = vpop.f32.mrf.mxu2  ;;  %v4442_v4 = vpop.f32.mrf.mxu3 }
 0x722   :  { %v4274_v37 = vadd.f32 %v4273_v44, %v9249_v3  ;;  %v4838_v17 = vadd.f32 %v4837_v35, %v7791_v7  ;;  %v9250_v44 = vld [vmem:[#allocation123_spill] sm:$0xff]  ;;  %v9255_v35 = vld [vmem:[#allocation129_spill] sm:$0xff] }
 0x723   :  { %v7927_v34 = vpop.f32.mrf.mxu1 }
 0x724   :  { %v4443_v14 = vadd.f32 %v4442_v4, %v4274_v37  ;;  %v4839_v3 = vadd.f32 %v4838_v17, %v9250_v44  ;;  %v9251_v4 = vld [vmem:[#allocation15_spill] sm:$0xff] }
 0x726   :  { %v4612_v18 = vadd.f32 %v4611_v13, %v4443_v14  ;;  %v4840_v37 = vadd.f32 %v4839_v3, %v9251_v4  ;;  %v4621_v58 = vpop.f32.mrf.mxu0  ;;  %v9257_v4 = vld [vmem:[#allocation17_spill] sm:$0xff] }
 0x728   :  { %v7931_v12 = vadd.f32 %v4780_v8, %v4612_v18  ;;  %v4841_v2 = vadd.f32 %v4840_v37, %v7811_v28  ;;  %v9253_v18 = vld [vmem:[#allocation127_spill] sm:$0xff] }
 0x729   :  { %v4275_v32 = vpop.f32.mrf.mxu2  ;;  %v4444_v57 = vpop.f32.mrf.mxu3 }
 0x72a   :  { %v4842_v8 = vadd.f32 %v4841_v2, %v9252_v36 }
 0x72b   :  { %v7936_v9 = vpop.f32.mrf.mxu1 }
 0x72c   :  { %v4843_v1 = vadd.f32 %v4842_v8, %v9253_v18 }
 0x72e   :  { %v4844_v59 = vadd.f32 %v4843_v1, %v9254_v16  ;;  %v4623_v28 = vpop.f32.mrf.mxu0  ;;  %v9259_v1 = vld [vmem:[#allocation18_spill] sm:$0xff] }
 0x730   :  { %v4845_v7 = vadd.f32 %v4844_v59, %v9255_v35 }
 0x731   :  { %v4278_v13 = vpop.f32.mrf.mxu2  ;;  %v4447_v14 = vpop.f32.mrf.mxu3 }
 0x732   :  { %v4846_v44 = vadd.f32 %v4845_v7, %v7840_v49 }
 0x733   :  { %v4790_v20 = vpop.f32.mrf.mxu1 }
 0x734   :  { %v4847_v3 = vadd.f32 %v4846_v44, %v9256_v31 }
 0x736   :  { %v4848_v37 = vadd.f32 %v4847_v3, %v9257_v4  ;;  %v4626_v49 = vpop.f32.mrf.mxu0  ;;  %v9260_v3 = vld [vmem:[#allocation137_spill] sm:$0xff] }
 0x737   :  { %v4276_v4 = vadd.f32 %v4275_v32, %v9260_v3 }
 0x738   :  { %v4849_v60 = vadd.f32 %v4848_v37, %v9258_v10  ;;  %v9261_v10 = vld [vmem:[#allocation45_spill] sm:$0xff] }
 0x739   :  { %v4280_v6 = vpop.f32.mrf.mxu2  ;;  %v4449_v17 = vpop.f32.mrf.mxu3  ;;  %v4279_v15 = vadd.f32 %v4278_v13, %v9261_v10 }
 0x73a   :  { %v4850_v18 = vadd.f32 %v4849_v60, %v7858_v39  ;;  %v4445_v39 = vadd.f32 %v4444_v57, %v4276_v4 }
 0x73b   :  { %v4792_v8 = vpop.f32.mrf.mxu1 }
 0x73c   :  { %v4851_v16 = vadd.f32 %v4850_v18, %v9259_v1  ;;  %v9262_v18 = vld [vmem:[#allocation139_spill] sm:$0xff]  ;;  %v4614_v3 = vadd.f32 %v7911_v29, %v4445_v39 }
 0x73d   :  { %v4281_v1 = vadd.f32 %v4280_v6, %v9262_v18 }
 0x73e   :  { %v4852_v59 = vadd.f32 %v4851_v16, %v7867_v5  ;;  %v4448_v5 = vadd.f32 %v4447_v14, %v4279_v15  ;;  %v4628_v32 = vpop.f32.mrf.mxu0  ;;  %v7967_v15 = vadd.f32 %v7918_v41, %v4614_v3 }
 0x740   :  { %v4853_v35 = vadd.f32 %v4852_v59, %v7871_v46  ;;  %v4617_v57 = vadd.f32 %v4616_v55, %v4448_v5 }
 0x741   :  { %v4283_v2 = vpop.f32.mrf.mxu2  ;;  %v4452_v36 = vpop.f32.mrf.mxu3 }
 0x742   :  { %v4854_v44 = vadd.f32 %v4853_v35, %v7876_v53  ;;  %v4284_v23 = vadd.f32 %v4283_v2, %v9263_v63 }
 0x743   :  { %v4795_v31 = vpop.f32.mrf.mxu1 }
 0x744   :  { %v4855_v37 = vadd.f32 %v4854_v44, %v7883_v19  ;;  %v4450_v44 = vadd.f32 %v4449_v17, %v4281_v1  ;;  %v9264_v19 = vld [vmem:[#allocation46_spill] sm:$0xff]  ;;  %v4453_v4 = vadd.f32 %v4452_v36, %v4284_v23  ;;  %v9266_v23 = vld [vmem:[#allocation105_spill] sm:$0xff] }
 0x746   :  { %v4856_v60 = vadd.f32 %v4855_v37, %v7890_v11  ;;  %v9265_v37 = vld [vmem:[#allocation74_spill] sm:$0xff]  ;;  %v4619_v63 = vadd.f32 %v4618_v30, %v4450_v44  ;;  %v4631_v30 = vpop.f32.mrf.mxu0 }
 0x748   :  { %v4857_v16 = vadd.f32 %v4856_v60, %v7897_v38  ;;  %v7976_v17 = vadd.f32 %v7936_v9, %v4619_v63 }
 0x749   :  { %v4285_v43 = vpop.f32.mrf.mxu2  ;;  %v4454_v7 = vpop.f32.mrf.mxu3 }
 0x74a   :  { %v4858_v35 = vadd.f32 %v4857_v16, %v7904_v56  ;;  %v4286_v10 = vadd.f32 %v4285_v43, %v9264_v19  ;;  %v7971_v43 = vadd.f32 %v7927_v34, %v4617_v57  ;;  %v4622_v19 = vadd.f32 %v4621_v58, %v4453_v4 }
 0x74b   :  { %v4797_v6 = vpop.f32.mrf.mxu1 }
 0x74c   :  { %v4859_v13 = vadd.f32 %v4858_v35, %v7913_v24  ;;  %v4455_v14 = vadd.f32 %v4454_v7, %v4286_v10  ;;  %v7979_v16 = vadd.f32 %v4790_v20, %v4622_v19 }
 0x74e   :  { %v4860_v18 = vadd.f32 %v4859_v13, %v7922_v26  ;;  %v4624_v41 = vadd.f32 %v4623_v28, %v4455_v14  ;;  %v9267_v28 = vld [vmem:[#allocation71_spill] sm:$0xff] }
 0x750   :  { %v4861_v2 = vadd.f32 %v4860_v18, %v7931_v12  ;;  %v7982_v35 = vadd.f32 %v4792_v8, %v4624_v41 }
 0x751   :  { %v4288_v59 = vpop.f32.mrf.mxu2  ;;  %v4457_v46 = vpop.f32.mrf.mxu3 }
 0x752   :  { %v4289_v60 = vadd.f32 %v4288_v59, %v9265_v37  ;;  %v4862_v36 = vadd.f32 %v4861_v2, %v7967_v15  ;;  %v9268_v2 = vld [vmem:[#allocation72_spill] sm:$0xff] }
 0x754   :  { %v4458_v5 = vadd.f32 %v4457_v46, %v4289_v60  ;;  %v4863_v7 = vadd.f32 %v4862_v36, %v7971_v43  ;;  %v4800_v46 = vpop.f32.mrf.mxu1  ;;  %v4633_v60 = vpop.f32.mrf.mxu0 }
 0x756   :  { %v4627_v59 = vadd.f32 %v4626_v49, %v4458_v5  ;;  %v4864_v34 = vadd.f32 %v4863_v7, %v7976_v17 }
 0x758   :  { %v4865_v10 = vadd.f32 %v4864_v34, %v7979_v16  ;;  %v7985_v9 = vadd.f32 %v4795_v31, %v4627_v59 }
 0x759   :  { %v4290_v39 = vpop.f32.mrf.mxu2  ;;  %v4459_v29 = vpop.f32.mrf.mxu3 }
 0x75a   :  { %v4291_v55 = vadd.f32 %v4290_v39, %v9266_v23  ;;  %v4866_v57 = vadd.f32 %v4865_v10, %v7982_v35 }
 0x75c   :  { %v4460_v1 = vadd.f32 %v4459_v29, %v4291_v55  ;;  %v4867_v49 = vadd.f32 %v4866_v57, %v7985_v9  ;;  %v4802_v29 = vpop.f32.mrf.mxu1 }
 0x75e   :  { %v4629_v58 = vadd.f32 %v4628_v32, %v4460_v1  ;;  %v4636_v1 = vpop.f32.mrf.mxu0 }
 0x760   :  { %v4798_v4 = vadd.f32 %v4797_v6, %v4629_v58  ;;  %v9269_v6 = vld [vmem:[#allocation108_spill] sm:$0xff] }
 0x761   :  { %v4293_v3 = vpop.f32.mrf.mxu2  ;;  %v4462_v44 = vpop.f32.mrf.mxu3 }
 0x762   :  { %v4294_v13 = vadd.f32 %v4293_v3, %v9267_v28  ;;  %v4868_v8 = vadd.f32 %v4867_v49, %v4798_v4  ;;  %v9270_v3 = vld [vmem:[#allocation47_spill] sm:$0xff] }
 0x764   :  { %v4463_v20 = vadd.f32 %v4462_v44, %v4294_v13 }
 0x766   :  { %v4632_v37 = vadd.f32 %v4631_v30, %v4463_v20  ;;  %v4805_v30 = vpop.f32.mrf.mxu1  ;;  %v4638_v13 = vpop.f32.mrf.mxu0 }
 0x768   :  { %v4801_v18 = vadd.f32 %v4800_v46, %v4632_v37 }
 0x769   :  { %v4295_v63 = vpop.f32.mrf.mxu2  ;;  %v4464_v32 = vpop.f32.mrf.mxu3 }
 0x76a   :  { %v4869_v14 = vadd.f32 %v4868_v8, %v4801_v18  ;;  %v4296_v39 = vadd.f32 %v4295_v63, %v9268_v2 }
 0x76c   :  { %v4465_v31 = vadd.f32 %v4464_v32, %v4296_v39 }
 0x76e   :  { %v4634_v19 = vadd.f32 %v4633_v60, %v4465_v31  ;;  %v4807_v20 = vpop.f32.mrf.mxu1 }
 0x770   :  { %v4803_v5 = vadd.f32 %v4802_v29, %v4634_v19 }
 0x771   :  { %v4298_v23 = vpop.f32.mrf.mxu2  ;;  %v4467_v55 = vpop.f32.mrf.mxu3 }
 0x772   :  { %v4870_v36 = vadd.f32 %v4869_v14, %v4803_v5  ;;  %v4299_v41 = vadd.f32 %v4298_v23, %v9269_v6 }
 0x774   :  { %v4468_v7 = vadd.f32 %v4467_v55, %v4299_v41 }
 0x776   :  { %v4637_v59 = vadd.f32 %v4636_v1, %v4468_v7 }
 0x778   :  { %v4806_v34 = vadd.f32 %v4805_v30, %v4637_v59 }
 0x779   :  { %v4300_v46 = vpop.f32.mrf.mxu2  ;;  %v4469_v10 = vpop.f32.mrf.mxu3 }
 0x77a   :  { %v4871_v58 = vadd.f32 %v4870_v36, %v4806_v34  ;;  %v4301_v44 = vadd.f32 %v4300_v46, %v9270_v3 }
 0x77c   :  { %v4470_v28 = vadd.f32 %v4469_v10, %v4301_v44 }
 0x77e   :  { %v4639_v57 = vadd.f32 %v4638_v13, %v4470_v28 }
 0x780   :  { %v4808_v49 = vadd.f32 %v4807_v20, %v4639_v57 }
 0x782   :  { %v4872_v37 = vadd.f32 %v4871_v58, %v4808_v49 }
 0x784   :  { %v4873_v60 = vrot.slane %v4872_v37, 4 }
 0x786   :  { %v4874_v8 = vadd.f32 %v4873_v60, %v4872_v37 }
 0x788   :  { %v4875_v63 = vrot.slane %v4874_v8, 2 }
 0x78a   :  { %v4876_v32 = vadd.f32 %v4875_v63, %v4874_v8 }
 0x78c   :  { %v4877_v14 = vrot.slane %v4876_v32, 1 }
 0x78e   :  { %v4878_v2 = vadd.f32 %v4877_v14, %v4876_v32 }
 0x790   :  { %v7993_v39 = vmul.f32 0.001953125, %v4878_v2 }
 0x792   :  { %v7996_v29 = vsub.f32 %v4798_v4, %v7993_v39  ;;  %v7999_v31 = vsub.f32 %v4801_v18, %v7993_v39  ;;  %v8002_v19 = vsub.f32 %v4803_v5, %v7993_v39  ;;  %v8005_v23 = vsub.f32 %v4806_v34, %v7993_v39 }
 0x793   :  { %v8008_v55 = vsub.f32 %v4808_v49, %v7993_v39  ;;  %v8012_v36 = vsub.f32 %v7569_v50, %v7993_v39  ;;  %v8016_v4 = vsub.f32 %v7577_v51, %v7993_v39  ;;  %v8020_v18 = vsub.f32 %v7585_v54, %v7993_v39 }
 0x794   :  { %v8028_v41 = vsub.f32 %v7593_v40, %v7993_v39  ;;  %v8032_v50 = vsub.f32 %v7601_v0, %v7993_v39  ;;  %v8038_v54 = vsub.f32 %v7607_v48, %v7993_v39  ;;  %v8044_v40 = vsub.f32 %v7615_v42, %v7993_v39 }
 0x795   :  { %v4944_v5 = vmul.f32 %v8012_v36, %v8012_v36  ;;  %v4945_v6 = vmul.f32 %v8016_v4, %v8016_v4  ;;  %v4946_v51 = vmul.f32 %v8020_v18, %v8020_v18  ;;  %v8050_v34 = vsub.f32 %v7623_v27, %v7993_v39 }
 0x796   :  { %v4947_v7 = vmul.f32 %v8028_v41, %v8028_v41  ;;  %v4948_v0 = vmul.f32 %v8032_v50, %v8032_v50  ;;  %v4949_v48 = vmul.f32 %v8038_v54, %v8038_v54  ;;  %v8056_v58 = vsub.f32 %v7631_v61, %v7993_v39 }
 0x797   :  { %v5008_v1 = vadd.f32 %v4945_v6, %v4944_v5  ;;  %v4950_v42 = vmul.f32 %v8044_v40, %v8044_v40  ;;  %v8062_v44 = vsub.f32 %v7639_v62, %v7993_v39  ;;  %v4951_v27 = vmul.f32 %v8050_v34, %v8050_v34 }
 0x798   :  { %v8068_v28 = vsub.f32 %v7647_v33, %v7993_v39  ;;  %v4952_v61 = vmul.f32 %v8056_v58, %v8056_v58  ;;  %v8074_v57 = vsub.f32 %v7653_v21, %v7993_v39  ;;  %v8080_v49 = vsub.f32 %v7661_v45, %v7993_v39 }
 0x799   :  { %v5009_v30 = vadd.f32 %v5008_v1, %v4946_v51  ;;  %v4953_v62 = vmul.f32 %v8062_v44, %v8062_v44  ;;  %v8086_v60 = vsub.f32 %v7669_v52, %v7993_v39  ;;  %v8092_v63 = vsub.f32 %v7677_v22, %v7993_v39  ;;  %v9271_v51 = vld [vmem:[#allocation75_spill] sm:$0xff] }
 0x79a   :  { %v4954_v33 = vmul.f32 %v8068_v28, %v8068_v28  ;;  %v4955_v21 = vmul.f32 %v8074_v57, %v8074_v57  ;;  %v4956_v45 = vmul.f32 %v8080_v49, %v8080_v49  ;;  %v8098_v14 = vsub.f32 %v7685_v47, %v7993_v39 }
 0x79b   :  { %v5010_v59 = vadd.f32 %v5009_v30, %v4947_v7  ;;  %v4957_v52 = vmul.f32 %v8086_v60, %v8086_v60  ;;  %v8104_v5 = vsub.f32 %v7691_v25, %v7993_v39  ;;  %v4958_v22 = vmul.f32 %v8092_v63, %v8092_v63  ;;  %v9272_v30 = vld [vmem:[#allocation110_spill] sm:$0xff] }
 0x79c   :  { %v8110_v1 = vsub.f32 %v9271_v51, %v7993_v39  ;;  %v4959_v47 = vmul.f32 %v8098_v14, %v8098_v14  ;;  %v9278_v51 = vld [vmem:[#allocation117_spill] sm:$0xff] }
 0x79d   :  { %v5011_v46 = vadd.f32 %v5010_v59, %v4948_v0  ;;  %v8116_v0 = vsub.f32 %v9272_v30, %v7993_v39  ;;  %v4960_v25 = vmul.f32 %v8104_v5, %v8104_v5 }
 0x79f   :  { %v5012_v3 = vadd.f32 %v5011_v46, %v4949_v48  ;;  %v9273_v48 = vld [vmem:[#allocation12_spill] sm:$0xff] }
 0x7a0   :  { %v8122_v46 = vsub.f32 %v9273_v48, %v7993_v39 }
 0x7a1   :  { %v5013_v10 = vadd.f32 %v5012_v3, %v4950_v42  ;;  %v4961_v42 = vmul.f32 %v8110_v1, %v8110_v1 }
 0x7a3   :  { %v5014_v13 = vadd.f32 %v5013_v10, %v4951_v27  ;;  %v9274_v27 = vld [vmem:[#allocation113_spill] sm:$0xff] }
 0x7a4   :  { %v8128_v10 = vsub.f32 %v9274_v27, %v7993_v39 }
 0x7a5   :  { %v5015_v20 = vadd.f32 %v5014_v13, %v4952_v61  ;;  %v4962_v61 = vmul.f32 %v8116_v0, %v8116_v0 }
 0x7a7   :  { %v5016_v37 = vadd.f32 %v5015_v20, %v4953_v62  ;;  %v9275_v62 = vld [vmem:[#allocation80_spill] sm:$0xff] }
 0x7a8   :  { %v8134_v20 = vsub.f32 %v9275_v62, %v7993_v39  ;;  %v9281_v62 = vld [vmem:[#allocation13_spill] sm:$0xff] }
 0x7a9   :  { %v5017_v8 = vadd.f32 %v5016_v37, %v4954_v33  ;;  %v4963_v33 = vmul.f32 %v8122_v46, %v8122_v46 }
 0x7ab   :  { %v5018_v32 = vadd.f32 %v5017_v8, %v4955_v21  ;;  %v9276_v21 = vld [vmem:[#allocation115_spill] sm:$0xff] }
 0x7ac   :  { %v8140_v8 = vsub.f32 %v9276_v21, %v7993_v39 }
 0x7ad   :  { %v5019_v2 = vadd.f32 %v5018_v32, %v4956_v45  ;;  %v4964_v45 = vmul.f32 %v8128_v10, %v8128_v10 }
 0x7af   :  { %v5020_v6 = vadd.f32 %v5019_v2, %v4957_v52  ;;  %v9277_v52 = vld [vmem:[#allocation14_spill] sm:$0xff] }
 0x7b0   :  { %v8146_v2 = vsub.f32 %v9277_v52, %v7993_v39 }
 0x7b1   :  { %v5021_v7 = vadd.f32 %v5020_v6, %v4958_v22  ;;  %v4965_v22 = vmul.f32 %v8134_v20, %v8134_v20 }
 0x7b2   :  { %v4967_v48 = vmul.f32 %v8146_v2, %v8146_v2 }
 0x7b3   :  { %v5022_v59 = vadd.f32 %v5021_v7, %v4959_v47  ;;  %v8152_v47 = vsub.f32 %v9278_v51, %v7993_v39  ;;  %v4966_v7 = vmul.f32 %v8140_v8, %v8140_v8 }
 0x7b5   :  { %v5023_v3 = vadd.f32 %v5022_v59, %v4960_v25  ;;  %v9279_v25 = vld [vmem:[#allocation76_spill] sm:$0xff] }
 0x7b6   :  { %v8158_v59 = vsub.f32 %v9279_v25, %v7993_v39  ;;  %v9285_v25 = vld [vmem:[#allocation123_spill] sm:$0xff] }
 0x7b7   :  { %v5024_v13 = vadd.f32 %v5023_v3, %v4961_v42  ;;  %v9280_v3 = vld [vmem:[#allocation119_spill] sm:$0xff] }
 0x7b8   :  { %v8164_v27 = vsub.f32 %v9280_v3, %v7993_v39 }
 0x7b9   :  { %v5025_v37 = vadd.f32 %v5024_v13, %v4962_v61  ;;  %v4968_v61 = vmul.f32 %v8152_v47, %v8152_v47 }
 0x7ba   :  { %v4970_v52 = vmul.f32 %v8164_v27, %v8164_v27 }
 0x7bb   :  { %v5026_v32 = vadd.f32 %v5025_v37, %v4963_v33  ;;  %v8170_v33 = vsub.f32 %v9281_v62, %v7993_v39  ;;  %v4969_v37 = vmul.f32 %v8158_v59, %v8158_v59 }
 0x7bd   :  { %v5027_v6 = vadd.f32 %v5026_v32, %v4964_v45  ;;  %v9282_v45 = vld [vmem:[#allocation121_spill] sm:$0xff] }
 0x7be   :  { %v8176_v32 = vsub.f32 %v9282_v45, %v7993_v39 }
 0x7bf   :  { %v5028_v30 = vadd.f32 %v5027_v6, %v4965_v22  ;;  %v9283_v6 = vld [vmem:[#allocation77_spill] sm:$0xff] }
 0x7c0   :  { %v8182_v51 = vsub.f32 %v9283_v6, %v7993_v39  ;;  %v9291_v6 = vld [vmem:[#allocation78_spill] sm:$0xff] }
 0x7c1   :  { %v5029_v42 = vadd.f32 %v5028_v30, %v4966_v7  ;;  %v4971_v7 = vmul.f32 %v8170_v33, %v8170_v33 }
 0x7c2   :  { %9284 = vst [vmem:[#allocation141_spill] sm:$0xff] %v8182_v51  ;;  %v4973_v62 = vmul.f32 %v8182_v51, %v8182_v51 }
 0x7c3   :  { %v5030_v13 = vadd.f32 %v5029_v42, %v4967_v48  ;;  %v8188_v48 = vsub.f32 %v9285_v25, %v7993_v39  ;;  %v4972_v42 = vmul.f32 %v8176_v32, %v8176_v32  ;;  %v8206_v25 = vsub.f32 %v9291_v6, %v7993_v39  ;;  %v9297_v6 = vld [vmem:[#allocation129_spill] sm:$0xff] }
 0x7c5   :  { %v5031_v21 = vadd.f32 %v5030_v13, %v4968_v61  ;;  %9286 = vst [vmem:[#allocation82_spill] sm:$0xff] %v8188_v48  ;;  %v9287_v61 = vld [vmem:[#allocation15_spill] sm:$0xff] }
 0x7c6   :  { %v8194_v13 = vsub.f32 %v9287_v61, %v7993_v39  ;;  %9292 = vst [vmem:[#allocation49_spill] sm:$0xff] %v8206_v25  ;;  %v9293_v61 = vld [vmem:[#allocation127_spill] sm:$0xff] }
 0x7c7   :  { %v5032_v22 = vadd.f32 %v5031_v21, %v4969_v37  ;;  %v9289_v21 = vld [vmem:[#allocation125_spill] sm:$0xff]  ;;  %v8212_v51 = vsub.f32 %v9293_v61, %v7993_v39  ;;  %v9299_v61 = vld [vmem:[#allocation84_spill] sm:$0xff] }
 0x7c8   :  { %9288 = vst [vmem:[#allocation79_spill] sm:$0xff] %v8194_v13  ;;  %v8200_v45 = vsub.f32 %v9289_v21, %v7993_v39  ;;  %v9295_v21 = vld [vmem:[#allocation16_spill] sm:$0xff] }
 0x7c9   :  { %v5033_v30 = vadd.f32 %v5032_v22, %v4970_v52  ;;  %v4974_v52 = vmul.f32 %v8188_v48, %v8188_v48  ;;  %9294 = vst [vmem:[#allocation81_spill] sm:$0xff] %v8212_v51  ;;  %v8218_v48 = vsub.f32 %v9295_v21, %v7993_v39  ;;  %v9301_v21 = vld [vmem:[#allocation131_spill] sm:$0xff] }
 0x7ca   :  { %9290 = vst [vmem:[#allocation20_spill] sm:$0xff] %v8200_v45 }
 0x7cb   :  { %v5034_v3 = vadd.f32 %v5033_v30, %v4971_v7  ;;  %v4975_v7 = vmul.f32 %v8194_v13, %v8194_v13  ;;  %9296 = vst [vmem:[#allocation21_spill] sm:$0xff] %v8218_v48  ;;  %v8224_v13 = vsub.f32 %v9297_v6, %v7993_v39  ;;  %v9303_v6 = vld [vmem:[#allocation17_spill] sm:$0xff] }
 0x7cd   :  { %v5035_v37 = vadd.f32 %v5034_v3, %v4972_v42  ;;  %v4976_v42 = vmul.f32 %v8200_v45, %v8200_v45  ;;  %9298 = vst [vmem:[#allocation25_spill] sm:$0xff] %v8224_v13  ;;  %v8230_v45 = vsub.f32 %v9299_v61, %v7993_v39  ;;  %v9305_v61 = vld [vmem:[#allocation133_spill] sm:$0xff] }
 0x7cf   :  { %v5036_v22 = vadd.f32 %v5035_v37, %v4973_v62  ;;  %v4977_v62 = vmul.f32 %v8206_v25, %v8206_v25  ;;  %9300 = vst [vmem:[#allocation23_spill] sm:$0xff] %v8230_v45  ;;  %v8236_v25 = vsub.f32 %v9301_v21, %v7993_v39  ;;  %v9307_v21 = vld [vmem:[#allocation135_spill] sm:$0xff] }
 0x7d1   :  { %v5037_v30 = vadd.f32 %v5036_v22, %v4974_v52  ;;  %v4978_v52 = vmul.f32 %v8212_v51, %v8212_v51  ;;  %9302 = vst [vmem:[#allocation50_spill] sm:$0xff] %v8236_v25  ;;  %v8242_v51 = vsub.f32 %v9303_v6, %v7993_v39  ;;  %v9309_v6 = vld [vmem:[#allocation18_spill] sm:$0xff] }
 0x7d3   :  { %v5038_v3 = vadd.f32 %v5037_v30, %v4975_v7  ;;  %v4979_v7 = vmul.f32 %v8218_v48, %v8218_v48  ;;  %9304 = vst [vmem:[#allocation22_spill] sm:$0xff] %v8242_v51  ;;  %v8248_v48 = vsub.f32 %v9305_v61, %v7993_v39  ;;  %v9311_v61 = vld [vmem:[#allocation138_spill] sm:$0xff] }
 0x7d5   :  { %v5039_v37 = vadd.f32 %v5038_v3, %v4976_v42  ;;  %v4980_v42 = vmul.f32 %v8224_v13, %v8224_v13  ;;  %9306 = vst [vmem:[#allocation55_spill] sm:$0xff] %v8248_v48  ;;  %v8254_v13 = vsub.f32 %v9307_v21, %v7993_v39  ;;  %v9313_v21 = vld [vmem:[#allocation140_spill] sm:$0xff] }
 0x7d7   :  { %v5040_v22 = vadd.f32 %v5039_v37, %v4977_v62  ;;  %v4981_v62 = vmul.f32 %v8230_v45, %v8230_v45  ;;  %9308 = vst [vmem:[#allocation24_spill] sm:$0xff] %v8254_v13  ;;  %v8260_v45 = vsub.f32 %v9309_v6, %v7993_v39  ;;  %v8278_v6 = vsub.f32 %v7876_v53, %v7993_v39 }
 0x7d9   :  { %v5041_v30 = vadd.f32 %v5040_v22, %v4978_v52  ;;  %v4982_v52 = vmul.f32 %v8236_v25, %v8236_v25  ;;  %9310 = vst [vmem:[#allocation91_spill] sm:$0xff] %v8260_v45  ;;  %v8266_v25 = vsub.f32 %v9311_v61, %v7993_v39  ;;  %v9316_v61 = vld [vmem:[#allocation19_spill] sm:$0xff]  ;;  %v4989_v53 = vmul.f32 %v8278_v6, %v8278_v6 }
 0x7da   :  { %9315 = vst [vmem:[#allocation83_spill] sm:$0xff] %v8278_v6 }
 0x7db   :  { %v5042_v3 = vadd.f32 %v5041_v30, %v4979_v7  ;;  %v4983_v7 = vmul.f32 %v8242_v51, %v8242_v51  ;;  %9312 = vst [vmem:[#allocation51_spill] sm:$0xff] %v8266_v25  ;;  %v8272_v51 = vsub.f32 %v9313_v21, %v7993_v39  ;;  %v8290_v21 = vsub.f32 %v7890_v11, %v7993_v39 }
 0x7dd   :  { %v5043_v37 = vadd.f32 %v5042_v3, %v4980_v42  ;;  %v4984_v42 = vmul.f32 %v8248_v48, %v8248_v48  ;;  %9314 = vst [vmem:[#allocation26_spill] sm:$0xff] %v8272_v51  ;;  %v4991_v11 = vmul.f32 %v8290_v21, %v8290_v21 }
 0x7de   :  { %9318 = vst [vmem:[#allocation52_spill] sm:$0xff] %v8290_v21 }
 0x7df   :  { %v5044_v22 = vadd.f32 %v5043_v37, %v4981_v62  ;;  %v4985_v62 = vmul.f32 %v8254_v13, %v8254_v13  ;;  %v8284_v13 = vsub.f32 %v9316_v61, %v7993_v39  ;;  %v8302_v61 = vsub.f32 %v7904_v56, %v7993_v39 }
 0x7e1   :  { %v5045_v30 = vadd.f32 %v5044_v22, %v4982_v52  ;;  %v4986_v52 = vmul.f32 %v8260_v45, %v8260_v45  ;;  %9317 = vst [vmem:[#allocation63_spill] sm:$0xff] %v8284_v13  ;;  %v4993_v56 = vmul.f32 %v8302_v61, %v8302_v61 }
 0x7e3   :  { %v5046_v3 = vadd.f32 %v5045_v30, %v4983_v7  ;;  %v4987_v7 = vmul.f32 %v8266_v25, %v8266_v25 }
 0x7e5   :  { %v5047_v37 = vadd.f32 %v5046_v3, %v4984_v42  ;;  %v4988_v42 = vmul.f32 %v8272_v51, %v8272_v51 }
 0x7e7   :  { %v5048_v22 = vadd.f32 %v5047_v37, %v4985_v62  ;;  %v8296_v37 = vsub.f32 %v7897_v38, %v7993_v39 }
 0x7e9   :  { %v5049_v30 = vadd.f32 %v5048_v22, %v4986_v52  ;;  %9319 = vst [vmem:[#allocation27_spill] sm:$0xff] %v8296_v37  ;;  %v4990_v52 = vmul.f32 %v8284_v13, %v8284_v13  ;;  %v4992_v38 = vmul.f32 %v8296_v37, %v8296_v37  ;;  %v5003_v37 = vmul.f32 %v7996_v29, %v7996_v29 }
 0x7eb   :  { %v5050_v3 = vadd.f32 %v5049_v30, %v4987_v7  ;;  %v8308_v30 = vsub.f32 %v7913_v24, %v7993_v39 }
 0x7ed   :  { %v5051_v62 = vadd.f32 %v5050_v3, %v4988_v42  ;;  %v8314_v3 = vsub.f32 %v7922_v26, %v7993_v39  ;;  %v4994_v24 = vmul.f32 %v8308_v30, %v8308_v30 }
 0x7ef   :  { %v5052_v22 = vadd.f32 %v5051_v62, %v4989_v53  ;;  %v8320_v62 = vsub.f32 %v7931_v12, %v7993_v39  ;;  %v4995_v26 = vmul.f32 %v8314_v3, %v8314_v3 }
 0x7f1   :  { %v5053_v7 = vadd.f32 %v5052_v22, %v4990_v52  ;;  %v8326_v22 = vsub.f32 %v7967_v15, %v7993_v39  ;;  %v4996_v12 = vmul.f32 %v8320_v62, %v8320_v62 }
 0x7f3   :  { %v5054_v42 = vadd.f32 %v5053_v7, %v4991_v11  ;;  %v8332_v7 = vsub.f32 %v7971_v43, %v7993_v39  ;;  %v4997_v15 = vmul.f32 %v8326_v22, %v8326_v22 }
 0x7f5   :  { %v5055_v53 = vadd.f32 %v5054_v42, %v4992_v38  ;;  %v8338_v42 = vsub.f32 %v7976_v17, %v7993_v39  ;;  %v4998_v43 = vmul.f32 %v8332_v7, %v8332_v7 }
 0x7f7   :  { %v5056_v52 = vadd.f32 %v5055_v53, %v4993_v56  ;;  %v8344_v53 = vsub.f32 %v7979_v16, %v7993_v39  ;;  %v4999_v17 = vmul.f32 %v8338_v42, %v8338_v42 }
 0x7f9   :  { %v5057_v11 = vadd.f32 %v5056_v52, %v4994_v24  ;;  %v8350_v52 = vsub.f32 %v7982_v35, %v7993_v39  ;;  %v5000_v16 = vmul.f32 %v8344_v53, %v8344_v53 }
 0x7fb   :  { %v5058_v38 = vadd.f32 %v5057_v11, %v4995_v26  ;;  %v8356_v11 = vsub.f32 %v7985_v9, %v7993_v39  ;;  %v5004_v9 = vmul.f32 %v7999_v31, %v7999_v31 }
 0x7fd   :  { %v5059_v56 = vadd.f32 %v5058_v38, %v4996_v12  ;;  %v5001_v38 = vmul.f32 %v8350_v52, %v8350_v52  ;;  %v5002_v35 = vmul.f32 %v8356_v11, %v8356_v11 }
 0x7ff   :  { %v5060_v24 = vadd.f32 %v5059_v56, %v4997_v15 }
 0x801   :  { %v5061_v26 = vadd.f32 %v5060_v24, %v4998_v43  ;;  %v5005_v24 = vmul.f32 %v8002_v19, %v8002_v19 }
 0x803   :  { %v5062_v12 = vadd.f32 %v5061_v26, %v4999_v17  ;;  %v5006_v26 = vmul.f32 %v8005_v23, %v8005_v23 }
 0x805   :  { %v5063_v15 = vadd.f32 %v5062_v12, %v5000_v16  ;;  %v5007_v12 = vmul.f32 %v8008_v55, %v8008_v55 }
 0x807   :  { %v5064_v56 = vadd.f32 %v5063_v15, %v5001_v38 }
 0x809   :  { %v5065_v43 = vadd.f32 %v5064_v56, %v5002_v35 }
 0x80b   :  { %v5066_v39 = vadd.f32 %v5065_v43, %v5003_v37 }
 0x80d   :  { %v5067_v17 = vadd.f32 %v5066_v39, %v5004_v9 }
 0x80f   :  { %v5068_v16 = vadd.f32 %v5067_v17, %v5005_v24  ;;  %v5089_v17 = vld [vmem:[%s8628_s4] sm:$0x1]  ;;  %s5972_s4 = smov [#allocation8]  }
 0x811   :  { %v5069_v38 = vadd.f32 %v5068_v16, %v5006_v26 }
 0x813   :  { %v5070_v15 = vadd.f32 %v5069_v38, %v5007_v12 }
 0x815   :  { %v5071_v21 = vrot.slane %v5070_v15, 4 }
 0x817   :  { %v5072_v13 = vadd.f32 %v5071_v21, %v5070_v15 }
 0x819   :  { %v5073_v35 = vrot.slane %v5072_v13, 2 }
 0x81b   :  { %v5074_v56 = vadd.f32 %v5073_v35, %v5072_v13 }
 0x81d   :  { %v5075_v6 = vrot.slane %v5074_v56, 1 }
 0x81f   :  { %v5076_v51 = vadd.f32 %v5075_v6, %v5074_v56 }
 0x821   :  { %v5077_v37 = vmul.f32 0.001953125, %v5076_v51  ;;  %v8380_v51 = vld [vmem:[%s8629_s5] ss:$0 sm:$0xff]  ;;  %s5292_s5 = sshll.u32 %s5972_s4, 4  ;;  %s5293_s5 = int_to_ptr.vmem [resolvable:$true] %s5292_s5 }
 0x823   :  { %v5078_v43 = vadd.f32 1e-05, %v5077_v37 }
 0x825   :  { %5860 = vrsqrt.f32 %v5078_v43  ;;  %vm5085_vm3 = vweird.f32 %v5078_v43 }
 0x82b   :  { %v5861_v25 = vpop.eup %5860 }
 0x82c   :  { %v5080_v9 = vmul.f32 %v5861_v25, %v5078_v43  ;;  %vm5086_vm2 = vweird.f32 %v5861_v25 }
 0x82d   :  { %vm5087_vm4 = vmor %vm5085_vm3, %vm5086_vm2 }
 0x82e   :  { %v5081_v39 = vmul.f32 %v5861_v25, %v5080_v9 }
 0x830   :  { %v5082_v45 = vmul.f32 0.5, %v5081_v39 }
 0x832   :  { %v5083_v48 = vsub.f32 1.5, %v5082_v45 }
 0x834   :  { %v5084_v24 = vmul.f32 %v5861_v25, %v5083_v48 }
 0x836   :  { %v5088_v21 = vsel %vm5087_vm4, %v5861_v25, %v5084_v24 }
 0x837   :  { %v5090_v13 = vmul.f32 %v5089_v17, %v5088_v21 }
 0x839   :  { %v8382_v6 = vperm.slane %v5090_v13, 0 }
 0x83b   :  { %v5155_v45 = vmul.f32 %v8382_v6, %v8008_v55  ;;  %v5092_v26 = vmul.f32 %v8382_v6, %v8012_v36  ;;  %v5093_v25 = vmul.f32 %v8382_v6, %v8016_v4  ;;  %v5094_v16 = vmul.f32 %v8382_v6, %v8020_v18 }
 0x83c   :  { %v5095_v12 = vmul.f32 %v8382_v6, %v8028_v41  ;;  %v5096_v38 = vmul.f32 %v8382_v6, %v8032_v50  ;;  %v5097_v55 = vmul.f32 %v8382_v6, %v8038_v54  ;;  %v5098_v15 = vmul.f32 %v8382_v6, %v8044_v40 }
 0x83d   :  { %v5223_v48 = vadd.f32 %v8380_v51, %v5155_v45  ;;  %v5160_v36 = vadd.f32 %v8380_v51, %v5092_v26  ;;  %v5161_v35 = vadd.f32 %v8380_v51, %v5093_v25  ;;  %v5162_v4 = vadd.f32 %v8380_v51, %v5094_v16 }
 0x83e   :  { %v5099_v18 = vmul.f32 %v8382_v6, %v8050_v34  ;;  %v5163_v41 = vadd.f32 %v8380_v51, %v5095_v12  ;;  %v5100_v50 = vmul.f32 %v8382_v6, %v8056_v58  ;;  %v5101_v54 = vmul.f32 %v8382_v6, %v8062_v44 }
 0x83f   :  { %5287 = vst [vmem:[#allocation8 + $0x1f8] sm:$0xff] %v5223_v48  ;;  %v5102_v40 = vmul.f32 %v8382_v6, %v8068_v28  ;;  %v5164_v56 = vadd.f32 %v8380_v51, %v5096_v38  ;;  %v5103_v37 = vmul.f32 %v8382_v6, %v8074_v57  ;;  %v5104_v34 = vmul.f32 %v8382_v6, %v8080_v49 }
 0x840   :  { %5224 = vst [vmem:[#allocation8] sm:$0xff] %v5160_v36  ;;  %v5105_v43 = vmul.f32 %v8382_v6, %v8086_v60  ;;  %v5165_v58 = vadd.f32 %v8380_v51, %v5097_v55  ;;  %v5106_v44 = vmul.f32 %v8382_v6, %v8092_v63  ;;  %v5107_v28 = vmul.f32 %v8382_v6, %v8098_v14 }
 0x841   :  { %5225 = vst [vmem:[#allocation8 + $0x8] sm:$0xff] %v5161_v35  ;;  %v5108_v9 = vmul.f32 %v8382_v6, %v8104_v5  ;;  %v5166_v57 = vadd.f32 %v8380_v51, %v5098_v15  ;;  %v5109_v49 = vmul.f32 %v8382_v6, %v8110_v1  ;;  %v5110_v60 = vmul.f32 %v8382_v6, %v8116_v0 }
 0x842   :  { %5226 = vst [vmem:[#allocation8 + $0x10] sm:$0xff] %v5162_v4  ;;  %v5111_v39 = vmul.f32 %v8382_v6, %v8122_v46  ;;  %v5167_v63 = vadd.f32 %v8380_v51, %v5099_v18  ;;  %v5112_v14 = vmul.f32 %v8382_v6, %v8128_v10  ;;  %v5113_v5 = vmul.f32 %v8382_v6, %v8134_v20 }
 0x843   :  { %5227 = vst [vmem:[#allocation8 + $0x18] sm:$0xff] %v5163_v41  ;;  %v5141_v24 = vmul.f32 %v8382_v6, %v8302_v61  ;;  %v5168_v1 = vadd.f32 %v8380_v51, %v5100_v50  ;;  %v5142_v0 = vmul.f32 %v8382_v6, %v8308_v30  ;;  %v5143_v46 = vmul.f32 %v8382_v6, %v8314_v3 }
 0x844   :  { %5228 = vst [vmem:[#allocation8 + $0x20] sm:$0xff] %v5164_v56  ;;  %v5144_v17 = vmul.f32 %v8382_v6, %v8320_v62  ;;  %v5169_v10 = vadd.f32 %v8380_v51, %v5101_v54  ;;  %v5145_v20 = vmul.f32 %v8382_v6, %v8326_v22  ;;  %v5146_v61 = vmul.f32 %v8382_v6, %v8332_v7 }
 0x845   :  { %5229 = vst [vmem:[#allocation8 + $0x28] sm:$0xff] %v5165_v58  ;;  %v5147_v21 = vmul.f32 %v8382_v6, %v8338_v42  ;;  %v5170_v30 = vadd.f32 %v8380_v51, %v5102_v40  ;;  %v5148_v3 = vmul.f32 %v8382_v6, %v8344_v53  ;;  %v5149_v62 = vmul.f32 %v8382_v6, %v8350_v52 }
 0x846   :  { %5230 = vst [vmem:[#allocation8 + $0x30] sm:$0xff] %v5166_v57  ;;  %v5150_v13 = vmul.f32 %v8382_v6, %v8356_v11  ;;  %v5171_v22 = vadd.f32 %v8380_v51, %v5103_v37  ;;  %v5151_v7 = vmul.f32 %v8382_v6, %v7996_v29  ;;  %v5152_v42 = vmul.f32 %v8382_v6, %v7999_v31  ;;  %v9320_v57 = vld [vmem:[#allocation141_spill] sm:$0xff] }
 0x847   :  { %5231 = vst [vmem:[#allocation8 + $0x38] sm:$0xff] %v5167_v63  ;;  %v5153_v45 = vmul.f32 %v8382_v6, %v8002_v19  ;;  %v5172_v53 = vadd.f32 %v8380_v51, %v5104_v34  ;;  %v5154_v52 = vmul.f32 %v8382_v6, %v8005_v23  ;;  %v5173_v11 = vadd.f32 %v8380_v51, %v5105_v43  ;;  %v9322_v63 = vld [vmem:[#allocation79_spill] sm:$0xff] }
 0x848   :  { %5232 = vst [vmem:[#allocation8 + $0x40] sm:$0xff] %v5168_v1  ;;  %v5174_v48 = vadd.f32 %v8380_v51, %v5106_v44  ;;  %v5175_v26 = vadd.f32 %v8380_v51, %v5107_v28  ;;  %v5176_v29 = vadd.f32 %v8380_v51, %v5108_v9  ;;  %v5177_v31 = vadd.f32 %v8380_v51, %v5109_v49 }
 0x849   :  { %5233 = vst [vmem:[#allocation8 + $0x48] sm:$0xff] %v5169_v10  ;;  %v8478_v25 = vadd.f32 %v8380_v51, %v5141_v24  ;;  %v8481_v19 = vadd.f32 %v8380_v51, %v5142_v0  ;;  %v8484_v23 = vadd.f32 %v8380_v51, %v5143_v46  ;;  %v8487_v16 = vadd.f32 %v8380_v51, %v5144_v17  ;;  %v9324_v0 = vld [vmem:[#allocation49_spill] sm:$0xff] }
 0x84a   :  { %5234 = vst [vmem:[#allocation8 + $0x50] sm:$0xff] %v5170_v30  ;;  %v8490_v12 = vadd.f32 %v8380_v51, %v5145_v20  ;;  %v8493_v38 = vadd.f32 %v8380_v51, %v5146_v61  ;;  %v8496_v55 = vadd.f32 %v8380_v51, %v5147_v21  ;;  %v8499_v15 = vadd.f32 %v8380_v51, %v5148_v3  ;;  %v9325_v10 = vld [vmem:[#allocation81_spill] sm:$0xff] }
 0x84b   :  { %5235 = vst [vmem:[#allocation8 + $0x58] sm:$0xff] %v5171_v22  ;;  %v8502_v36 = vadd.f32 %v8380_v51, %v5149_v62  ;;  %v8505_v35 = vadd.f32 %v8380_v51, %v5150_v13  ;;  %v8508_v4 = vadd.f32 %v8380_v51, %v5151_v7  ;;  %v8511_v18 = vadd.f32 %v8380_v51, %v5152_v42  ;;  %v9326_v21 = vld [vmem:[#allocation21_spill] sm:$0xff]  ;;  %v9328_v7 = vld [vmem:[#allocation23_spill] sm:$0xff] }
 0x84c   :  { %5236 = vst [vmem:[#allocation8 + $0x60] sm:$0xff] %v5172_v53  ;;  %v8514_v41 = vadd.f32 %v8380_v51, %v5153_v45  ;;  %v8517_v50 = vadd.f32 %v8380_v51, %v5154_v52  ;;  %v5114_v54 = vmul.f32 %v8382_v6, %v8140_v8  ;;  %v5178_v40 = vadd.f32 %v8380_v51, %v5110_v60  ;;  %v9321_v60 = vld [vmem:[#allocation82_spill] sm:$0xff]  ;;  %v9327_v62 = vld [vmem:[#allocation25_spill] sm:$0xff] }
 0x84d   :  { %5237 = vst [vmem:[#allocation8 + $0x68] sm:$0xff] %v5173_v11  ;;  %v5115_v56 = vmul.f32 %v8382_v6, %v8146_v2  ;;  %v5179_v37 = vadd.f32 %v8380_v51, %v5111_v39  ;;  %v5116_v34 = vmul.f32 %v8382_v6, %v8152_v47  ;;  %v5180_v43 = vadd.f32 %v8380_v51, %v5112_v14  ;;  %v9329_v53 = vld [vmem:[#allocation50_spill] sm:$0xff] }
 0x84e   :  { %5238 = vst [vmem:[#allocation8 + $0x70] sm:$0xff] %v5174_v48  ;;  %v5117_v58 = vmul.f32 %v8382_v6, %v8158_v59  ;;  %v5181_v8 = vadd.f32 %v8380_v51, %v5113_v5  ;;  %v5118_v44 = vmul.f32 %v8382_v6, %v8164_v27  ;;  %v5182_v2 = vadd.f32 %v8380_v51, %v5114_v54  ;;  %v9323_v5 = vld [vmem:[#allocation20_spill] sm:$0xff]  ;;  %v9330_v48 = vld [vmem:[#allocation22_spill] sm:$0xff] }
 0x84f   :  { %5239 = vst [vmem:[#allocation8 + $0x78] sm:$0xff] %v5175_v26  ;;  %v5119_v28 = vmul.f32 %v8382_v6, %v8170_v33  ;;  %v5183_v47 = vadd.f32 %v8380_v51, %v5115_v56  ;;  %v5120_v9 = vmul.f32 %v8382_v6, %v8176_v32  ;;  %v5184_v59 = vadd.f32 %v8380_v51, %v5116_v34  ;;  %v9332_v56 = vld [vmem:[#allocation24_spill] sm:$0xff] }
 0x850   :  { %5240 = vst [vmem:[#allocation8 + $0x80] sm:$0xff] %v5176_v29  ;;  %v5121_v49 = vmul.f32 %v8382_v6, %v9320_v57  ;;  %v5185_v27 = vadd.f32 %v8380_v51, %v5117_v58  ;;  %v5122_v39 = vmul.f32 %v8382_v6, %v9321_v60  ;;  %v5186_v33 = vadd.f32 %v8380_v51, %v5118_v44  ;;  %v9334_v44 = vld [vmem:[#allocation51_spill] sm:$0xff] }
 0x851   :  { %5241 = vst [vmem:[#allocation8 + $0x88] sm:$0xff] %v5177_v31  ;;  %v5123_v14 = vmul.f32 %v8382_v6, %v9322_v63  ;;  %v5187_v32 = vadd.f32 %v8380_v51, %v5119_v28  ;;  %v5124_v24 = vmul.f32 %v8382_v6, %v9323_v5  ;;  %v5188_v1 = vadd.f32 %v8380_v51, %v5120_v9  ;;  %v9331_v31 = vld [vmem:[#allocation55_spill] sm:$0xff]  ;;  %v9338_v63 = vld [vmem:[#allocation52_spill] sm:$0xff] }
 0x852   :  { %5242 = vst [vmem:[#allocation8 + $0x90] sm:$0xff] %v5178_v40  ;;  %v5125_v46 = vmul.f32 %v8382_v6, %v9324_v0  ;;  %v5189_v17 = vadd.f32 %v8380_v51, %v5121_v49  ;;  %v5126_v20 = vmul.f32 %v8382_v6, %v9325_v10  ;;  %v5190_v61 = vadd.f32 %v8380_v51, %v5122_v39  ;;  %v9336_v57 = vld [vmem:[#allocation83_spill] sm:$0xff] }
 0x853   :  { %5243 = vst [vmem:[#allocation8 + $0x98] sm:$0xff] %v5179_v37  ;;  %v5127_v30 = vmul.f32 %v8382_v6, %v9326_v21  ;;  %v5191_v3 = vadd.f32 %v8380_v51, %v5123_v14  ;;  %v5128_v13 = vmul.f32 %v8382_v6, %v9327_v62  ;;  %v5192_v22 = vadd.f32 %v8380_v51, %v5124_v24  ;;  %v9337_v60 = vld [vmem:[#allocation63_spill] sm:$0xff] }
 0x854   :  { %5244 = vst [vmem:[#allocation8 + $0xa0] sm:$0xff] %v5180_v43  ;;  %v5129_v42 = vmul.f32 %v8382_v6, %v9328_v7  ;;  %v5193_v45 = vadd.f32 %v8380_v51, %v5125_v46  ;;  %v5130_v52 = vmul.f32 %v8382_v6, %v9329_v53  ;;  %v5194_v11 = vadd.f32 %v8380_v51, %v5126_v20  ;;  %v9333_v43 = vld [vmem:[#allocation91_spill] sm:$0xff] }
 0x855   :  { %5245 = vst [vmem:[#allocation8 + $0xa8] sm:$0xff] %v5181_v8  ;;  %v5131_v26 = vmul.f32 %v8382_v6, %v9330_v48  ;;  %v5195_v29 = vadd.f32 %v8380_v51, %v5127_v30  ;;  %v5132_v54 = vmul.f32 %v8382_v6, %v9331_v31  ;;  %v5196_v40 = vadd.f32 %v8380_v51, %v5128_v13  ;;  %v9339_v5 = vld [vmem:[#allocation27_spill] sm:$0xff] }
 0x856   :  { %5246 = vst [vmem:[#allocation8 + $0xb0] sm:$0xff] %v5182_v2  ;;  %v5133_v37 = vmul.f32 %v8382_v6, %v9332_v56  ;;  %v5197_v34 = vadd.f32 %v8380_v51, %v5129_v42  ;;  %v5134_v58 = vmul.f32 %v8382_v6, %v9333_v43  ;;  %v5198_v8 = vadd.f32 %v8380_v51, %v5130_v52 }
 0x857   :  { %5247 = vst [vmem:[#allocation8 + $0xb8] sm:$0xff] %v5183_v47  ;;  %v5135_v2 = vmul.f32 %v8382_v6, %v9334_v44  ;;  %v5199_v28 = vadd.f32 %v8380_v51, %v5131_v26  ;;  %v9335_v47 = vld [vmem:[#allocation26_spill] sm:$0xff]  ;;  %v5137_v49 = vmul.f32 %v8382_v6, %v9336_v57  ;;  %v5138_v39 = vmul.f32 %v8382_v6, %v9337_v60 }
 0x858   :  { %5248 = vst [vmem:[#allocation8 + $0xc0] sm:$0xff] %v5184_v59  ;;  %v5136_v9 = vmul.f32 %v8382_v6, %v9335_v47  ;;  %v5200_v59 = vadd.f32 %v8380_v51, %v5132_v54  ;;  %v5139_v14 = vmul.f32 %v8382_v6, %v9338_v63  ;;  %v5140_v24 = vmul.f32 %v8382_v6, %v9339_v5 }
 0x859   :  { %5249 = vst [vmem:[#allocation8 + $0xc8] sm:$0xff] %v5185_v27  ;;  %v5201_v27 = vadd.f32 %v8380_v51, %v5133_v37  ;;  %v5205_v0 = vadd.f32 %v8380_v51, %v5137_v49  ;;  %v5206_v46 = vadd.f32 %v8380_v51, %v5138_v39 }
 0x85a   :  { %5250 = vst [vmem:[#allocation8 + $0xd0] sm:$0xff] %v5186_v33  ;;  %v5202_v33 = vadd.f32 %v8380_v51, %v5134_v58  ;;  %v5208_v10 = vadd.f32 %v8380_v51, %v5140_v24 }
 0x85b   :  { %5251 = vst [vmem:[#allocation8 + $0xd8] sm:$0xff] %v5187_v32  ;;  %v5203_v32 = vadd.f32 %v8380_v51, %v5135_v2 }
 0x85c   :  { %5252 = vst [vmem:[#allocation8 + $0xe0] sm:$0xff] %v5188_v1  ;;  %v5204_v1 = vadd.f32 %v8380_v51, %v5136_v9 }
 0x85d   :  { %5253 = vst [vmem:[#allocation8 + $0xe8] sm:$0xff] %v5189_v17  ;;  %v5207_v17 = vadd.f32 %v8380_v51, %v5139_v14 }
 0x85e   :  { %5254 = vst [vmem:[#allocation8 + $0xf0] sm:$0xff] %v5190_v61 }
 0x85f   :  { %5255 = vst [vmem:[#allocation8 + $0xf8] sm:$0xff] %v5191_v3 }
 0x860   :  { %5256 = vst [vmem:[#allocation8 + $0x100] sm:$0xff] %v5192_v22 }
 0x861   :  { %5257 = vst [vmem:[#allocation8 + $0x108] sm:$0xff] %v5193_v45 }
 0x862   :  { %5258 = vst [vmem:[#allocation8 + $0x110] sm:$0xff] %v5194_v11 }
 0x863   :  { %5259 = vst [vmem:[#allocation8 + $0x118] sm:$0xff] %v5195_v29 }
 0x864   :  { %5260 = vst [vmem:[#allocation8 + $0x120] sm:$0xff] %v5196_v40 }
 0x865   :  { %5261 = vst [vmem:[#allocation8 + $0x128] sm:$0xff] %v5197_v34 }
 0x866   :  { %5262 = vst [vmem:[#allocation8 + $0x130] sm:$0xff] %v5198_v8 }
 0x867   :  { %5263 = vst [vmem:[#allocation8 + $0x138] sm:$0xff] %v5199_v28 }
 0x868   :  { %5264 = vst [vmem:[#allocation8 + $0x140] sm:$0xff] %v5200_v59 }
 0x869   :  { %5265 = vst [vmem:[#allocation8 + $0x148] sm:$0xff] %v5201_v27 }
 0x86a   :  { %5266 = vst [vmem:[#allocation8 + $0x150] sm:$0xff] %v5202_v33 }
 0x86b   :  { %5267 = vst [vmem:[#allocation8 + $0x158] sm:$0xff] %v5203_v32 }
 0x86c   :  { %5268 = vst [vmem:[#allocation8 + $0x160] sm:$0xff] %v5204_v1 }
 0x86d   :  { %5269 = vst [vmem:[#allocation8 + $0x168] sm:$0xff] %v5205_v0 }
 0x86e   :  { %5270 = vst [vmem:[#allocation8 + $0x170] sm:$0xff] %v5206_v46 }
 0x86f   :  { %5271 = vst [vmem:[#allocation8 + $0x178] sm:$0xff] %v5207_v17 }
 0x870   :  { %5272 = vst [vmem:[#allocation8 + $0x180] sm:$0xff] %v5208_v10 }
 0x871   :  { %5273 = vst [vmem:[#allocation8 + $0x188] sm:$0xff] %v8478_v25 }
 0x872   :  { %5274 = vst [vmem:[#allocation8 + $0x190] sm:$0xff] %v8481_v19 }
 0x873   :  { %5275 = vst [vmem:[#allocation8 + $0x198] sm:$0xff] %v8484_v23 }
 0x874   :  { %5276 = vst [vmem:[#allocation8 + $0x1a0] sm:$0xff] %v8487_v16 }
 0x875   :  { %5277 = vst [vmem:[#allocation8 + $0x1a8] sm:$0xff] %v8490_v12 }
 0x876   :  { %5278 = vst [vmem:[#allocation8 + $0x1b0] sm:$0xff] %v8493_v38 }
 0x877   :  { %5279 = vst [vmem:[#allocation8 + $0x1b8] sm:$0xff] %v8496_v55 }
 0x878   :  { %5280 = vst [vmem:[#allocation8 + $0x1c0] sm:$0xff] %v8499_v15 }
 0x879   :  { %5281 = vst [vmem:[#allocation8 + $0x1c8] sm:$0xff] %v8502_v36 }
 0x87a   :  { %5282 = vst [vmem:[#allocation8 + $0x1d0] sm:$0xff] %v8505_v35 }
 0x87b   :  { %5283 = vst [vmem:[#allocation8 + $0x1d8] sm:$0xff] %v8508_v4 }
 0x87c   :  { %5284 = vst [vmem:[#allocation8 + $0x1e0] sm:$0xff] %v8511_v18 }
 0x87d   :  { %5285 = vst [vmem:[#allocation8 + $0x1e8] sm:$0xff] %v8514_v41 }
 0x87e   :  { %5286 = vst [vmem:[#allocation8 + $0x1f0] sm:$0xff] %v8517_v50 }
 0x87f   :  { %5300 = dma.vmem_to_hbm [thread:$0]  %s5293_s5, 8192, %s5295_s24, [#allocation4], %s5968_s9, %s5968_s9, %s5969_s10  }
 0x880   :  { %5962 = dma.done.wait [#allocation4], 8192  }
 0x881   :  { %5963 = vsyncadd [#allocation4], 4294959104 }
 0x882   :  { %5305 = vsyncpa [#allocation3], 1 }
 0x883   :  { %5306 = vsyncpa [#allocation6], 1 }
 0x884   :  { %5307 = vsyncpa [#allocation4], 1 }

</bundles_post_ra>
